<compile_context>
chip_gen: v5e
topology: v5e:2x2
jax: 0.10.0
libtpu: 0.0.40
codegen_flags: <defaults>
</compile_context>

<pallas_src>
from functools import partial

import jax
import jax.numpy as jnp
import numpy as np
from jax import lax
from jax.experimental import pallas as pl
from jax.experimental.pallas import tpu as pltpu


def _round_up(a, m):
    return (a + m - 1) // m * m


# ----------------------------------------------------------------------------
# Fused DenseBlock kernel (one grid step = one (batch, row-tile) pair).
# ----------------------------------------------------------------------------
def _dense_block_kernel(x_ref, mask_ref, *refs, Wp, k_list, write_off,
                        res_scale):
    # x_ref      : (1, 1, C8, P) f32   input band, zero halo / pad lanes
    # mask_ref   : (1, 1, P)     f32   per-tile valid-pixel mask
    # refs[0:10] : w1,b1,...,w5,b5  wi: (9, CoutPad_i, K_i), bi: (CoutPad_i, 1)
    # refs[10]   : o_ref (1, 1, C8, P)
    # refs[11]   : feat_ref (Ctot_pad, P) resident dense-concat feature map
    o_ref = refs[10]
    feat_ref = refs[11]
    wbs = [(refs[2 * i], refs[2 * i + 1]) for i in range(5)]

    P = feat_ref.shape[-1]
    C8 = x_ref.shape[-2]
    # flat-lane offset of tap (ky, kx) relative to the output pixel
    deltas = tuple((ky - 1) * Wp + (kx - 1)
                   for ky in range(3) for kx in range(3))

    x_val = x_ref[0, 0]          # (C8, P) f32, kept f32 for the residual add
    mask = mask_ref[0]           # (1, P)  f32

    # Slot 0 of the feature map <- x (cast at the MXU boundary only).
    # No zero-init of the scratch: every layer contracts only rows already
    # written this grid step, so stale/uninitialized VMEM is never read.
    feat_ref[pl.ds(0, C8), :] = x_val.astype(feat_ref.dtype)

    for layer in range(5):
        w_ref, b_ref = wbs[layer]
        K_i = k_list[layer]                          # channels written so far
        feat = feat_ref[pl.ds(0, K_i), :]            # (K_i, P)

        # 3x3 conv = 9 dots against the UNSHIFTED feature map; the tap shift
        # moves to the small (CoutPad, P) output via an XLU lane roll.
        acc = None
        for k, d in enumerate(deltas):
            # W is the small streamed LHS; features are the stationary RHS.
            z = jnp.dot(w_ref[k], feat, preferred_element_type=jnp.float32)
            if d != 0:
                z = pltpu.roll(z, shift=(-d) % P, axis=1)
            acc = z if acc is None else acc + z

        out = acc + b_ref[...]                       # f32 bias
        if layer < 4:
            act = jnp.where(out >= 0.0, out, 0.2 * out) * mask   # LeakyReLU
            feat_ref[pl.ds(write_off[layer], act.shape[0]), :] = \
                act.astype(feat_ref.dtype)
        else:
            o_ref[0, 0] = (out * res_scale + x_val).astype(o_ref.dtype)


# ----------------------------------------------------------------------------
# Wrapper: host-side packing, row tiling, one pallas_call for the whole block.
# ----------------------------------------------------------------------------
def dense_block_pallas(x_nchw, params, res_scale=0.2, mxu_dtype=jnp.bfloat16,
                       row_tile=None):
    """x_nchw: (N, C, H, W) f32.  params: list of (w HWIO (3,3,Cin,Cout), b)."""
    N, C, H, W = x_nchw.shape
    g = params[0][1].shape[0]                    # channels_per_conv
    C8, g8 = _round_up(C, 8), _round_up(g, 8)
    write_off = (C8, C8 + g8, C8 + 2 * g8, C8 + 3 * g8)
    Ctot_pad = C8 + 4 * g8
    k_list = (C8, C8 + g8, C8 + 2 * g8, C8 + 3 * g8, Ctot_pad)

    # --- row tiling (1 tile = TH output rows; 5 convs -> 5-row data halo) ---
    if row_tile is None:
        row_tile = H if H <= 128 else 128
    TH = min(int(row_tile), H)
    n_tiles = -(-H // TH)
    H_pad = n_tiles * TH
    halo = 1 if n_tiles == 1 else 5
    BH = TH + 2 * halo
    Wp = W + 2
    P = _round_up(BH * Wp, 128)                  # lane-dense flattened band

    # --- input bands: channel pad, row halo (+ fake bottom rows), col halo --
    x_p = jnp.pad(x_nchw, ((0, 0), (0, C8 - C),
                           (halo, halo + H_pad - H), (1, 1)))
    bands = jnp.stack([x_p[:, :, t * TH: t * TH + BH, :]
                       for t in range(n_tiles)], axis=1)   # (N,T,C8,BH,Wp)
    bands = bands.reshape(N, n_tiles, C8, BH * Wp)
    bands = jnp.pad(bands, ((0, 0), (0, 0), (0, 0), (0, P - BH * Wp)))

    # --- per-tile valid-pixel mask (zeros the global pad & fake rows) -------
    ell, xp = np.divmod(np.arange(BH * Wp), Wp)
    masks = np.zeros((n_tiles, 1, P), np.float32)
    for t in range(n_tiles):
        row = t * TH - halo + ell
        ok = (xp >= 1) & (xp <= W) & (row >= 0) & (row < H)
        masks[t, 0, :BH * Wp] = ok.astype(np.float32)
    masks = jnp.asarray(masks)

    # --- weights: per layer, per tap, (CoutPad, K_i); channel slots padded
    #     to multiples of 8, only already-written slots present (no dead K).
    wmats, bmats = [], []
    for li, (w, b) in enumerate(params):
        Cin, Cout = w.shape[2], w.shape[3]
        CoutPad = C8 if li == 4 else g8
        wt = jnp.transpose(w.reshape(9, Cin, Cout), (0, 2, 1))  # (9,Cout,Cin)
        sizes = [C] + [g] * li
        pads = [C8] + [g8] * li
        chunks, start = [], 0
        for sz, pz in zip(sizes, pads):
            chunks.append(jnp.pad(wt[:, :, start:start + sz],
                                  ((0, 0), (0, 0), (0, pz - sz))))
            start += sz
        wk = jnp.concatenate(chunks, axis=-1)            # (9, Cout, K_i)
        wk = jnp.pad(wk, ((0, 0), (0, CoutPad - Cout), (0, 0)))
        wmats.append(wk.astype(mxu_dtype))
        bmats.append(jnp.pad(b, (0, CoutPad - Cout))
                     .reshape(CoutPad, 1).astype(jnp.float32))

    # --- specs --------------------------------------------------------------
    in_specs = [
        pl.BlockSpec((1, 1, C8, P), lambda n, t: (n, t, 0, 0)),
        pl.BlockSpec((1, 1, P), lambda n, t: (t, 0, 0)),
    ]
    args = [bands, masks]
    for wm, bm in zip(wmats, bmats):
        in_specs.append(pl.BlockSpec(wm.shape, lambda n, t: (0, 0, 0)))
        in_specs.append(pl.BlockSpec(bm.shape, lambda n, t: (0, 0)))
        args.extend([wm, bm])

    # --- explicit VMEM limit (scoped default is only 16/32 MiB) -------------
    itemsize = jnp.dtype(mxu_dtype).itemsize
    wbytes = sum(int(wm.size) * itemsize + int(bm.size) * 4
                 for wm, bm in zip(wmats, bmats))
    est = (Ctot_pad * P * itemsize           # resident feature scratch
           + 4 * C8 * P * 4                  # x / out blocks, double-buffered
           + 2 * P * 4                       # mask block
           + 2 * wbytes                      # weight / bias blocks
           + 4 * C8 * P * 4)                 # f32 accumulators / temporaries
    vmem_limit = int(min(64 * 2 ** 20, max(32 * 2 ** 20, 2 * est)))

    kernel = partial(_dense_block_kernel, Wp=Wp, k_list=k_list,
                     write_off=write_off, res_scale=float(res_scale))

    out = pl.pallas_call(
        kernel,
        out_shape=jax.ShapeDtypeStruct((N, n_tiles, C8, P), jnp.float32),
        grid_spec=pltpu.PrefetchScalarGridSpec(
            num_scalar_prefetch=0,
            grid=(N, n_tiles),
            in_specs=in_specs,
            out_specs=pl.BlockSpec((1, 1, C8, P), lambda n, t: (n, t, 0, 0)),
            scratch_shapes=[pltpu.VMEM((Ctot_pad, P), mxu_dtype)],
        ),
        compiler_params=pltpu.CompilerParams(
            dimension_semantics=("parallel", "parallel"),
            vmem_limit_bytes=vmem_limit),
    )(*args)

    # --- strip channel pad, lane pad, halo; reassemble row tiles -> NCHW ----
    out = out[:, :, :C, :BH * Wp].reshape(N, n_tiles, C, BH, Wp)
    out = out[:, :, :, halo:halo + TH, 1:W + 1]           # (N,T,C,TH,W)
    out = jnp.transpose(out, (0, 2, 1, 3, 4)).reshape(N, C, H_pad, W)
    return out[:, :, :H, :]


# ----------------------------------------------------------------------------
# Pure-JAX reference (same math, XLA conv) for correctness check.
# ----------------------------------------------------------------------------
def dense_block_ref(x_nchw, params, res_scale=0.2):
    def conv(x, w, b):
        y = lax.conv_general_dilated(
            x, w, window_strides=(1, 1), padding="SAME",
            dimension_numbers=("NCHW", "HWIO", "NCHW"))
        return y + b[None, :, None, None]

    outs = [x_nchw]
    for i, (w, b) in enumerate(params):
        inp = outs[0] if i == 0 else jnp.concatenate(outs, axis=1)
        y = conv(inp, w, b)
        if i < 4:
            y = jnp.where(y >= 0, y, 0.2 * y)
        outs.append(y)
    return outs[-1] * res_scale + x_nchw


# ----------------------------------------------------------------------------
# Parameter construction (mimics default_init_weights scale=0.1). Weights HWIO.
# ----------------------------------------------------------------------------
def make_params(key, in_channels, cpc):
    cins = [in_channels + i * cpc for i in range(5)]
    couts = [cpc, cpc, cpc, cpc, in_channels]
    params = []
    for cin, cout in zip(cins, couts):
        key, wk = jax.random.split(key)
        std = jnp.sqrt(2.0 / (cin * 9))
        w = 0.1 * std * jax.random.normal(wk, (3, 3, cin, cout), jnp.float32)
        b = jnp.zeros((cout,), jnp.float32)
        params.append((w, b))
    return params


if __name__ == "__main__":
    key = jax.random.PRNGKey(0)
    N, C, H, W = 2, 8, 16, 16          # x: (N, C, H, W) NCHW, like PyTorch
    cpc = 4                             # channels_per_conv
    res_scale = 0.2

    kx_, kp = jax.random.split(key)
    x = jax.random.normal(kx_, (N, C, H, W), jnp.float32)
    params = make_params(kp, C, cpc)
    ref = dense_block_ref(x, params, res_scale=res_scale)

    # (1) f32 MXU, single tile -> tight check of the base math.
    out_f32 = jax.block_until_ready(
        dense_block_pallas(x, params, res_scale=res_scale,
                           mxu_dtype=jnp.float32, row_tile=None))
    np.testing.assert_allclose(np.asarray(out_f32), np.asarray(ref),
                               rtol=2e-4, atol=2e-4)

    # (2) f32 MXU, 3 row tiles (16 not divisible by 6) -> halo/mask logic.
    out_tiled = jax.block_until_ready(
        dense_block_pallas(x, params, res_scale=res_scale,
                           mxu_dtype=jnp.float32, row_tile=6))
    np.testing.assert_allclose(np.asarray(out_tiled), np.asarray(ref),
                               rtol=2e-4, atol=2e-4)

    # (3) default bf16 MXU (f32 accumulate/elementwise), 2 row tiles.
    out_bf16 = jax.block_until_ready(
        dense_block_pallas(x, params, res_scale=res_scale, row_tile=8))
    np.testing.assert_allclose(np.asarray(out_bf16), np.asarray(ref),
                               rtol=2e-2, atol=2e-2)

    assert out_bf16.shape == (N, C, H, W)
    print("KERNEL_OK")
</pallas_src>

<mosaic_0001>
module attributes {stable_mosaic.version = 11 : i64} {
  func.func @_dense_block_kernel(%arg0: i32, %arg1: i32, %arg2: memref<1x1x8x384xf32, #tpu.memory_space<vmem>>, %arg3: memref<1x1x384xf32, #tpu.memory_space<vmem>>, %arg4: memref<9x8x8xf32, #tpu.memory_space<vmem>>, %arg5: memref<8x1xf32, #tpu.memory_space<vmem>>, %arg6: memref<9x8x16xf32, #tpu.memory_space<vmem>>, %arg7: memref<8x1xf32, #tpu.memory_space<vmem>>, %arg8: memref<9x8x24xf32, #tpu.memory_space<vmem>>, %arg9: memref<8x1xf32, #tpu.memory_space<vmem>>, %arg10: memref<9x8x32xf32, #tpu.memory_space<vmem>>, %arg11: memref<8x1xf32, #tpu.memory_space<vmem>>, %arg12: memref<9x8x40xf32, #tpu.memory_space<vmem>>, %arg13: memref<8x1xf32, #tpu.memory_space<vmem>>, %arg14: memref<1x1x8x384xf32, #tpu.memory_space<vmem>>, %arg15: memref<40x384xf32, #tpu.memory_space<vmem>>) attributes {dimension_semantics = [#tpu.dimension_semantics<parallel>, #tpu.dimension_semantics<parallel>], iteration_bounds = array<i64: 2, 1>, scalar_prefetch = 0 : i64, scratch_operands = 1 : i64, tpu.core_type = #tpu.core_type<tc>, window_params = [{transform_indices = @transform_0, window_bounds = array<i64: 1, 1, 8, 384>}, {transform_indices = @transform_1, window_bounds = array<i64: 1, 1, 384>}, {pipeline_mode = #tpu.pipeline_mode<synchronous>, transform_indices = @transform_2, window_bounds = array<i64: 9, 8, 8>}, {pipeline_mode = #tpu.pipeline_mode<synchronous>, transform_indices = @transform_3, window_bounds = array<i64: 8, 1>}, {pipeline_mode = #tpu.pipeline_mode<synchronous>, transform_indices = @transform_4, window_bounds = array<i64: 9, 8, 16>}, {pipeline_mode = #tpu.pipeline_mode<synchronous>, transform_indices = @transform_5, window_bounds = array<i64: 8, 1>}, {pipeline_mode = #tpu.pipeline_mode<synchronous>, transform_indices = @transform_6, window_bounds = array<i64: 9, 8, 24>}, {pipeline_mode = #tpu.pipeline_mode<synchronous>, transform_indices = @transform_7, window_bounds = array<i64: 8, 1>}, {pipeline_mode = #tpu.pipeline_mode<synchronous>, transform_indices = @transform_8, window_bounds = array<i64: 9, 8, 32>}, {pipeline_mode = #tpu.pipeline_mode<synchronous>, transform_indices = @transform_9, window_bounds = array<i64: 8, 1>}, {pipeline_mode = #tpu.pipeline_mode<synchronous>, transform_indices = @transform_10, window_bounds = array<i64: 9, 8, 40>}, {pipeline_mode = #tpu.pipeline_mode<synchronous>, transform_indices = @transform_11, window_bounds = array<i64: 8, 1>}, {transform_indices = @transform_12, window_bounds = array<i64: 1, 1, 8, 384>}]} {
    %c0 = arith.constant 0 : index
    %c0_0 = arith.constant 0 : index
    %c0_1 = arith.constant 0 : index
    %c0_2 = arith.constant 0 : index
    %0 = vector.load %arg2[%c0, %c0_0, %c0_1, %c0_2] : memref<1x1x8x384xf32, #tpu.memory_space<vmem>>, vector<1x1x8x384xf32>
    %1 = vector.shape_cast %0 : vector<1x1x8x384xf32> to vector<8x384xf32>
    %c0_3 = arith.constant 0 : index
    %c0_4 = arith.constant 0 : index
    %c0_5 = arith.constant 0 : index
    %2 = vector.load %arg3[%c0_3, %c0_4, %c0_5] : memref<1x1x384xf32, #tpu.memory_space<vmem>>, vector<1x1x384xf32>
    %3 = vector.shape_cast %2 : vector<1x1x384xf32> to vector<1x384xf32>
    %c0_6 = arith.constant 0 : index
    %c0_7 = arith.constant 0 : index
    %4 = vector.load %arg15[%c0_6, %c0_7] : memref<40x384xf32, #tpu.memory_space<vmem>>, vector<8x384xf32>
    tpu.vector_store %arg15[%c0_6, %c0_7], %1 {strides = array<i32>} : memref<40x384xf32, #tpu.memory_space<vmem>>, vector<8x384xf32>,
    %c0_8 = arith.constant 0 : index
    %c0_9 = arith.constant 0 : index
    %5 = vector.load %arg15[%c0_8, %c0_9] : memref<40x384xf32, #tpu.memory_space<vmem>>, vector<8x384xf32>
    %c0_10 = arith.constant 0 : index
    %c0_11 = arith.constant 0 : index
    %c0_12 = arith.constant 0 : index
    %6 = vector.load %arg4[%c0_10, %c0_11, %c0_12] : memref<9x8x8xf32, #tpu.memory_space<vmem>>, vector<1x8x8xf32>
    %7 = vector.shape_cast %6 : vector<1x8x8xf32> to vector<8x8xf32>
    %cst = arith.constant dense<0.000000e+00> : vector<8x384xf32>
    %8 = tpu.matmul %7, %5, %cst {dimension_numbers = #tpu.dot_dimension_numbers<[1], [0], [0], [1], [0, 0, 1, 1], [], []>} : vector<8x8xf32>, vector<8x384xf32>, vector<8x384xf32> -> vector<8x384xf32>
    %c19_i32 = arith.constant 19 : i32
    %9 = tpu.dynamic_rotate %8 by %c19_i32 dim 1 : vector<8x384xf32>, i32 -> vector<8x384xf32>
    %c1 = arith.constant 1 : index
    %c0_13 = arith.constant 0 : index
    %c0_14 = arith.constant 0 : index
    %10 = vector.load %arg4[%c1, %c0_13, %c0_14] : memref<9x8x8xf32, #tpu.memory_space<vmem>>, vector<1x8x8xf32>
    %11 = vector.shape_cast %10 : vector<1x8x8xf32> to vector<8x8xf32>
    %cst_15 = arith.constant dense<0.000000e+00> : vector<8x384xf32>
    %12 = tpu.matmul %11, %5, %cst_15 {dimension_numbers = #tpu.dot_dimension_numbers<[1], [0], [0], [1], [0, 0, 1, 1], [], []>} : vector<8x8xf32>, vector<8x384xf32>, vector<8x384xf32> -> vector<8x384xf32>
    %c18_i32 = arith.constant 18 : i32
    %13 = tpu.dynamic_rotate %12 by %c18_i32 dim 1 : vector<8x384xf32>, i32 -> vector<8x384xf32>
    %14 = arith.addf %9, %13 : vector<8x384xf32>
    %c2 = arith.constant 2 : index
    %c0_16 = arith.constant 0 : index
    %c0_17 = arith.constant 0 : index
    %15 = vector.load %arg4[%c2, %c0_16, %c0_17] : memref<9x8x8xf32, #tpu.memory_space<vmem>>, vector<1x8x8xf32>
    %16 = vector.shape_cast %15 : vector<1x8x8xf32> to vector<8x8xf32>
    %cst_18 = arith.constant dense<0.000000e+00> : vector<8x384xf32>
    %17 = tpu.matmul %16, %5, %cst_18 {dimension_numbers = #tpu.dot_dimension_numbers<[1], [0], [0], [1], [0, 0, 1, 1], [], []>} : vector<8x8xf32>, vector<8x384xf32>, vector<8x384xf32> -> vector<8x384xf32>
    %c17_i32 = arith.constant 17 : i32
    %18 = tpu.dynamic_rotate %17 by %c17_i32 dim 1 : vector<8x384xf32>, i32 -> vector<8x384xf32>
    %19 = arith.addf %14, %18 : vector<8x384xf32>
    %c3 = arith.constant 3 : index
    %c0_19 = arith.constant 0 : index
    %c0_20 = arith.constant 0 : index
    %20 = vector.load %arg4[%c3, %c0_19, %c0_20] : memref<9x8x8xf32, #tpu.memory_space<vmem>>, vector<1x8x8xf32>
    %21 = vector.shape_cast %20 : vector<1x8x8xf32> to vector<8x8xf32>
    %cst_21 = arith.constant dense<0.000000e+00> : vector<8x384xf32>
    %22 = tpu.matmul %21, %5, %cst_21 {dimension_numbers = #tpu.dot_dimension_numbers<[1], [0], [0], [1], [0, 0, 1, 1], [], []>} : vector<8x8xf32>, vector<8x384xf32>, vector<8x384xf32> -> vector<8x384xf32>
    %c1_i32 = arith.constant 1 : i32
    %23 = tpu.dynamic_rotate %22 by %c1_i32 dim 1 : vector<8x384xf32>, i32 -> vector<8x384xf32>
    %24 = arith.addf %19, %23 : vector<8x384xf32>
    %c4 = arith.constant 4 : index
    %c0_22 = arith.constant 0 : index
    %c0_23 = arith.constant 0 : index
    %25 = vector.load %arg4[%c4, %c0_22, %c0_23] : memref<9x8x8xf32, #tpu.memory_space<vmem>>, vector<1x8x8xf32>
    %26 = vector.shape_cast %25 : vector<1x8x8xf32> to vector<8x8xf32>
    %cst_24 = arith.constant dense<0.000000e+00> : vector<8x384xf32>
    %27 = tpu.matmul %26, %5, %cst_24 {dimension_numbers = #tpu.dot_dimension_numbers<[1], [0], [0], [1], [0, 0, 1, 1], [], []>} : vector<8x8xf32>, vector<8x384xf32>, vector<8x384xf32> -> vector<8x384xf32>
    %28 = arith.addf %24, %27 : vector<8x384xf32>
    %c5 = arith.constant 5 : index
    %c0_25 = arith.constant 0 : index
    %c0_26 = arith.constant 0 : index
    %29 = vector.load %arg4[%c5, %c0_25, %c0_26] : memref<9x8x8xf32, #tpu.memory_space<vmem>>, vector<1x8x8xf32>
    %30 = vector.shape_cast %29 : vector<1x8x8xf32> to vector<8x8xf32>
    %cst_27 = arith.constant dense<0.000000e+00> : vector<8x384xf32>
    %31 = tpu.matmul %30, %5, %cst_27 {dimension_numbers = #tpu.dot_dimension_numbers<[1], [0], [0], [1], [0, 0, 1, 1], [], []>} : vector<8x8xf32>, vector<8x384xf32>, vector<8x384xf32> -> vector<8x384xf32>
    %c383_i32 = arith.constant 383 : i32
    %32 = tpu.dynamic_rotate %31 by %c383_i32 dim 1 : vector<8x384xf32>, i32 -> vector<8x384xf32>
    %33 = arith.addf %28, %32 : vector<8x384xf32>
    %c6 = arith.constant 6 : index
    %c0_28 = arith.constant 0 : index
    %c0_29 = arith.constant 0 : index
    %34 = vector.load %arg4[%c6, %c0_28, %c0_29] : memref<9x8x8xf32, #tpu.memory_space<vmem>>, vector<1x8x8xf32>
    %35 = vector.shape_cast %34 : vector<1x8x8xf32> to vector<8x8xf32>
    %cst_30 = arith.constant dense<0.000000e+00> : vector<8x384xf32>
    %36 = tpu.matmul %35, %5, %cst_30 {dimension_numbers = #tpu.dot_dimension_numbers<[1], [0], [0], [1], [0, 0, 1, 1], [], []>} : vector<8x8xf32>, vector<8x384xf32>, vector<8x384xf32> -> vector<8x384xf32>
    %c367_i32 = arith.constant 367 : i32
    %37 = tpu.dynamic_rotate %36 by %c367_i32 dim 1 : vector<8x384xf32>, i32 -> vector<8x384xf32>
    %38 = arith.addf %33, %37 : vector<8x384xf32>
    %c7 = arith.constant 7 : index
    %c0_31 = arith.constant 0 : index
    %c0_32 = arith.constant 0 : index
    %39 = vector.load %arg4[%c7, %c0_31, %c0_32] : memref<9x8x8xf32, #tpu.memory_space<vmem>>, vector<1x8x8xf32>
    %40 = vector.shape_cast %39 : vector<1x8x8xf32> to vector<8x8xf32>
    %cst_33 = arith.constant dense<0.000000e+00> : vector<8x384xf32>
    %41 = tpu.matmul %40, %5, %cst_33 {dimension_numbers = #tpu.dot_dimension_numbers<[1], [0], [0], [1], [0, 0, 1, 1], [], []>} : vector<8x8xf32>, vector<8x384xf32>, vector<8x384xf32> -> vector<8x384xf32>
    %c366_i32 = arith.constant 366 : i32
    %42 = tpu.dynamic_rotate %41 by %c366_i32 dim 1 : vector<8x384xf32>, i32 -> vector<8x384xf32>
    %43 = arith.addf %38, %42 : vector<8x384xf32>
    %c8 = arith.constant 8 : index
    %c0_34 = arith.constant 0 : index
    %c0_35 = arith.constant 0 : index
    %44 = vector.load %arg4[%c8, %c0_34, %c0_35] : memref<9x8x8xf32, #tpu.memory_space<vmem>>, vector<1x8x8xf32>
    %45 = vector.shape_cast %44 : vector<1x8x8xf32> to vector<8x8xf32>
    %cst_36 = arith.constant dense<0.000000e+00> : vector<8x384xf32>
    %46 = tpu.matmul %45, %5, %cst_36 {dimension_numbers = #tpu.dot_dimension_numbers<[1], [0], [0], [1], [0, 0, 1, 1], [], []>} : vector<8x8xf32>, vector<8x384xf32>, vector<8x384xf32> -> vector<8x384xf32>
    %c365_i32 = arith.constant 365 : i32
    %47 = tpu.dynamic_rotate %46 by %c365_i32 dim 1 : vector<8x384xf32>, i32 -> vector<8x384xf32>
    %48 = arith.addf %43, %47 : vector<8x384xf32>
    %c0_37 = arith.constant 0 : index
    %c0_38 = arith.constant 0 : index
    %49 = vector.load %arg5[%c0_37, %c0_38] : memref<8x1xf32, #tpu.memory_space<vmem>>, vector<8x1xf32>
    %50 = vector.broadcast %49 : vector<8x1xf32> to vector<8x384xf32>
    %51 = arith.addf %48, %50 : vector<8x384xf32>
    %cst_39 = arith.constant 0.000000e+00 : f32
    %52 = vector.broadcast %cst_39 : f32 to vector<8x384xf32>
    %53 = arith.cmpf oge, %51, %52 : vector<8x384xf32>
    %cst_40 = arith.constant 2.000000e-01 : f32
    %54 = vector.broadcast %cst_40 : f32 to vector<8x384xf32>
    %55 = arith.mulf %54, %51 : vector<8x384xf32>
    %56 = arith.select %53, %51, %55 : vector<8x384xi1>, vector<8x384xf32>
    %57 = vector.broadcast %3 : vector<1x384xf32> to vector<8x384xf32>
    %58 = arith.mulf %56, %57 : vector<8x384xf32>
    %c8_41 = arith.constant 8 : index
    %c0_42 = arith.constant 0 : index
    %59 = vector.load %arg15[%c8_41, %c0_42] : memref<40x384xf32, #tpu.memory_space<vmem>>, vector<8x384xf32>
    tpu.vector_store %arg15[%c8_41, %c0_42], %58 {strides = array<i32>} : memref<40x384xf32, #tpu.memory_space<vmem>>, vector<8x384xf32>,
    %c0_43 = arith.constant 0 : index
    %c0_44 = arith.constant 0 : index
    %60 = vector.load %arg15[%c0_43, %c0_44] : memref<40x384xf32, #tpu.memory_space<vmem>>, vector<16x384xf32>
    %c0_45 = arith.constant 0 : index
    %c0_46 = arith.constant 0 : index
    %c0_47 = arith.constant 0 : index
    %61 = vector.load %arg6[%c0_45, %c0_46, %c0_47] : memref<9x8x16xf32, #tpu.memory_space<vmem>>, vector<1x8x16xf32>
    %62 = vector.shape_cast %61 : vector<1x8x16xf32> to vector<8x16xf32>
    %cst_48 = arith.constant dense<0.000000e+00> : vector<8x384xf32>
    %63 = tpu.matmul %62, %60, %cst_48 {dimension_numbers = #tpu.dot_dimension_numbers<[1], [0], [0], [1], [0, 0, 1, 1], [], []>} : vector<8x16xf32>, vector<16x384xf32>, vector<8x384xf32> -> vector<8x384xf32>
    %c19_i32_49 = arith.constant 19 : i32
    %64 = tpu.dynamic_rotate %63 by %c19_i32_49 dim 1 : vector<8x384xf32>, i32 -> vector<8x384xf32>
    %c1_50 = arith.constant 1 : index
    %c0_51 = arith.constant 0 : index
    %c0_52 = arith.constant 0 : index
    %65 = vector.load %arg6[%c1_50, %c0_51, %c0_52] : memref<9x8x16xf32, #tpu.memory_space<vmem>>, vector<1x8x16xf32>
    %66 = vector.shape_cast %65 : vector<1x8x16xf32> to vector<8x16xf32>
    %cst_53 = arith.constant dense<0.000000e+00> : vector<8x384xf32>
    %67 = tpu.matmul %66, %60, %cst_53 {dimension_numbers = #tpu.dot_dimension_numbers<[1], [0], [0], [1], [0, 0, 1, 1], [], []>} : vector<8x16xf32>, vector<16x384xf32>, vector<8x384xf32> -> vector<8x384xf32>
    %c18_i32_54 = arith.constant 18 : i32
    %68 = tpu.dynamic_rotate %67 by %c18_i32_54 dim 1 : vector<8x384xf32>, i32 -> vector<8x384xf32>
    %69 = arith.addf %64, %68 : vector<8x384xf32>
    %c2_55 = arith.constant 2 : index
    %c0_56 = arith.constant 0 : index
    %c0_57 = arith.constant 0 : index
    %70 = vector.load %arg6[%c2_55, %c0_56, %c0_57] : memref<9x8x16xf32, #tpu.memory_space<vmem>>, vector<1x8x16xf32>
    %71 = vector.shape_cast %70 : vector<1x8x16xf32> to vector<8x16xf32>
    %cst_58 = arith.constant dense<0.000000e+00> : vector<8x384xf32>
    %72 = tpu.matmul %71, %60, %cst_58 {dimension_numbers = #tpu.dot_dimension_numbers<[1], [0], [0], [1], [0, 0, 1, 1], [], []>} : vector<8x16xf32>, vector<16x384xf32>, vector<8x384xf32> -> vector<8x384xf32>
    %c17_i32_59 = arith.constant 17 : i32
    %73 = tpu.dynamic_rotate %72 by %c17_i32_59 dim 1 : vector<8x384xf32>, i32 -> vector<8x384xf32>
    %74 = arith.addf %69, %73 : vector<8x384xf32>
    %c3_60 = arith.constant 3 : index
    %c0_61 = arith.constant 0 : index
    %c0_62 = arith.constant 0 : index
    %75 = vector.load %arg6[%c3_60, %c0_61, %c0_62] : memref<9x8x16xf32, #tpu.memory_space<vmem>>, vector<1x8x16xf32>
    %76 = vector.shape_cast %75 : vector<1x8x16xf32> to vector<8x16xf32>
    %cst_63 = arith.constant dense<0.000000e+00> : vector<8x384xf32>
    %77 = tpu.matmul %76, %60, %cst_63 {dimension_numbers = #tpu.dot_dimension_numbers<[1], [0], [0], [1], [0, 0, 1, 1], [], []>} : vector<8x16xf32>, vector<16x384xf32>, vector<8x384xf32> -> vector<8x384xf32>
    %c1_i32_64 = arith.constant 1 : i32
    %78 = tpu.dynamic_rotate %77 by %c1_i32_64 dim 1 : vector<8x384xf32>, i32 -> vector<8x384xf32>
    %79 = arith.addf %74, %78 : vector<8x384xf32>
    %c4_65 = arith.constant 4 : index
    %c0_66 = arith.constant 0 : index
    %c0_67 = arith.constant 0 : index
    %80 = vector.load %arg6[%c4_65, %c0_66, %c0_67] : memref<9x8x16xf32, #tpu.memory_space<vmem>>, vector<1x8x16xf32>
    %81 = vector.shape_cast %80 : vector<1x8x16xf32> to vector<8x16xf32>
    %cst_68 = arith.constant dense<0.000000e+00> : vector<8x384xf32>
    %82 = tpu.matmul %81, %60, %cst_68 {dimension_numbers = #tpu.dot_dimension_numbers<[1], [0], [0], [1], [0, 0, 1, 1], [], []>} : vector<8x16xf32>, vector<16x384xf32>, vector<8x384xf32> -> vector<8x384xf32>
    %83 = arith.addf %79, %82 : vector<8x384xf32>
    %c5_69 = arith.constant 5 : index
    %c0_70 = arith.constant 0 : index
    %c0_71 = arith.constant 0 : index
    %84 = vector.load %arg6[%c5_69, %c0_70, %c0_71] : memref<9x8x16xf32, #tpu.memory_space<vmem>>, vector<1x8x16xf32>
    %85 = vector.shape_cast %84 : vector<1x8x16xf32> to vector<8x16xf32>
    %cst_72 = arith.constant dense<0.000000e+00> : vector<8x384xf32>
    %86 = tpu.matmul %85, %60, %cst_72 {dimension_numbers = #tpu.dot_dimension_numbers<[1], [0], [0], [1], [0, 0, 1, 1], [], []>} : vector<8x16xf32>, vector<16x384xf32>, vector<8x384xf32> -> vector<8x384xf32>
    %c383_i32_73 = arith.constant 383 : i32
    %87 = tpu.dynamic_rotate %86 by %c383_i32_73 dim 1 : vector<8x384xf32>, i32 -> vector<8x384xf32>
    %88 = arith.addf %83, %87 : vector<8x384xf32>
    %c6_74 = arith.constant 6 : index
    %c0_75 = arith.constant 0 : index
    %c0_76 = arith.constant 0 : index
    %89 = vector.load %arg6[%c6_74, %c0_75, %c0_76] : memref<9x8x16xf32, #tpu.memory_space<vmem>>, vector<1x8x16xf32>
    %90 = vector.shape_cast %89 : vector<1x8x16xf32> to vector<8x16xf32>
    %cst_77 = arith.constant dense<0.000000e+00> : vector<8x384xf32>
    %91 = tpu.matmul %90, %60, %cst_77 {dimension_numbers = #tpu.dot_dimension_numbers<[1], [0], [0], [1], [0, 0, 1, 1], [], []>} : vector<8x16xf32>, vector<16x384xf32>, vector<8x384xf32> -> vector<8x384xf32>
    %c367_i32_78 = arith.constant 367 : i32
    %92 = tpu.dynamic_rotate %91 by %c367_i32_78 dim 1 : vector<8x384xf32>, i32 -> vector<8x384xf32>
    %93 = arith.addf %88, %92 : vector<8x384xf32>
    %c7_79 = arith.constant 7 : index
    %c0_80 = arith.constant 0 : index
    %c0_81 = arith.constant 0 : index
    %94 = vector.load %arg6[%c7_79, %c0_80, %c0_81] : memref<9x8x16xf32, #tpu.memory_space<vmem>>, vector<1x8x16xf32>
    %95 = vector.shape_cast %94 : vector<1x8x16xf32> to vector<8x16xf32>
    %cst_82 = arith.constant dense<0.000000e+00> : vector<8x384xf32>
    %96 = tpu.matmul %95, %60, %cst_82 {dimension_numbers = #tpu.dot_dimension_numbers<[1], [0], [0], [1], [0, 0, 1, 1], [], []>} : vector<8x16xf32>, vector<16x384xf32>, vector<8x384xf32> -> vector<8x384xf32>
    %c366_i32_83 = arith.constant 366 : i32
    %97 = tpu.dynamic_rotate %96 by %c366_i32_83 dim 1 : vector<8x384xf32>, i32 -> vector<8x384xf32>
    %98 = arith.addf %93, %97 : vector<8x384xf32>
    %c8_84 = arith.constant 8 : index
    %c0_85 = arith.constant 0 : index
    %c0_86 = arith.constant 0 : index
    %99 = vector.load %arg6[%c8_84, %c0_85, %c0_86] : memref<9x8x16xf32, #tpu.memory_space<vmem>>, vector<1x8x16xf32>
    %100 = vector.shape_cast %99 : vector<1x8x16xf32> to vector<8x16xf32>
    %cst_87 = arith.constant dense<0.000000e+00> : vector<8x384xf32>
    %101 = tpu.matmul %100, %60, %cst_87 {dimension_numbers = #tpu.dot_dimension_numbers<[1], [0], [0], [1], [0, 0, 1, 1], [], []>} : vector<8x16xf32>, vector<16x384xf32>, vector<8x384xf32> -> vector<8x384xf32>
    %c365_i32_88 = arith.constant 365 : i32
    %102 = tpu.dynamic_rotate %101 by %c365_i32_88 dim 1 : vector<8x384xf32>, i32 -> vector<8x384xf32>
    %103 = arith.addf %98, %102 : vector<8x384xf32>
    %c0_89 = arith.constant 0 : index
    %c0_90 = arith.constant 0 : index
    %104 = vector.load %arg7[%c0_89, %c0_90] : memref<8x1xf32, #tpu.memory_space<vmem>>, vector<8x1xf32>
    %105 = vector.broadcast %104 : vector<8x1xf32> to vector<8x384xf32>
    %106 = arith.addf %103, %105 : vector<8x384xf32>
    %cst_91 = arith.constant 0.000000e+00 : f32
    %107 = vector.broadcast %cst_91 : f32 to vector<8x384xf32>
    %108 = arith.cmpf oge, %106, %107 : vector<8x384xf32>
    %cst_92 = arith.constant 2.000000e-01 : f32
    %109 = vector.broadcast %cst_92 : f32 to vector<8x384xf32>
    %110 = arith.mulf %109, %106 : vector<8x384xf32>
    %111 = arith.select %108, %106, %110 : vector<8x384xi1>, vector<8x384xf32>
    %112 = vector.broadcast %3 : vector<1x384xf32> to vector<8x384xf32>
    %113 = arith.mulf %111, %112 : vector<8x384xf32>
    %c16 = arith.constant 16 : index
    %c0_93 = arith.constant 0 : index
    %114 = vector.load %arg15[%c16, %c0_93] : memref<40x384xf32, #tpu.memory_space<vmem>>, vector<8x384xf32>
    tpu.vector_store %arg15[%c16, %c0_93], %113 {strides = array<i32>} : memref<40x384xf32, #tpu.memory_space<vmem>>, vector<8x384xf32>,
    %c0_94 = arith.constant 0 : index
    %c0_95 = arith.constant 0 : index
    %115 = vector.load %arg15[%c0_94, %c0_95] : memref<40x384xf32, #tpu.memory_space<vmem>>, vector<24x384xf32>
    %c0_96 = arith.constant 0 : index
    %c0_97 = arith.constant 0 : index
    %c0_98 = arith.constant 0 : index
    %116 = vector.load %arg8[%c0_96, %c0_97, %c0_98] : memref<9x8x24xf32, #tpu.memory_space<vmem>>, vector<1x8x24xf32>
    %117 = vector.shape_cast %116 : vector<1x8x24xf32> to vector<8x24xf32>
    %cst_99 = arith.constant dense<0.000000e+00> : vector<8x384xf32>
    %118 = tpu.matmul %117, %115, %cst_99 {dimension_numbers = #tpu.dot_dimension_numbers<[1], [0], [0], [1], [0, 0, 1, 1], [], []>} : vector<8x24xf32>, vector<24x384xf32>, vector<8x384xf32> -> vector<8x384xf32>
    %c19_i32_100 = arith.constant 19 : i32
    %119 = tpu.dynamic_rotate %118 by %c19_i32_100 dim 1 : vector<8x384xf32>, i32 -> vector<8x384xf32>
    %c1_101 = arith.constant 1 : index
    %c0_102 = arith.constant 0 : index
    %c0_103 = arith.constant 0 : index
    %120 = vector.load %arg8[%c1_101, %c0_102, %c0_103] : memref<9x8x24xf32, #tpu.memory_space<vmem>>, vector<1x8x24xf32>
    %121 = vector.shape_cast %120 : vector<1x8x24xf32> to vector<8x24xf32>
    %cst_104 = arith.constant dense<0.000000e+00> : vector<8x384xf32>
    %122 = tpu.matmul %121, %115, %cst_104 {dimension_numbers = #tpu.dot_dimension_numbers<[1], [0], [0], [1], [0, 0, 1, 1], [], []>} : vector<8x24xf32>, vector<24x384xf32>, vector<8x384xf32> -> vector<8x384xf32>
    %c18_i32_105 = arith.constant 18 : i32
    %123 = tpu.dynamic_rotate %122 by %c18_i32_105 dim 1 : vector<8x384xf32>, i32 -> vector<8x384xf32>
    %124 = arith.addf %119, %123 : vector<8x384xf32>
    %c2_106 = arith.constant 2 : index
    %c0_107 = arith.constant 0 : index
    %c0_108 = arith.constant 0 : index
    %125 = vector.load %arg8[%c2_106, %c0_107, %c0_108] : memref<9x8x24xf32, #tpu.memory_space<vmem>>, vector<1x8x24xf32>
    %126 = vector.shape_cast %125 : vector<1x8x24xf32> to vector<8x24xf32>
    %cst_109 = arith.constant dense<0.000000e+00> : vector<8x384xf32>
    %127 = tpu.matmul %126, %115, %cst_109 {dimension_numbers = #tpu.dot_dimension_numbers<[1], [0], [0], [1], [0, 0, 1, 1], [], []>} : vector<8x24xf32>, vector<24x384xf32>, vector<8x384xf32> -> vector<8x384xf32>
    %c17_i32_110 = arith.constant 17 : i32
    %128 = tpu.dynamic_rotate %127 by %c17_i32_110 dim 1 : vector<8x384xf32>, i32 -> vector<8x384xf32>
    %129 = arith.addf %124, %128 : vector<8x384xf32>
    %c3_111 = arith.constant 3 : index
    %c0_112 = arith.constant 0 : index
    %c0_113 = arith.constant 0 : index
    %130 = vector.load %arg8[%c3_111, %c0_112, %c0_113] : memref<9x8x24xf32, #tpu.memory_space<vmem>>, vector<1x8x24xf32>
    %131 = vector.shape_cast %130 : vector<1x8x24xf32> to vector<8x24xf32>
    %cst_114 = arith.constant dense<0.000000e+00> : vector<8x384xf32>
    %132 = tpu.matmul %131, %115, %cst_114 {dimension_numbers = #tpu.dot_dimension_numbers<[1], [0], [0], [1], [0, 0, 1, 1], [], []>} : vector<8x24xf32>, vector<24x384xf32>, vector<8x384xf32> -> vector<8x384xf32>
    %c1_i32_115 = arith.constant 1 : i32
    %133 = tpu.dynamic_rotate %132 by %c1_i32_115 dim 1 : vector<8x384xf32>, i32 -> vector<8x384xf32>
    %134 = arith.addf %129, %133 : vector<8x384xf32>
    %c4_116 = arith.constant 4 : index
    %c0_117 = arith.constant 0 : index
    %c0_118 = arith.constant 0 : index
    %135 = vector.load %arg8[%c4_116, %c0_117, %c0_118] : memref<9x8x24xf32, #tpu.memory_space<vmem>>, vector<1x8x24xf32>
    %136 = vector.shape_cast %135 : vector<1x8x24xf32> to vector<8x24xf32>
    %cst_119 = arith.constant dense<0.000000e+00> : vector<8x384xf32>
    %137 = tpu.matmul %136, %115, %cst_119 {dimension_numbers = #tpu.dot_dimension_numbers<[1], [0], [0], [1], [0, 0, 1, 1], [], []>} : vector<8x24xf32>, vector<24x384xf32>, vector<8x384xf32> -> vector<8x384xf32>
    %138 = arith.addf %134, %137 : vector<8x384xf32>
    %c5_120 = arith.constant 5 : index
    %c0_121 = arith.constant 0 : index
    %c0_122 = arith.constant 0 : index
    %139 = vector.load %arg8[%c5_120, %c0_121, %c0_122] : memref<9x8x24xf32, #tpu.memory_space<vmem>>, vector<1x8x24xf32>
    %140 = vector.shape_cast %139 : vector<1x8x24xf32> to vector<8x24xf32>
    %cst_123 = arith.constant dense<0.000000e+00> : vector<8x384xf32>
    %141 = tpu.matmul %140, %115, %cst_123 {dimension_numbers = #tpu.dot_dimension_numbers<[1], [0], [0], [1], [0, 0, 1, 1], [], []>} : vector<8x24xf32>, vector<24x384xf32>, vector<8x384xf32> -> vector<8x384xf32>
    %c383_i32_124 = arith.constant 383 : i32
    %142 = tpu.dynamic_rotate %141 by %c383_i32_124 dim 1 : vector<8x384xf32>, i32 -> vector<8x384xf32>
    %143 = arith.addf %138, %142 : vector<8x384xf32>
    %c6_125 = arith.constant 6 : index
    %c0_126 = arith.constant 0 : index
    %c0_127 = arith.constant 0 : index
    %144 = vector.load %arg8[%c6_125, %c0_126, %c0_127] : memref<9x8x24xf32, #tpu.memory_space<vmem>>, vector<1x8x24xf32>
    %145 = vector.shape_cast %144 : vector<1x8x24xf32> to vector<8x24xf32>
    %cst_128 = arith.constant dense<0.000000e+00> : vector<8x384xf32>
    %146 = tpu.matmul %145, %115, %cst_128 {dimension_numbers = #tpu.dot_dimension_numbers<[1], [0], [0], [1], [0, 0, 1, 1], [], []>} : vector<8x24xf32>, vector<24x384xf32>, vector<8x384xf32> -> vector<8x384xf32>
    %c367_i32_129 = arith.constant 367 : i32
    %147 = tpu.dynamic_rotate %146 by %c367_i32_129 dim 1 : vector<8x384xf32>, i32 -> vector<8x384xf32>
    %148 = arith.addf %143, %147 : vector<8x384xf32>
    %c7_130 = arith.constant 7 : index
    %c0_131 = arith.constant 0 : index
    %c0_132 = arith.constant 0 : index
    %149 = vector.load %arg8[%c7_130, %c0_131, %c0_132] : memref<9x8x24xf32, #tpu.memory_space<vmem>>, vector<1x8x24xf32>
    %150 = vector.shape_cast %149 : vector<1x8x24xf32> to vector<8x24xf32>
    %cst_133 = arith.constant dense<0.000000e+00> : vector<8x384xf32>
    %151 = tpu.matmul %150, %115, %cst_133 {dimension_numbers = #tpu.dot_dimension_numbers<[1], [0], [0], [1], [0, 0, 1, 1], [], []>} : vector<8x24xf32>, vector<24x384xf32>, vector<8x384xf32> -> vector<8x384xf32>
    %c366_i32_134 = arith.constant 366 : i32
    %152 = tpu.dynamic_rotate %151 by %c366_i32_134 dim 1 : vector<8x384xf32>, i32 -> vector<8x384xf32>
    %153 = arith.addf %148, %152 : vector<8x384xf32>
    %c8_135 = arith.constant 8 : index
    %c0_136 = arith.constant 0 : index
    %c0_137 = arith.constant 0 : index
    %154 = vector.load %arg8[%c8_135, %c0_136, %c0_137] : memref<9x8x24xf32, #tpu.memory_space<vmem>>, vector<1x8x24xf32>
    %155 = vector.shape_cast %154 : vector<1x8x24xf32> to vector<8x24xf32>
    %cst_138 = arith.constant dense<0.000000e+00> : vector<8x384xf32>
    %156 = tpu.matmul %155, %115, %cst_138 {dimension_numbers = #tpu.dot_dimension_numbers<[1], [0], [0], [1], [0, 0, 1, 1], [], []>} : vector<8x24xf32>, vector<24x384xf32>, vector<8x384xf32> -> vector<8x384xf32>
    %c365_i32_139 = arith.constant 365 : i32
    %157 = tpu.dynamic_rotate %156 by %c365_i32_139 dim 1 : vector<8x384xf32>, i32 -> vector<8x384xf32>
    %158 = arith.addf %153, %157 : vector<8x384xf32>
    %c0_140 = arith.constant 0 : index
    %c0_141 = arith.constant 0 : index
    %159 = vector.load %arg9[%c0_140, %c0_141] : memref<8x1xf32, #tpu.memory_space<vmem>>, vector<8x1xf32>
    %160 = vector.broadcast %159 : vector<8x1xf32> to vector<8x384xf32>
    %161 = arith.addf %158, %160 : vector<8x384xf32>
    %cst_142 = arith.constant 0.000000e+00 : f32
    %162 = vector.broadcast %cst_142 : f32 to vector<8x384xf32>
    %163 = arith.cmpf oge, %161, %162 : vector<8x384xf32>
    %cst_143 = arith.constant 2.000000e-01 : f32
    %164 = vector.broadcast %cst_143 : f32 to vector<8x384xf32>
    %165 = arith.mulf %164, %161 : vector<8x384xf32>
    %166 = arith.select %163, %161, %165 : vector<8x384xi1>, vector<8x384xf32>
    %167 = vector.broadcast %3 : vector<1x384xf32> to vector<8x384xf32>
    %168 = arith.mulf %166, %167 : vector<8x384xf32>
    %c24 = arith.constant 24 : index
    %c0_144 = arith.constant 0 : index
    %169 = vector.load %arg15[%c24, %c0_144] : memref<40x384xf32, #tpu.memory_space<vmem>>, vector<8x384xf32>
    tpu.vector_store %arg15[%c24, %c0_144], %168 {strides = array<i32>} : memref<40x384xf32, #tpu.memory_space<vmem>>, vector<8x384xf32>,
    %c0_145 = arith.constant 0 : index
    %c0_146 = arith.constant 0 : index
    %170 = vector.load %arg15[%c0_145, %c0_146] : memref<40x384xf32, #tpu.memory_space<vmem>>, vector<32x384xf32>
    %c0_147 = arith.constant 0 : index
    %c0_148 = arith.constant 0 : index
    %c0_149 = arith.constant 0 : index
    %171 = vector.load %arg10[%c0_147, %c0_148, %c0_149] : memref<9x8x32xf32, #tpu.memory_space<vmem>>, vector<1x8x32xf32>
    %172 = vector.shape_cast %171 : vector<1x8x32xf32> to vector<8x32xf32>
    %cst_150 = arith.constant dense<0.000000e+00> : vector<8x384xf32>
    %173 = tpu.matmul %172, %170, %cst_150 {dimension_numbers = #tpu.dot_dimension_numbers<[1], [0], [0], [1], [0, 0, 1, 1], [], []>} : vector<8x32xf32>, vector<32x384xf32>, vector<8x384xf32> -> vector<8x384xf32>
    %c19_i32_151 = arith.constant 19 : i32
    %174 = tpu.dynamic_rotate %173 by %c19_i32_151 dim 1 : vector<8x384xf32>, i32 -> vector<8x384xf32>
    %c1_152 = arith.constant 1 : index
    %c0_153 = arith.constant 0 : index
    %c0_154 = arith.constant 0 : index
    %175 = vector.load %arg10[%c1_152, %c0_153, %c0_154] : memref<9x8x32xf32, #tpu.memory_space<vmem>>, vector<1x8x32xf32>
    %176 = vector.shape_cast %175 : vector<1x8x32xf32> to vector<8x32xf32>
    %cst_155 = arith.constant dense<0.000000e+00> : vector<8x384xf32>
    %177 = tpu.matmul %176, %170, %cst_155 {dimension_numbers = #tpu.dot_dimension_numbers<[1], [0], [0], [1], [0, 0, 1, 1], [], []>} : vector<8x32xf32>, vector<32x384xf32>, vector<8x384xf32> -> vector<8x384xf32>
    %c18_i32_156 = arith.constant 18 : i32
    %178 = tpu.dynamic_rotate %177 by %c18_i32_156 dim 1 : vector<8x384xf32>, i32 -> vector<8x384xf32>
    %179 = arith.addf %174, %178 : vector<8x384xf32>
    %c2_157 = arith.constant 2 : index
    %c0_158 = arith.constant 0 : index
    %c0_159 = arith.constant 0 : index
    %180 = vector.load %arg10[%c2_157, %c0_158, %c0_159] : memref<9x8x32xf32, #tpu.memory_space<vmem>>, vector<1x8x32xf32>
    %181 = vector.shape_cast %180 : vector<1x8x32xf32> to vector<8x32xf32>
    %cst_160 = arith.constant dense<0.000000e+00> : vector<8x384xf32>
    %182 = tpu.matmul %181, %170, %cst_160 {dimension_numbers = #tpu.dot_dimension_numbers<[1], [0], [0], [1], [0, 0, 1, 1], [], []>} : vector<8x32xf32>, vector<32x384xf32>, vector<8x384xf32> -> vector<8x384xf32>
    %c17_i32_161 = arith.constant 17 : i32
    %183 = tpu.dynamic_rotate %182 by %c17_i32_161 dim 1 : vector<8x384xf32>, i32 -> vector<8x384xf32>
    %184 = arith.addf %179, %183 : vector<8x384xf32>
    %c3_162 = arith.constant 3 : index
    %c0_163 = arith.constant 0 : index
    %c0_164 = arith.constant 0 : index
    %185 = vector.load %arg10[%c3_162, %c0_163, %c0_164] : memref<9x8x32xf32, #tpu.memory_space<vmem>>, vector<1x8x32xf32>
    %186 = vector.shape_cast %185 : vector<1x8x32xf32> to vector<8x32xf32>
    %cst_165 = arith.constant dense<0.000000e+00> : vector<8x384xf32>
    %187 = tpu.matmul %186, %170, %cst_165 {dimension_numbers = #tpu.dot_dimension_numbers<[1], [0], [0], [1], [0, 0, 1, 1], [], []>} : vector<8x32xf32>, vector<32x384xf32>, vector<8x384xf32> -> vector<8x384xf32>
    %c1_i32_166 = arith.constant 1 : i32
    %188 = tpu.dynamic_rotate %187 by %c1_i32_166 dim 1 : vector<8x384xf32>, i32 -> vector<8x384xf32>
    %189 = arith.addf %184, %188 : vector<8x384xf32>
    %c4_167 = arith.constant 4 : index
    %c0_168 = arith.constant 0 : index
    %c0_169 = arith.constant 0 : index
    %190 = vector.load %arg10[%c4_167, %c0_168, %c0_169] : memref<9x8x32xf32, #tpu.memory_space<vmem>>, vector<1x8x32xf32>
    %191 = vector.shape_cast %190 : vector<1x8x32xf32> to vector<8x32xf32>
    %cst_170 = arith.constant dense<0.000000e+00> : vector<8x384xf32>
    %192 = tpu.matmul %191, %170, %cst_170 {dimension_numbers = #tpu.dot_dimension_numbers<[1], [0], [0], [1], [0, 0, 1, 1], [], []>} : vector<8x32xf32>, vector<32x384xf32>, vector<8x384xf32> -> vector<8x384xf32>
    %193 = arith.addf %189, %192 : vector<8x384xf32>
    %c5_171 = arith.constant 5 : index
    %c0_172 = arith.constant 0 : index
    %c0_173 = arith.constant 0 : index
    %194 = vector.load %arg10[%c5_171, %c0_172, %c0_173] : memref<9x8x32xf32, #tpu.memory_space<vmem>>, vector<1x8x32xf32>
    %195 = vector.shape_cast %194 : vector<1x8x32xf32> to vector<8x32xf32>
    %cst_174 = arith.constant dense<0.000000e+00> : vector<8x384xf32>
    %196 = tpu.matmul %195, %170, %cst_174 {dimension_numbers = #tpu.dot_dimension_numbers<[1], [0], [0], [1], [0, 0, 1, 1], [], []>} : vector<8x32xf32>, vector<32x384xf32>, vector<8x384xf32> -> vector<8x384xf32>
    %c383_i32_175 = arith.constant 383 : i32
    %197 = tpu.dynamic_rotate %196 by %c383_i32_175 dim 1 : vector<8x384xf32>, i32 -> vector<8x384xf32>
    %198 = arith.addf %193, %197 : vector<8x384xf32>
    %c6_176 = arith.constant 6 : index
    %c0_177 = arith.constant 0 : index
    %c0_178 = arith.constant 0 : index
    %199 = vector.load %arg10[%c6_176, %c0_177, %c0_178] : memref<9x8x32xf32, #tpu.memory_space<vmem>>, vector<1x8x32xf32>
    %200 = vector.shape_cast %199 : vector<1x8x32xf32> to vector<8x32xf32>
    %cst_179 = arith.constant dense<0.000000e+00> : vector<8x384xf32>
    %201 = tpu.matmul %200, %170, %cst_179 {dimension_numbers = #tpu.dot_dimension_numbers<[1], [0], [0], [1], [0, 0, 1, 1], [], []>} : vector<8x32xf32>, vector<32x384xf32>, vector<8x384xf32> -> vector<8x384xf32>
    %c367_i32_180 = arith.constant 367 : i32
    %202 = tpu.dynamic_rotate %201 by %c367_i32_180 dim 1 : vector<8x384xf32>, i32 -> vector<8x384xf32>
    %203 = arith.addf %198, %202 : vector<8x384xf32>
    %c7_181 = arith.constant 7 : index
    %c0_182 = arith.constant 0 : index
    %c0_183 = arith.constant 0 : index
    %204 = vector.load %arg10[%c7_181, %c0_182, %c0_183] : memref<9x8x32xf32, #tpu.memory_space<vmem>>, vector<1x8x32xf32>
    %205 = vector.shape_cast %204 : vector<1x8x32xf32> to vector<8x32xf32>
    %cst_184 = arith.constant dense<0.000000e+00> : vector<8x384xf32>
    %206 = tpu.matmul %205, %170, %cst_184 {dimension_numbers = #tpu.dot_dimension_numbers<[1], [0], [0], [1], [0, 0, 1, 1], [], []>} : vector<8x32xf32>, vector<32x384xf32>, vector<8x384xf32> -> vector<8x384xf32>
    %c366_i32_185 = arith.constant 366 : i32
    %207 = tpu.dynamic_rotate %206 by %c366_i32_185 dim 1 : vector<8x384xf32>, i32 -> vector<8x384xf32>
    %208 = arith.addf %203, %207 : vector<8x384xf32>
    %c8_186 = arith.constant 8 : index
    %c0_187 = arith.constant 0 : index
    %c0_188 = arith.constant 0 : index
    %209 = vector.load %arg10[%c8_186, %c0_187, %c0_188] : memref<9x8x32xf32, #tpu.memory_space<vmem>>, vector<1x8x32xf32>
    %210 = vector.shape_cast %209 : vector<1x8x32xf32> to vector<8x32xf32>
    %cst_189 = arith.constant dense<0.000000e+00> : vector<8x384xf32>
    %211 = tpu.matmul %210, %170, %cst_189 {dimension_numbers = #tpu.dot_dimension_numbers<[1], [0], [0], [1], [0, 0, 1, 1], [], []>} : vector<8x32xf32>, vector<32x384xf32>, vector<8x384xf32> -> vector<8x384xf32>
    %c365_i32_190 = arith.constant 365 : i32
    %212 = tpu.dynamic_rotate %211 by %c365_i32_190 dim 1 : vector<8x384xf32>, i32 -> vector<8x384xf32>
    %213 = arith.addf %208, %212 : vector<8x384xf32>
    %c0_191 = arith.constant 0 : index
    %c0_192 = arith.constant 0 : index
    %214 = vector.load %arg11[%c0_191, %c0_192] : memref<8x1xf32, #tpu.memory_space<vmem>>, vector<8x1xf32>
    %215 = vector.broadcast %214 : vector<8x1xf32> to vector<8x384xf32>
    %216 = arith.addf %213, %215 : vector<8x384xf32>
    %cst_193 = arith.constant 0.000000e+00 : f32
    %217 = vector.broadcast %cst_193 : f32 to vector<8x384xf32>
    %218 = arith.cmpf oge, %216, %217 : vector<8x384xf32>
    %cst_194 = arith.constant 2.000000e-01 : f32
    %219 = vector.broadcast %cst_194 : f32 to vector<8x384xf32>
    %220 = arith.mulf %219, %216 : vector<8x384xf32>
    %221 = arith.select %218, %216, %220 : vector<8x384xi1>, vector<8x384xf32>
    %222 = vector.broadcast %3 : vector<1x384xf32> to vector<8x384xf32>
    %223 = arith.mulf %221, %222 : vector<8x384xf32>
    %c32 = arith.constant 32 : index
    %c0_195 = arith.constant 0 : index
    %224 = vector.load %arg15[%c32, %c0_195] : memref<40x384xf32, #tpu.memory_space<vmem>>, vector<8x384xf32>
    tpu.vector_store %arg15[%c32, %c0_195], %223 {strides = array<i32>} : memref<40x384xf32, #tpu.memory_space<vmem>>, vector<8x384xf32>,
    %c0_196 = arith.constant 0 : index
    %c0_197 = arith.constant 0 : index
    %225 = vector.load %arg15[%c0_196, %c0_197] : memref<40x384xf32, #tpu.memory_space<vmem>>, vector<40x384xf32>
    %c0_198 = arith.constant 0 : index
    %c0_199 = arith.constant 0 : index
    %c0_200 = arith.constant 0 : index
    %226 = vector.load %arg12[%c0_198, %c0_199, %c0_200] : memref<9x8x40xf32, #tpu.memory_space<vmem>>, vector<1x8x40xf32>
    %227 = vector.shape_cast %226 : vector<1x8x40xf32> to vector<8x40xf32>
    %cst_201 = arith.constant dense<0.000000e+00> : vector<8x384xf32>
    %228 = tpu.matmul %227, %225, %cst_201 {dimension_numbers = #tpu.dot_dimension_numbers<[1], [0], [0], [1], [0, 0, 1, 1], [], []>} : vector<8x40xf32>, vector<40x384xf32>, vector<8x384xf32> -> vector<8x384xf32>
    %c19_i32_202 = arith.constant 19 : i32
    %229 = tpu.dynamic_rotate %228 by %c19_i32_202 dim 1 : vector<8x384xf32>, i32 -> vector<8x384xf32>
    %c1_203 = arith.constant 1 : index
    %c0_204 = arith.constant 0 : index
    %c0_205 = arith.constant 0 : index
    %230 = vector.load %arg12[%c1_203, %c0_204, %c0_205] : memref<9x8x40xf32, #tpu.memory_space<vmem>>, vector<1x8x40xf32>
    %231 = vector.shape_cast %230 : vector<1x8x40xf32> to vector<8x40xf32>
    %cst_206 = arith.constant dense<0.000000e+00> : vector<8x384xf32>
    %232 = tpu.matmul %231, %225, %cst_206 {dimension_numbers = #tpu.dot_dimension_numbers<[1], [0], [0], [1], [0, 0, 1, 1], [], []>} : vector<8x40xf32>, vector<40x384xf32>, vector<8x384xf32> -> vector<8x384xf32>
    %c18_i32_207 = arith.constant 18 : i32
    %233 = tpu.dynamic_rotate %232 by %c18_i32_207 dim 1 : vector<8x384xf32>, i32 -> vector<8x384xf32>
    %234 = arith.addf %229, %233 : vector<8x384xf32>
    %c2_208 = arith.constant 2 : index
    %c0_209 = arith.constant 0 : index
    %c0_210 = arith.constant 0 : index
    %235 = vector.load %arg12[%c2_208, %c0_209, %c0_210] : memref<9x8x40xf32, #tpu.memory_space<vmem>>, vector<1x8x40xf32>
    %236 = vector.shape_cast %235 : vector<1x8x40xf32> to vector<8x40xf32>
    %cst_211 = arith.constant dense<0.000000e+00> : vector<8x384xf32>
    %237 = tpu.matmul %236, %225, %cst_211 {dimension_numbers = #tpu.dot_dimension_numbers<[1], [0], [0], [1], [0, 0, 1, 1], [], []>} : vector<8x40xf32>, vector<40x384xf32>, vector<8x384xf32> -> vector<8x384xf32>
    %c17_i32_212 = arith.constant 17 : i32
    %238 = tpu.dynamic_rotate %237 by %c17_i32_212 dim 1 : vector<8x384xf32>, i32 -> vector<8x384xf32>
    %239 = arith.addf %234, %238 : vector<8x384xf32>
    %c3_213 = arith.constant 3 : index
    %c0_214 = arith.constant 0 : index
    %c0_215 = arith.constant 0 : index
    %240 = vector.load %arg12[%c3_213, %c0_214, %c0_215] : memref<9x8x40xf32, #tpu.memory_space<vmem>>, vector<1x8x40xf32>
    %241 = vector.shape_cast %240 : vector<1x8x40xf32> to vector<8x40xf32>
    %cst_216 = arith.constant dense<0.000000e+00> : vector<8x384xf32>
    %242 = tpu.matmul %241, %225, %cst_216 {dimension_numbers = #tpu.dot_dimension_numbers<[1], [0], [0], [1], [0, 0, 1, 1], [], []>} : vector<8x40xf32>, vector<40x384xf32>, vector<8x384xf32> -> vector<8x384xf32>
    %c1_i32_217 = arith.constant 1 : i32
    %243 = tpu.dynamic_rotate %242 by %c1_i32_217 dim 1 : vector<8x384xf32>, i32 -> vector<8x384xf32>
    %244 = arith.addf %239, %243 : vector<8x384xf32>
    %c4_218 = arith.constant 4 : index
    %c0_219 = arith.constant 0 : index
    %c0_220 = arith.constant 0 : index
    %245 = vector.load %arg12[%c4_218, %c0_219, %c0_220] : memref<9x8x40xf32, #tpu.memory_space<vmem>>, vector<1x8x40xf32>
    %246 = vector.shape_cast %245 : vector<1x8x40xf32> to vector<8x40xf32>
    %cst_221 = arith.constant dense<0.000000e+00> : vector<8x384xf32>
    %247 = tpu.matmul %246, %225, %cst_221 {dimension_numbers = #tpu.dot_dimension_numbers<[1], [0], [0], [1], [0, 0, 1, 1], [], []>} : vector<8x40xf32>, vector<40x384xf32>, vector<8x384xf32> -> vector<8x384xf32>
    %248 = arith.addf %244, %247 : vector<8x384xf32>
    %c5_222 = arith.constant 5 : index
    %c0_223 = arith.constant 0 : index
    %c0_224 = arith.constant 0 : index
    %249 = vector.load %arg12[%c5_222, %c0_223, %c0_224] : memref<9x8x40xf32, #tpu.memory_space<vmem>>, vector<1x8x40xf32>
    %250 = vector.shape_cast %249 : vector<1x8x40xf32> to vector<8x40xf32>
    %cst_225 = arith.constant dense<0.000000e+00> : vector<8x384xf32>
    %251 = tpu.matmul %250, %225, %cst_225 {dimension_numbers = #tpu.dot_dimension_numbers<[1], [0], [0], [1], [0, 0, 1, 1], [], []>} : vector<8x40xf32>, vector<40x384xf32>, vector<8x384xf32> -> vector<8x384xf32>
    %c383_i32_226 = arith.constant 383 : i32
    %252 = tpu.dynamic_rotate %251 by %c383_i32_226 dim 1 : vector<8x384xf32>, i32 -> vector<8x384xf32>
    %253 = arith.addf %248, %252 : vector<8x384xf32>
    %c6_227 = arith.constant 6 : index
    %c0_228 = arith.constant 0 : index
    %c0_229 = arith.constant 0 : index
    %254 = vector.load %arg12[%c6_227, %c0_228, %c0_229] : memref<9x8x40xf32, #tpu.memory_space<vmem>>, vector<1x8x40xf32>
    %255 = vector.shape_cast %254 : vector<1x8x40xf32> to vector<8x40xf32>
    %cst_230 = arith.constant dense<0.000000e+00> : vector<8x384xf32>
    %256 = tpu.matmul %255, %225, %cst_230 {dimension_numbers = #tpu.dot_dimension_numbers<[1], [0], [0], [1], [0, 0, 1, 1], [], []>} : vector<8x40xf32>, vector<40x384xf32>, vector<8x384xf32> -> vector<8x384xf32>
    %c367_i32_231 = arith.constant 367 : i32
    %257 = tpu.dynamic_rotate %256 by %c367_i32_231 dim 1 : vector<8x384xf32>, i32 -> vector<8x384xf32>
    %258 = arith.addf %253, %257 : vector<8x384xf32>
    %c7_232 = arith.constant 7 : index
    %c0_233 = arith.constant 0 : index
    %c0_234 = arith.constant 0 : index
    %259 = vector.load %arg12[%c7_232, %c0_233, %c0_234] : memref<9x8x40xf32, #tpu.memory_space<vmem>>, vector<1x8x40xf32>
    %260 = vector.shape_cast %259 : vector<1x8x40xf32> to vector<8x40xf32>
    %cst_235 = arith.constant dense<0.000000e+00> : vector<8x384xf32>
    %261 = tpu.matmul %260, %225, %cst_235 {dimension_numbers = #tpu.dot_dimension_numbers<[1], [0], [0], [1], [0, 0, 1, 1], [], []>} : vector<8x40xf32>, vector<40x384xf32>, vector<8x384xf32> -> vector<8x384xf32>
    %c366_i32_236 = arith.constant 366 : i32
    %262 = tpu.dynamic_rotate %261 by %c366_i32_236 dim 1 : vector<8x384xf32>, i32 -> vector<8x384xf32>
    %263 = arith.addf %258, %262 : vector<8x384xf32>
    %c8_237 = arith.constant 8 : index
    %c0_238 = arith.constant 0 : index
    %c0_239 = arith.constant 0 : index
    %264 = vector.load %arg12[%c8_237, %c0_238, %c0_239] : memref<9x8x40xf32, #tpu.memory_space<vmem>>, vector<1x8x40xf32>
    %265 = vector.shape_cast %264 : vector<1x8x40xf32> to vector<8x40xf32>
    %cst_240 = arith.constant dense<0.000000e+00> : vector<8x384xf32>
    %266 = tpu.matmul %265, %225, %cst_240 {dimension_numbers = #tpu.dot_dimension_numbers<[1], [0], [0], [1], [0, 0, 1, 1], [], []>} : vector<8x40xf32>, vector<40x384xf32>, vector<8x384xf32> -> vector<8x384xf32>
    %c365_i32_241 = arith.constant 365 : i32
    %267 = tpu.dynamic_rotate %266 by %c365_i32_241 dim 1 : vector<8x384xf32>, i32 -> vector<8x384xf32>
    %268 = arith.addf %263, %267 : vector<8x384xf32>
    %c0_242 = arith.constant 0 : index
    %c0_243 = arith.constant 0 : index
    %269 = vector.load %arg13[%c0_242, %c0_243] : memref<8x1xf32, #tpu.memory_space<vmem>>, vector<8x1xf32>
    %270 = vector.broadcast %269 : vector<8x1xf32> to vector<8x384xf32>
    %271 = arith.addf %268, %270 : vector<8x384xf32>
    %cst_244 = arith.constant 2.000000e-01 : f32
    %272 = vector.broadcast %cst_244 : f32 to vector<8x384xf32>
    %273 = arith.mulf %271, %272 : vector<8x384xf32>
    %274 = arith.addf %273, %1 : vector<8x384xf32>
    %c0_245 = arith.constant 0 : index
    %c0_246 = arith.constant 0 : index
    %c0_247 = arith.constant 0 : index
    %c0_248 = arith.constant 0 : index
    %275 = vector.load %arg14[%c0_245, %c0_246, %c0_247, %c0_248] : memref<1x1x8x384xf32, #tpu.memory_space<vmem>>, vector<1x1x8x384xf32>
    %276 = vector.shape_cast %275 : vector<1x1x8x384xf32> to vector<8x384xf32>
    %277 = vector.shape_cast %274 : vector<8x384xf32> to vector<1x1x8x384xf32>
    tpu.vector_store %arg14[%c0_245, %c0_246, %c0_247, %c0_248], %277 {strides = array<i32>} : memref<1x1x8x384xf32, #tpu.memory_space<vmem>>, vector<1x1x8x384xf32>,
    return
  }
  func.func @transform_0(%arg0: i32, %arg1: i32) -> (i32, i32, i32, i32) {
    %c0_i32 = arith.constant 0 : i32
    %c0_i32_0 = arith.constant 0 : i32
    %c0_i32_1 = arith.constant 0 : i32
    return %arg0, %arg1, %c0_i32, %c0_i32_0 : i32, i32, i32, i32
  }
  func.func @transform_1(%arg0: i32, %arg1: i32) -> (i32, i32, i32) {
    %c0_i32 = arith.constant 0 : i32
    %c0_i32_0 = arith.constant 0 : i32
    %c0_i32_1 = arith.constant 0 : i32
    return %arg1, %c0_i32, %c0_i32_0 : i32, i32, i32
  }
  func.func @transform_2(%arg0: i32, %arg1: i32) -> (i32, i32, i32) {
    %c0_i32 = arith.constant 0 : i32
    %c0_i32_0 = arith.constant 0 : i32
    %c0_i32_1 = arith.constant 0 : i32
    %c0_i32_2 = arith.constant 0 : i32
    return %c0_i32, %c0_i32_0, %c0_i32_1 : i32, i32, i32
  }
  func.func @transform_3(%arg0: i32, %arg1: i32) -> (i32, i32) {
    %c0_i32 = arith.constant 0 : i32
    %c0_i32_0 = arith.constant 0 : i32
    %c0_i32_1 = arith.constant 0 : i32
    return %c0_i32, %c0_i32_0 : i32, i32
  }
  func.func @transform_4(%arg0: i32, %arg1: i32) -> (i32, i32, i32) {
    %c0_i32 = arith.constant 0 : i32
    %c0_i32_0 = arith.constant 0 : i32
    %c0_i32_1 = arith.constant 0 : i32
    %c0_i32_2 = arith.constant 0 : i32
    return %c0_i32, %c0_i32_0, %c0_i32_1 : i32, i32, i32
  }
  func.func @transform_5(%arg0: i32, %arg1: i32) -> (i32, i32) {
    %c0_i32 = arith.constant 0 : i32
    %c0_i32_0 = arith.constant 0 : i32
    %c0_i32_1 = arith.constant 0 : i32
    return %c0_i32, %c0_i32_0 : i32, i32
  }
  func.func @transform_6(%arg0: i32, %arg1: i32) -> (i32, i32, i32) {
    %c0_i32 = arith.constant 0 : i32
    %c0_i32_0 = arith.constant 0 : i32
    %c0_i32_1 = arith.constant 0 : i32
    %c0_i32_2 = arith.constant 0 : i32
    return %c0_i32, %c0_i32_0, %c0_i32_1 : i32, i32, i32
  }
  func.func @transform_7(%arg0: i32, %arg1: i32) -> (i32, i32) {
    %c0_i32 = arith.constant 0 : i32
    %c0_i32_0 = arith.constant 0 : i32
    %c0_i32_1 = arith.constant 0 : i32
    return %c0_i32, %c0_i32_0 : i32, i32
  }
  func.func @transform_8(%arg0: i32, %arg1: i32) -> (i32, i32, i32) {
    %c0_i32 = arith.constant 0 : i32
    %c0_i32_0 = arith.constant 0 : i32
    %c0_i32_1 = arith.constant 0 : i32
    %c0_i32_2 = arith.constant 0 : i32
    return %c0_i32, %c0_i32_0, %c0_i32_1 : i32, i32, i32
  }
  func.func @transform_9(%arg0: i32, %arg1: i32) -> (i32, i32) {
    %c0_i32 = arith.constant 0 : i32
    %c0_i32_0 = arith.constant 0 : i32
    %c0_i32_1 = arith.constant 0 : i32
    return %c0_i32, %c0_i32_0 : i32, i32
  }
  func.func @transform_10(%arg0: i32, %arg1: i32) -> (i32, i32, i32) {
    %c0_i32 = arith.constant 0 : i32
    %c0_i32_0 = arith.constant 0 : i32
    %c0_i32_1 = arith.constant 0 : i32
    %c0_i32_2 = arith.constant 0 : i32
    return %c0_i32, %c0_i32_0, %c0_i32_1 : i32, i32, i32
  }
  func.func @transform_11(%arg0: i32, %arg1: i32) -> (i32, i32) {
    %c0_i32 = arith.constant 0 : i32
    %c0_i32_0 = arith.constant 0 : i32
    %c0_i32_1 = arith.constant 0 : i32
    return %c0_i32, %c0_i32_0 : i32, i32
  }
  func.func @transform_12(%arg0: i32, %arg1: i32) -> (i32, i32, i32, i32) {
    %c0_i32 = arith.constant 0 : i32
    %c0_i32_0 = arith.constant 0 : i32
    %c0_i32_1 = arith.constant 0 : i32
    return %arg0, %arg1, %c0_i32, %c0_i32_0 : i32, i32, i32, i32
  }
}

</mosaic_0001>

<bundles_post_ra>
// kernel: tpu_custom_call.1
= control target key start
LH: loop header
LB: loop body
LE: loop exit
PB: predicated region body
PF: predicated region fallthrough
CT: control target
= control target key end

     0   :  { %s6041_s0 = inlined_call_operand.hbm [shape: f32[2,1,8,384], index: 0, kind: input, shape index: {}]   ;;  %s6042_s1 = inlined_call_operand.vmem [shape: f32[1,1,384], index: 1, kind: input, shape index: {}]   ;;  %s6043_s2 = inlined_call_operand.vmem [shape: f32[9,8,8], index: 2, kind: input, shape index: {}]   ;;  %s6044_s3 = inlined_call_operand.vmem [shape: f32[8,1], index: 3, kind: input, shape index: {}]   ;;  %s6045_s4 = inlined_call_operand.vmem [shape: f32[9,8,16], index: 4, kind: input, shape index: {}]   ;;  %s6046_s5 = inlined_call_operand.vmem [shape: f32[8,1], index: 5, kind: input, shape index: {}]   ;;  %s6047_s6 = inlined_call_operand.vmem [shape: f32[9,8,24], index: 6, kind: input, shape index: {}]   ;;  %s6048_s7 = inlined_call_operand.vmem [shape: f32[8,1], index: 7, kind: input, shape index: {}]   ;;  %s6049_s8 = inlined_call_operand.hbm [shape: f32[9,8,32], index: 8, kind: input, shape index: {}]   ;;  %s6050_s9 = inlined_call_operand.vmem [shape: f32[8,1], index: 9, kind: input, shape index: {}]   ;;  %s6051_s10 = inlined_call_operand.hbm [shape: f32[9,8,40], index: 10, kind: input, shape index: {}]   ;;  %s6052_s11 = inlined_call_operand.vmem [shape: f32[8,1], index: 11, kind: input, shape index: {}]   ;;  %s6053_s12 = inlined_call_operand.hbm [shape: f32[2,1,8,384], index: 12, kind: output, shape index: {}]  }
   0x1   :  { %6061 = sst [smem:[#allocation17_spill]] %s6049_s8 }
   0x2   :  { %6062 = sst [smem:[#allocation18_spill]] %s6051_s10 }
   0x3   :  { %6063 = sst [smem:[#allocation19_spill]] %s6053_s12 }
   0x4   :  { %17 = vsyncpa [#allocation4], 0 }
   0x5   :  { %19 = vsyncpa [#allocation4 + $0x1], 0 }
   0x6   :  { %20 = vsyncpa [#allocation7], 0 }
   0x7   :  { %21 = vsyncpa [#allocation5], 0 }
   0x8   :  { %23 = vsyncpa [#allocation5 + $0x1], 0  ;;  %s4761_s21 = smov 0   ;;  %s4763_s22 = smov 0  }
   0x9   :  { %s4765_s23 = smov 0   ;;  %s4767_s24 = smov 0  }
   0xa   :  { %s4769_s25 = smov 0   ;;  %s4771_s26 = smov 0  }
   0xb LB: > { %6064 = sst [smem:[#allocation13_spill]] %s4661_s21  ;;  %s6054_s27 = sadd.s32 4294967295, %s4681_s26   ;;  %s4681_s26 = sphi %s4771_s26, %s29_s26   ;;  %s4677_s25 = sphi %s4769_s25, %s6081_s25   ;;  %s4673_s24 = sphi %s4767_s24, %s6080_s24   ;;  %s4669_s23 = sphi %s4765_s23, %s6084_s23   ;;  %s4665_s22 = sphi %s4763_s22, %s6083_s22   ;;  %s4661_s21 = sphi %s4761_s21, %s6082_s21  }
   0xc   : > { %6065 = sst [smem:[#allocation14_spill]] %s4677_s25  ;;  %p4227_p0 = scmp.ge.s32.totalorder %s4681_s26, 1 }
   0xd   : > { %p4795_p1 = scmp.eq.s32.totalorder %s6054_s27, 0  ;;  %p338_p2 = scmp.lt.s32.totalorder %s4681_s26, 3 }
   0xe   : > { %s6067_s8 = sld [smem:[#allocation17_spill]]  ;;  %s4683_s15 = smov [#allocation6]  }
   0xf   : > { %p4803_p3 = pnand %p4227_p0, %p338_p2  ;;  %s376_s16 = sshll.u32 %s4683_s15, 4  ;;  %s377_s16 = int_to_ptr.vmem [resolvable:$true] %s376_s16 }
  0x10   : > { %p4231_p6 = scmp.ge.s32.totalorder %s4681_s26, 2  ;;  %s6069_s10 = sld [smem:[#allocation18_spill]] }
  0x11   : > { %p4414_p4 = pneg %p4803_p3  ;;  %s4684_s20 = smov 128  }
  0x12   : > { %s4685_s29 = smov 8   ;;  %s4686_s30 = smov [#allocation8]  }
  0x13   : > { %p4415_p5 = pnand %p4414_p4, %p4795_p1  ;;  %s393_s15 = sshll.u32 %s4686_s30, 4  ;;  %s394_s15 = int_to_ptr.vmem [resolvable:$true] %s393_s15 }
  0x14   : > { %s374_s13 = sshll.u32 %s6067_s8, 4  ;;  %s4226_s27 = sadd.s32 4294967294, %s4681_s26   ;;  %s375_s13 = int_to_ptr.hbm [resolvable:$true] %s374_s13 }
  0x15   : > { %4417 = dma.hbm_to_vmem [thread:$0]  (!%p4415_p5), %s375_s13, 1152, %s377_s16, [#allocation7], %s4684_s20, %s4684_s20, %s4685_s29  }
  0x16   : > { %s391_s19 = sshll.u32 %s6069_s10, 4  ;;  %s41_s8 = sadd.s32 1, %s4677_s25  ;;  %s392_s19 = int_to_ptr.hbm [resolvable:$true] %s391_s19 }
  0x17   : > { %4420 = dma.hbm_to_vmem [thread:$0]  (!%p4415_p5), %s392_s19, 1152, %s394_s15, [#allocation7], %s4684_s20, %s4684_s20, %s4685_s29  }
  0x18   : > { %p43_p7 = scmp.ge.s32.totalorder %s41_s8, 2  ;;  %s50_s17 = sadd.s32 1, %s4669_s23 }
  0x19   : > { %p57_p8 = scmp.ne.s32.totalorder %s4669_s23, %s4665_s22  ;;  %p58_p9 = scmp.eq.s32.totalorder %s4681_s26, 0 }
  0x1a   : > { %s6086_s8 = smov (%p43_p7, %s41_s8), 0  ;;  %p63_p11 = scmp.ne.s32.totalorder %s4665_s22, %s4661_s21 }
  0x1b   : > { %6070 = sst [smem:[#allocation15_spill]] %s6086_s8  ;;  %p4823_p10 = por %p58_p9, %p57_p8 }
  0x1c   : > { %s45_s16 = ssub.s32 %s4677_s25, %s6086_s8  ;;  %s6072_s18 = sadd.s32 4294967295, %s4681_s26  }
  0x1d   : > { %p325_p12 = scmp.eq.s32.totalorder %s6072_s18, 1  ;;  %p48_p13 = scmp.eq.s32.totalorder %s45_s16, 0 }
  0x1e   : > { %p4835_p0 = por %p4795_p1, %p63_p11  ;;  %p331_p4 = scmp.eq.s32.totalorder %s4226_s27, 1 }
  0x1f   : > { %p4839_p2 = por %p325_p12, %p57_p8  ;;  %p4431_p7 = scmp.lt.s32.totalorder %s4681_s26, 2 }
  0x20   : > { %s4844_s29 = scalar_select %p48_p13, %s4669_s23, %s50_s17  }
  0x21   : > { %s6074_s20 = scalar_select %p4839_p2, 1, 0 }
  0x22   : > { %p4846_p5 = por %p331_p4, %p63_p11  ;;  %s410_s15 = sand.u32 1, %s4669_s23  }
  0x23   : > { %6075 = sst [smem:[#allocation16_spill]] %s6074_s20  ;;  %s4399_s18 = smul.u32 24, %s4677_s25 }
  0x24   : > { %s4398_s16 = smul.u32 24, %s410_s15  ;;  %p4422_p8 = pnand %p4431_p7, %p4823_p10 }
  0x25   : > { %s421_s21 = scalar_lea.hbm %s6041_s0, %s4399_s18  ;;  %s411_s17 = scalar_lea.sflag [#allocation4], %s410_s15 }
  0x26   : > { %s423_s12 = sshll.u32 %s421_s21, 4  ;;  %s414_s20 = scalar_lea.vmem [#allocation3], %s4398_s16  ;;  %s424_s12 = int_to_ptr.hbm [resolvable:$true] %s423_s12 }
  0x27   : > { %s425_s27 = sshll.u32 %s414_s20, 4  ;;  %434 = sbr.rel (%p4803_p3) target bundleno = 1689 (0x699), region = 68  ;;  %s426_s27 = int_to_ptr.vmem [resolvable:$true] %s425_s27 }
  0x28   : > { %4424 = dma.hbm_to_vmem [thread:$0]  (!%p4422_p8), %s424_s12, 384, %s426_s27, %s411_s17  }
  0x29   : > { %s4861_s25 = sand.u32 (!%p4803_p3), 1, %s4665_s22  }
  0x2a   : > { %s4400_s8 = smul.u32 (!%p4803_p3), 24, %s4861_s25  ;;  %s437_s10 = scalar_lea.sflag (!%p4803_p3), [#allocation4], %s4861_s25 }
  0x2c   : > { %s4867_s21 = scalar_lea.vmem [#allocation3], %s4400_s8 }
  0x2d   : > { %4648 = dma.done.wait (%p4835_p0), %s437_s10, 384  }
  0x2e   : > { %4650 = vsyncadd (%p4835_p0), %s437_s10, 4294966912 }
  0x2f   : > { %4652 = dma.done.wait (%p4795_p1), [#allocation7], 2304  }
  0x30   : > { %4654 = vsyncadd (%p4795_p1), [#allocation7], 4294964992  ;;  %vm511_vm0 = vcmask 64512   ;;  %v4878_v0 = vld [vmem:[%s4867_s21] sm:$0xff]  ;;  %v4881_v1 = vld [vmem:[%s4867_s21 + $0x8] sm:$0xff]  ;;  %s4687_s15 = smov 18   ;;  %v581_v53 = vlaneseq }
  0x31   : > { %v510_v2 = vld [vmem:[%s6043_s2] sm:$0xff]  ;;  %530 = vmatpush.msra.mxu3 %v4878_v0  ;;  %550 = vmatpush.msra.mxu1 %v4881_v1  ;;  %v4239_v3 = vld [vmem:[%s6043_s2 + $0x8] sm:$0xff]  ;;  %v4243_v5 = vld [vmem:[%s6043_s2 + $0x10] sm:$0xff]  ;;  %s4688_s18 = smov 19   ;;  %s4689_s16 = smov 17   ;;  %v4691_v27 = vmov 0  }
  0x32   : > { %v4892_v4 = vld [vmem:[%s4867_s21 + $0x10] sm:$0xff]  ;;  %627 = vmatpush.msra.mxu0 %v4881_v1  ;;  %4236 = vmatmul.msk.f32.vlgmr.msra.gmra.mxu3 %vm511_vm0, %v510_v2  ;;  %v4247_v6 = vld [vmem:[%s6043_s2 + $0x18] sm:$0xff]  ;;  %v4251_v7 = vld [vmem:[%s6043_s2 + $0x20] sm:$0xff]  ;;  %s4690_s27 = smov 1   ;;  %s4692_s17 = smov 127   ;;  %v5000_v56 = vand.u32 127, %v581_v53 }
  0x33   : > { %4237 = vmatmul.msk.f32.vlgmr.msra.gmra.mxu1 %vm511_vm0, %v510_v2  ;;  %4241 = vmatmul.msk.f32.vlgmr.msra.gmra.mxu0 %vm511_vm0, %v4239_v3  ;;  %v4255_v8 = vld [vmem:[%s6043_s2 + $0x28] sm:$0xff]  ;;  %v4259_v9 = vld [vmem:[%s6043_s2 + $0x30] sm:$0xff]  ;;  %v4263_v10 = vld [vmem:[%s6043_s2 + $0x38] sm:$0xff]  ;;  %s4693_s10 = smov 111   ;;  %s4694_s12 = smov 110   ;;  %vm1239_vm12 = vcmask 130048  }
  0x34   : > { %570 = vmatpush.msra.mxu2 %v4892_v4  ;;  %647 = vmatpush.msrb.mxu1 %v4892_v4  ;;  %v4267_v11 = vld [vmem:[%s6043_s2 + $0x40] sm:$0xff]  ;;  %s4695_s14 = smov 109   ;;  %vm658_vm1 = vcmp.lt.s32.totalorder %v5000_v56, 18  ;;  %vm583_vm2 = vcmp.lt.s32.totalorder %v5000_v56, 19  ;;  %vm736_vm3 = vcmp.lt.s32.totalorder %v5000_v56, 17  ;;  %vm814_vm4 = vcmp.lt.s32.totalorder %v5000_v56, 1 }
  0x35   : > { %4238 = vmatmul.msk.f32.vlgmr.msra.gmra.mxu2 %vm511_vm0, %v510_v2  ;;  %607 = vmatpush.msrb.mxu3 %v4878_v0  ;;  %v1201_v39 = vld [vmem:[%s6044_s3] sm:$0xff]  ;;  %vm960_vm5 = vcmp.lt.s32.totalorder %v5000_v56, 127  ;;  %vm1038_vm6 = vcmp.lt.s32.totalorder %v5000_v56, 111  ;;  %vm1194_vm7 = vcmp.lt.s32.totalorder %v5000_v56, 109  ;;  %vm1116_vm8 = vcmp.lt.s32.totalorder %v5000_v56, 110  ;;  %s4089_s20 = scalar_lea.sflag [#allocation5], %s4861_s25 }
  0x36   : > { %725 = vmatpush.msrb.mxu0 %v4892_v4  ;;  %685 = vmatpush.msrb.mxu2 %v4878_v0  ;;  %vm1953_vm14 = vcmask 195584  }
  0x37   : > { %705 = vmatpush.msra.mxu3 %v4881_v1  ;;  %763 = vmatpush.msra.mxu1 %v4878_v0 }
  0x38   : > { %783 = vmatpush.msra.mxu2 %v4881_v1  ;;  %841 = vmatpush.msra.mxu0 %v4878_v0 }
  0x39   : > { %4496 = vset.pattern.permute.xlu1 %v4691_v27  ;;  %4497 = vset.pattern.permute.xlu2 %v4691_v27 }
  0x3a   : > { %4240 = vmatmul.msk.f32.vlgmr.msrb.gmra.mxu3 %vm511_vm0, %v4239_v3  ;;  %4498 = vset.pattern.permute.xlu0 %v4691_v27 }
  0x3b   : > { %4242 = vmatmul.msk.f32.vlgmr.msrb.gmra.mxu1 %vm511_vm0, %v4239_v3  ;;  %4246 = vmatmul.msk.f32.vlgmr.msrb.gmra.mxu0 %vm511_vm0, %v4243_v5 }
  0x3c   : > { %803 = vmatpush.msrb.mxu3 %v4892_v4  ;;  %861 = vmatpush.msrb.mxu1 %v4881_v1 }
  0x3d   : > { %4244 = vmatmul.msk.f32.vlgmr.msrb.gmra.mxu2 %vm511_vm0, %v4243_v5  ;;  %929 = vmatpush.msrb.mxu0 %v4881_v1 }
  0x3e   : > { %881 = vmatpush.msrb.mxu2 %v4892_v4 }
  0x42   : > { %4245 = vmatmul.msk.f32.vlgmr.msra.gmra.mxu3 %vm511_vm0, %v4243_v5 }
  0x43   : > { %4248 = vmatmul.msk.f32.vlgmr.msra.gmra.mxu1 %vm511_vm0, %v4247_v6  ;;  %4252 = vmatmul.msk.f32.vlgmr.msra.gmra.mxu0 %vm511_vm0, %v4251_v7 }
  0x44   : > { %909 = vmatpush.msra.mxu3 %v4878_v0  ;;  %949 = vmatpush.msra.mxu1 %v4892_v4 }
  0x45   : > { %4249 = vmatmul.msk.f32.vlgmr.msra.gmra.mxu2 %vm511_vm0, %v4247_v6  ;;  %1027 = vmatpush.msra.mxu0 %v4892_v4 }
  0x46   : > { %987 = vmatpush.msra.mxu2 %v4878_v0 }
  0x4a   : > { %4250 = vmatmul.msk.f32.vlgmr.msrb.gmra.mxu3 %vm511_vm0, %v4247_v6 }
  0x4b   : > { %4253 = vmatmul.msk.f32.vlgmr.msrb.gmra.mxu1 %vm511_vm0, %v4251_v7  ;;  %4257 = vmatmul.msk.f32.vlgmr.msrb.gmra.mxu0 %vm511_vm0, %v4255_v8 }
  0x4c   : > { %1007 = vmatpush.msrb.mxu3 %v4881_v1  ;;  %1065 = vmatpush.msrb.mxu1 %v4878_v0 }
  0x4d   : > { %4254 = vmatmul.msk.f32.vlgmr.msrb.gmra.mxu2 %vm511_vm0, %v4251_v7  ;;  %1143 = vmatpush.msrb.mxu0 %v4878_v0 }
  0x4e   : > { %1085 = vmatpush.msrb.mxu2 %v4881_v1 }
  0x52   : > { %4256 = vmatmul.msk.f32.vlgmr.msra.gmra.mxu3 %vm511_vm0, %v4255_v8 }
  0x53   : > { %4258 = vmatmul.msk.f32.vlgmr.msra.gmra.mxu1 %vm511_vm0, %v4255_v8  ;;  %4262 = vmatmul.msk.f32.vlgmr.msra.gmra.mxu0 %vm511_vm0, %v4259_v9 }
  0x54   : > { %1163 = vmatpush.msra.mxu1 %v4881_v1  ;;  %1105 = vmatpush.msra.mxu3 %v4892_v4 }
  0x55   : > { %4260 = vmatmul.msk.f32.vlgmr.msra.gmra.mxu2 %vm511_vm0, %v4259_v9 }
  0x56   : > { %1183 = vmatpush.msra.mxu2 %v4892_v4 }
  0x5a   : > { %4261 = vmatmul.msk.f32.vlgmr.msrb.gmra.mxu3 %vm511_vm0, %v4259_v9 }
  0x5b   : > { %4264 = vmatmul.msk.f32.vlgmr.msrb.gmra.mxu1 %vm511_vm0, %v4263_v10  ;;  %4268 = vmatmul.msk.f32.vlgmr.msrb.gmra.mxu0 %vm511_vm0, %v4267_v11 }
  0x5d   : > { %4265 = vmatmul.msk.f32.vlgmr.msrb.gmra.mxu2 %vm511_vm0, %v4263_v10 }
  0x62   : > { %4266 = vmatmul.msk.f32.vlgmr.msra.gmra.mxu3 %vm511_vm0, %v4263_v10 }
  0x63   : > { %4269 = vmatmul.msk.f32.vlgmr.msra.gmra.mxu1 %vm511_vm0, %v4267_v11 }
  0x65   : > { %4270 = vmatmul.msk.f32.vlgmr.msra.gmra.mxu2 %vm511_vm0, %v4267_v11 }
  0xb0   : > { %v552_v12 = vpop.f32.mrf.mxu1  ;;  %v629_v13 = vpop.f32.mrf.mxu0 }
  0xb1   : > { %654 = vrot.lane.b32.xlu0 %v629_v13, %s4687_s15  ;;  %577 = vrot.lane.b32.xlu2 %v552_v12, %s4688_s18 }
  0xb5   : > { %v532_v14 = vpop.f32.mrf.mxu3 }
  0xb8   : > { %v649_v15 = vpop.f32.mrf.mxu1  ;;  %v572_v16 = vpop.f32.mrf.mxu2 }
  0xb9   : > { %656 = vrot.lane.b32.xlu1 %v649_v15, %s4687_s15  ;;  %575 = vrot.lane.b32.xlu0 %v532_v14, %s4688_s18  ;;  %v727_v17 = vpop.f32.mrf.mxu0 }
  0xba   : > { %734 = vrot.lane.b32.xlu2 %v727_v17, %s4689_s16 }
  0xbd   : > { %v609_v18 = vpop.f32.mrf.mxu3 }
  0xc0   : > { %v687_v19 = vpop.f32.mrf.mxu2  ;;  %v765_v20 = vpop.f32.mrf.mxu1 }
  0xc1   : > { %579 = vrot.lane.b32.xlu0 %v572_v16, %s4688_s18  ;;  %652 = vrot.lane.b32.xlu1 %v609_v18, %s4687_s15  ;;  %v4975_v21 = vpop.f32.mrf.mxu0 }
  0xc2   : > { %730 = vrot.lane.b32.xlu2 %v687_v19, %s4689_s16 }
  0xc5   : > { %v707_v22 = vpop.f32.mrf.mxu3 }
  0xc8   : > { %v785_v23 = vpop.f32.mrf.mxu2  ;;  %v4979_v24 = vpop.f32.mrf.mxu1 }
  0xc9   : > { %808 = vrot.lane.b32.xlu0 %v765_v20, %s4690_s27  ;;  %732 = vrot.lane.b32.xlu1 %v707_v22, %s4689_s16  ;;  %v931_v26 = vpop.f32.mrf.mxu0 }
  0xcd   : > { %v805_v25 = vpop.f32.mrf.mxu3 }
  0xd0   : > { %v4981_v28 = vpop.f32.mrf.mxu2  ;;  %v951_v29 = vpop.f32.mrf.mxu1 }
  0xd1   : > { %956 = vrot.lane.b32.xlu0 %v931_v26, %s4692_s17  ;;  %810 = vrot.lane.b32.xlu1 %v785_v23, %s4690_s27  ;;  %v1029_v32 = vpop.f32.mrf.mxu0 }
  0xd5   : > { %v911_v30 = vpop.f32.mrf.mxu3 }
  0xd6   : > { %954 = vrot.lane.b32.xlu2 %v911_v30, %s4692_s17 }
  0xd8   : > { %v989_v31 = vpop.f32.mrf.mxu2  ;;  %v1067_v34 = vpop.f32.mrf.mxu1 }
  0xd9   : > { %958 = vrot.lane.b32.xlu0 %v951_v29, %s4692_s17  ;;  %812 = vrot.lane.b32.xlu1 %v805_v25, %s4690_s27  ;;  %v1145_v36 = vpop.f32.mrf.mxu0 }
  0xdd   : > { %v1009_v33 = vpop.f32.mrf.mxu3 }
  0xde   : > { %1032 = vrot.lane.b32.xlu2 %v989_v31, %s4693_s10 }
  0xe0   : > { %v1087_v35 = vpop.f32.mrf.mxu2  ;;  %v1165_v37 = vpop.f32.mrf.mxu1 }
  0xe1   : > { %1110 = vrot.lane.b32.xlu1 %v1067_v34, %s4694_s12  ;;  %1034 = vrot.lane.b32.xlu0 %v1009_v33, %s4693_s10 }
  0xe5   : > { %v1107_v40 = vpop.f32.mrf.mxu3 }
  0xe6   : > { %1112 = vrot.lane.b32.xlu2 %v1087_v35, %s4694_s12 }
  0xe8   : > { %v1185_v38 = vpop.f32.mrf.mxu2 }
  0xe9   : > { %1188 = vrot.lane.b32.xlu1 %v1145_v36, %s4695_s14  ;;  %1036 = vrot.lane.b32.xlu0 %v1029_v32, %s4693_s10 }
  0xee   : > { %1190 = vrot.lane.b32.xlu2 %v1165_v37, %s4695_s14 }
  0xf1   : > { %1204 = vperm.xlu1 %4496, %v1201_v39   ;;  %1192 = vrot.lane.b32.xlu0 %v1185_v38, %s4695_s14 }
  0xf6   : > { %1114 = vrot.lane.b32.xlu2 %v1107_v40, %s4694_s12 }
 0x10b   : > { %v578_v41 = vpop.permute.xlu2 %577 }
 0x114   : > { %v735_v43 = vpop.permute.xlu2 %734 }
 0x11c   : > { %v731_v46 = vpop.permute.xlu2 %730 }
 0x11d   : > { %v739_v2 = vsel %vm736_vm3, %v735_v43, %v731_v46 }
 0x123   : > { %v655_v42 = vpop.permute.xlu0 %654 }
 0x12b   : > { %v657_v44 = vpop.permute.xlu1 %656  ;;  %v576_v45 = vpop.permute.xlu0 %575 }
 0x12c   : > { %v659_v5 = vsel %vm658_vm1, %v655_v42, %v657_v44  ;;  %v585_v10 = vsel %vm583_vm2, %v576_v45, %v578_v41 }
 0x130   : > { %v955_v49 = vpop.permute.xlu2 %954 }
 0x133   : > { %v580_v47 = vpop.permute.xlu0 %579  ;;  %v653_v48 = vpop.permute.xlu1 %652 }
 0x134   : > { %v586_v57 = vsel %vm583_vm2, %v580_v47, %v576_v45  ;;  %v661_v58 = vsel %vm658_vm1, %v657_v44, %v653_v48  ;;  %v584_v63 = vsel %vm583_vm2, %v578_v41, %v580_v47  ;;  %v660_v6 = vsel %vm658_vm1, %v653_v48, %v655_v42  ;;  %v503_v47 = vld [vmem:[%s6042_s1] sm:$0x7] }
 0x135   : > { %v662_v62 = vadd.f32 %v661_v58, %v586_v57  ;;  %v664_v9 = vadd.f32 %v659_v5, %v584_v63  ;;  %v663_v14 = vadd.f32 %v660_v6, %v585_v10  ;;  %v5066_v63 = vperm.slane %v503_v47, 1 }
 0x137   : > { %v740_v8 = vadd.f32 %v739_v2, %v662_v62  ;;  %v5068_v2 = vperm.slane %v503_v47, 2 }
 0x138   : > { %v1033_v52 = vpop.permute.xlu2 %1032 }
 0x13b   : > { %v809_v50 = vpop.permute.xlu0 %808  ;;  %v733_v51 = vpop.permute.xlu1 %732 }
 0x13c   : > { %v737_v7 = vsel %vm736_vm3, %v733_v51, %v735_v43  ;;  %v738_v11 = vsel %vm736_vm3, %v731_v46, %v733_v51 }
 0x13d   : > { %v742_v15 = vadd.f32 %v737_v7, %v664_v9  ;;  %v741_v19 = vadd.f32 %v738_v11, %v663_v14  ;;  %v4274_v11 = vld [vmem:[%s6045_s4 + $0x8] sm:$0xff]  ;;  %v4282_v14 = vld [vmem:[%s6045_s4 + $0x18] sm:$0xff] }
 0x140   : > { %v1113_v59 = vpop.permute.xlu2 %1112 }
 0x143   : > { %v957_v54 = vpop.permute.xlu0 %956  ;;  %v811_v55 = vpop.permute.xlu1 %810 }
 0x144   : > { %v816_v18 = vsel %vm814_vm4, %v809_v50, %v811_v55  ;;  %v962_v26 = vsel %vm960_vm5, %v955_v49, %v957_v54 }
 0x145   : > { %v819_v25 = vadd.f32 %v816_v18, %v741_v19  ;;  %v4298_v18 = vld [vmem:[%s6045_s4 + $0x38] sm:$0xff]  ;;  %v4302_v19 = vld [vmem:[%s6045_s4 + $0x40] sm:$0xff] }
 0x147   : > { %v887_v32 = vadd.f32 %v4979_v24, %v819_v25 }
 0x148   : > { %v1191_v20 = vpop.permute.xlu2 %1190 }
 0x14b   : > { %v959_v60 = vpop.permute.xlu0 %958  ;;  %v813_v61 = vpop.permute.xlu1 %812 }
 0x14c   : > { %v817_v3 = vsel %vm814_vm4, %v813_v61, %v809_v50  ;;  %v815_v12 = vsel %vm814_vm4, %v811_v55, %v813_v61  ;;  %v961_v30 = vsel %vm960_vm5, %v957_v54, %v959_v60  ;;  %v963_v34 = vsel %vm960_vm5, %v959_v60, %v955_v49 }
 0x14d   : > { %v818_v13 = vadd.f32 %v817_v3, %v740_v8  ;;  %v820_v22 = vadd.f32 %v815_v12, %v742_v15  ;;  %v965_v37 = vadd.f32 %v961_v30, %v887_v32  ;;  %v5064_v55 = vperm.slane %v503_v47, 0  ;;  %v1238_v8 = vld [vmem:[%s6045_s4] sm:$0xff] }
 0x14e   : > { %v4286_v15 = vld [vmem:[%s6045_s4 + $0x20] sm:$0xff] }
 0x14f   : > { %v886_v23 = vadd.f32 %v4975_v21, %v818_v13  ;;  %v888_v27 = vadd.f32 %v4981_v28, %v820_v22  ;;  %v4278_v13 = vld [vmem:[%s6045_s4 + $0x10] sm:$0xff] }
 0x150   : > { %v1115_v39 = vpop.permute.xlu2 %1114 }
 0x151   : > { %v964_v31 = vadd.f32 %v962_v26, %v886_v23  ;;  %v966_v38 = vadd.f32 %v963_v34, %v888_v27  ;;  %v1117_v44 = vsel %vm1116_vm8, %v1113_v59, %v1115_v39 }
 0x153   : > { %v1111_v16 = vpop.permute.xlu1 %1110  ;;  %v1035_v17 = vpop.permute.xlu0 %1034 }
 0x154   : > { %v1040_v29 = vsel %vm1038_vm6, %v1033_v52, %v1035_v17  ;;  %v1118_v24 = vsel %vm1116_vm8, %v1111_v16, %v1113_v59  ;;  %v1119_v45 = vsel %vm1116_vm8, %v1115_v39, %v1111_v16  ;;  %v4290_v16 = vld [vmem:[%s6045_s4 + $0x28] sm:$0xff] }
 0x155   : > { %v1042_v35 = vadd.f32 %v1040_v29, %v964_v31 }
 0x157   : > { %v1120_v43 = vadd.f32 %v1118_v24, %v1042_v35 }
 0x15b   : > { %v1189_v21 = vpop.permute.xlu1 %1188  ;;  %v1037_v33 = vpop.permute.xlu0 %1036 }
 0x15c   : > { %v1039_v28 = vsel %vm1038_vm6, %v1035_v17, %v1037_v33  ;;  %v1041_v36 = vsel %vm1038_vm6, %v1037_v33, %v1033_v52  ;;  %v1196_v40 = vsel %vm1194_vm7, %v1189_v21, %v1191_v20  ;;  %v4294_v17 = vld [vmem:[%s6045_s4 + $0x30] sm:$0xff] }
 0x15d   : > { %v1043_v41 = vadd.f32 %v1039_v28, %v965_v37  ;;  %v1044_v42 = vadd.f32 %v1041_v36, %v966_v38  ;;  %v1198_v46 = vadd.f32 %v1196_v40, %v1120_v43 }
 0x15f   : > { %v1121_v50 = vadd.f32 %v1117_v44, %v1043_v41  ;;  %v1122_v51 = vadd.f32 %v1119_v45, %v1044_v42 }
 0x163   : > { %v1205_v48 = vpop.permute.xlu1 %1204  ;;  %v1193_v49 = vpop.permute.xlu0 %1192 }
 0x164   : > { %v1207_v52 = vadd.f32 %v1205_v48, %v1198_v46  ;;  %v1195_v53 = vsel %vm1194_vm7, %v1191_v20, %v1193_v49  ;;  %v1197_v54 = vsel %vm1194_vm7, %v1193_v49, %v1189_v21  ;;  %v1919_v46 = vld [vmem:[%s6046_s5] sm:$0xff] }
 0x165   : > { %v1199_v57 = vadd.f32 %v1195_v53, %v1121_v50  ;;  %v1200_v58 = vadd.f32 %v1197_v54, %v1122_v51 }
 0x166   : > { %vm1210_vm9 = vcmp.ge.f32.partialorder %v1207_v52, 0.0  ;;  %v1213_v59 = vmul.f32 0.2, %v1207_v52 }
 0x167   : > { %v1208_v60 = vadd.f32 %v1205_v48, %v1199_v57  ;;  %v1209_v61 = vadd.f32 %v1205_v48, %v1200_v58 }
 0x168   : > { %v1216_v62 = vsel %vm1210_vm9, %v1207_v52, %v1213_v59 }
 0x169   : > { %v5071_v3 = vmul.f32 %v5064_v55, %v1216_v62  ;;  %vm1211_vm10 = vcmp.ge.f32.partialorder %v1208_v60, 0.0  ;;  %vm1212_vm11 = vcmp.ge.f32.partialorder %v1209_v61, 0.0  ;;  %v1214_v5 = vmul.f32 0.2, %v1208_v60 }
 0x16a   : > { %v1215_v6 = vmul.f32 0.2, %v1209_v61 }
 0x16b   : > { %v1217_v7 = vsel %vm1211_vm10, %v1208_v60, %v1214_v5  ;;  %1257 = vmatpush.msrb.mxu3 %v5071_v3  ;;  %1331 = vmatpush.msrb.mxu2 %v5071_v3 }
 0x16c   : > { %v1218_v9 = vsel %vm1212_vm11, %v1209_v61, %v1215_v6  ;;  %v5079_v10 = vmul.f32 %v5066_v63, %v1217_v7 }
 0x16d   : > { %v5085_v12 = vmul.f32 %v5068_v2, %v1218_v9  ;;  %1258 = vmatpush.msrb.mxu3 %v4878_v0  ;;  %1332 = vmatpush.msrb.mxu2 %v4878_v0 }
 0x16e   : > { %4271 = vmatmul.msk.f32.vlgmr.msrb.gmra.mxu3 %vm1239_vm12, %v1238_v8  ;;  %1277 = vmatpush.msra.mxu0 %v5079_v10 }
 0x16f   : > { %1297 = vmatpush.msrb.mxu1 %v5085_v12  ;;  %4275 = vmatmul.msk.f32.vlgmr.msrb.gmra.mxu2 %vm1239_vm12, %v4274_v11 }
 0x170   : > { %1351 = vmatpush.msra.mxu3 %v5079_v10  ;;  %1428 = vmatpush.msra.mxu2 %v5079_v10 }
 0x171   : > { %1278 = vmatpush.msra.mxu0 %v4881_v1  ;;  %1298 = vmatpush.msrb.mxu1 %v4892_v4 }
 0x172   : > { %1352 = vmatpush.msra.mxu3 %v4881_v1  ;;  %1429 = vmatpush.msra.mxu2 %v4881_v1 }
 0x173   : > { %4272 = vmatmul.msk.f32.vlgmr.msra.gmra.mxu0 %vm1239_vm12, %v1238_v8  ;;  %4273 = vmatmul.msk.f32.vlgmr.msrb.gmra.mxu1 %vm1239_vm12, %v1238_v8 }
 0x174   : > { %1371 = vmatpush.msrb.mxu0 %v5085_v12  ;;  %1408 = vmatpush.msra.mxu1 %v5071_v3 }
 0x175   : > { %1448 = vmatpush.msrb.mxu3 %v5085_v12  ;;  %1525 = vmatpush.msrb.mxu2 %v5085_v12 }
 0x176   : > { %1372 = vmatpush.msrb.mxu0 %v4892_v4  ;;  %1409 = vmatpush.msra.mxu1 %v4878_v0 }
 0x177   : > { %1449 = vmatpush.msrb.mxu3 %v4892_v4  ;;  %1526 = vmatpush.msrb.mxu2 %v4892_v4 }
 0x178   : > { %1485 = vmatpush.msra.mxu0 %v5071_v3  ;;  %1505 = vmatpush.msrb.mxu1 %v5079_v10 }
 0x179   : > { %4276 = vmatmul.msk.f32.vlgmr.msra.gmra.mxu3 %vm1239_vm12, %v4274_v11  ;;  %4280 = vmatmul.msk.f32.vlgmr.msra.gmra.mxu2 %vm1239_vm12, %v4278_v13 }
 0x17a   : > { %1562 = vmatpush.msra.mxu3 %v5071_v3  ;;  %1630 = vmatpush.msra.mxu2 %v5071_v3 }
 0x17b   : > { %1486 = vmatpush.msra.mxu0 %v4878_v0  ;;  %1506 = vmatpush.msrb.mxu1 %v4881_v1 }
 0x17c   : > { %4277 = vmatmul.msk.f32.vlgmr.msrb.gmra.mxu0 %vm1239_vm12, %v4274_v11  ;;  %4279 = vmatmul.msk.f32.vlgmr.msra.gmra.mxu1 %vm1239_vm12, %v4278_v13 }
 0x17d   : > { %1582 = vmatpush.msrb.mxu0 %v5079_v10  ;;  %1602 = vmatpush.msra.mxu1 %v5085_v12 }
 0x17e   : > { %1563 = vmatpush.msra.mxu3 %v4878_v0  ;;  %1631 = vmatpush.msra.mxu2 %v4878_v0 }
 0x17f   : > { %1583 = vmatpush.msrb.mxu0 %v4881_v1  ;;  %1603 = vmatpush.msra.mxu1 %v4892_v4 }
 0x181   : > { %4281 = vmatmul.msk.f32.vlgmr.msrb.gmra.mxu3 %vm1239_vm12, %v4278_v13  ;;  %4285 = vmatmul.msk.f32.vlgmr.msrb.gmra.mxu2 %vm1239_vm12, %v4282_v14 }
 0x182   : > { %1650 = vmatpush.msrb.mxu3 %v5079_v10  ;;  %1727 = vmatpush.msrb.mxu2 %v5079_v10 }
 0x184   : > { %4283 = vmatmul.msk.f32.vlgmr.msra.gmra.mxu0 %vm1239_vm12, %v4282_v14  ;;  %4284 = vmatmul.msk.f32.vlgmr.msrb.gmra.mxu1 %vm1239_vm12, %v4282_v14 }
 0x185   : > { %1670 = vmatpush.msra.mxu0 %v5085_v12  ;;  %1707 = vmatpush.msrb.mxu1 %v5071_v3 }
 0x186   : > { %1651 = vmatpush.msrb.mxu3 %v4881_v1  ;;  %1728 = vmatpush.msrb.mxu2 %v4881_v1 }
 0x187   : > { %1671 = vmatpush.msra.mxu0 %v4892_v4  ;;  %1708 = vmatpush.msrb.mxu1 %v4878_v0 }
 0x189   : > { %4287 = vmatmul.msk.f32.vlgmr.msra.gmra.mxu3 %vm1239_vm12, %v4286_v15  ;;  %4291 = vmatmul.msk.f32.vlgmr.msra.gmra.mxu2 %vm1239_vm12, %v4290_v16 }
 0x18a   : > { %1747 = vmatpush.msra.mxu3 %v5085_v12  ;;  %1824 = vmatpush.msra.mxu2 %v5085_v12 }
 0x18c   : > { %4288 = vmatmul.msk.f32.vlgmr.msrb.gmra.mxu0 %vm1239_vm12, %v4286_v15  ;;  %4289 = vmatmul.msk.f32.vlgmr.msra.gmra.mxu1 %vm1239_vm12, %v4286_v15 }
 0x18d   : > { %1784 = vmatpush.msrb.mxu0 %v5071_v3  ;;  %1804 = vmatpush.msra.mxu1 %v5079_v10 }
 0x18e   : > { %1748 = vmatpush.msra.mxu3 %v4892_v4  ;;  %1825 = vmatpush.msra.mxu2 %v4892_v4 }
 0x18f   : > { %1785 = vmatpush.msrb.mxu0 %v4878_v0  ;;  %1805 = vmatpush.msra.mxu1 %v4881_v1 }
 0x191   : > { %4292 = vmatmul.msk.f32.vlgmr.msrb.gmra.mxu3 %vm1239_vm12, %v4290_v16  ;;  %4296 = vmatmul.msk.f32.vlgmr.msrb.gmra.mxu2 %vm1239_vm12, %v4294_v17 }
 0x192   : > { %1861 = vmatpush.msrb.mxu3 %v5071_v3 }
 0x194   : > { %4293 = vmatmul.msk.f32.vlgmr.msra.gmra.mxu0 %vm1239_vm12, %v4290_v16  ;;  %4295 = vmatmul.msk.f32.vlgmr.msrb.gmra.mxu1 %vm1239_vm12, %v4294_v17 }
 0x195   : > { %1881 = vmatpush.msra.mxu0 %v5079_v10  ;;  %1901 = vmatpush.msrb.mxu1 %v5085_v12 }
 0x196   : > { %1862 = vmatpush.msrb.mxu3 %v4878_v0 }
 0x197   : > { %1882 = vmatpush.msra.mxu0 %v4881_v1  ;;  %1902 = vmatpush.msrb.mxu1 %v4892_v4 }
 0x199   : > { %4297 = vmatmul.msk.f32.vlgmr.msra.gmra.mxu3 %vm1239_vm12, %v4294_v17  ;;  %4301 = vmatmul.msk.f32.vlgmr.msra.gmra.mxu2 %vm1239_vm12, %v4298_v18 }
 0x19c   : > { %4299 = vmatmul.msk.f32.vlgmr.msrb.gmra.mxu0 %vm1239_vm12, %v4298_v18  ;;  %4300 = vmatmul.msk.f32.vlgmr.msra.gmra.mxu1 %vm1239_vm12, %v4298_v18 }
 0x1a1   : > { %4303 = vmatmul.msk.f32.vlgmr.msrb.gmra.mxu3 %vm1239_vm12, %v4302_v19 }
 0x1a4   : > { %4304 = vmatmul.msk.f32.vlgmr.msra.gmra.mxu0 %vm1239_vm12, %v4302_v19  ;;  %4305 = vmatmul.msk.f32.vlgmr.msrb.gmra.mxu1 %vm1239_vm12, %v4302_v19  ;;  %vm2670_vm12 = vcmask 261120  }
 0x1f0   : > { %v1300_v20 = vpop.f32.mrf.mxu1  ;;  %v1280_v22 = vpop.f32.mrf.mxu0 }
 0x1f1   : > { %1307 = vrot.lane.b32.xlu2 %v1300_v20, %s4688_s18  ;;  %v1260_v23 = vpop.f32.mrf.mxu3 }
 0x1f2   : > { %v1334_v25 = vpop.f32.mrf.mxu2  ;;  %1303 = vrot.lane.b32.xlu1 %v1260_v23, %s4688_s18 }
 0x1f3   : > { %1377 = vrot.lane.b32.xlu0 %v1334_v25, %s4687_s15 }
 0x1f9   : > { %v1411_v26 = vpop.f32.mrf.mxu1  ;;  %v1374_v27 = vpop.f32.mrf.mxu0 }
 0x1fa   : > { %1454 = vrot.lane.b32.xlu2 %v1411_v26, %s4689_s16  ;;  %1381 = vrot.lane.b32.xlu1 %v1374_v27, %s4687_s15 }
 0x1fb   : > { %1305 = vrot.lane.b32.xlu0 %v1280_v22, %s4688_s18 }
 0x1fc   : > { %v1354_v29 = vpop.f32.mrf.mxu3  ;;  %v1431_v30 = vpop.f32.mrf.mxu2 }
 0x201   : > { %v1488_v31 = vpop.f32.mrf.mxu0  ;;  %v1508_v32 = vpop.f32.mrf.mxu1 }
 0x202   : > { %1456 = vrot.lane.b32.xlu2 %v1431_v30, %s4689_s16  ;;  %1379 = vrot.lane.b32.xlu1 %v1354_v29, %s4687_s15 }
 0x204   : > { %v1451_v21 = vpop.f32.mrf.mxu3  ;;  %v1528_v33 = vpop.f32.mrf.mxu2 }
 0x205   : > { %1458 = vrot.lane.b32.xlu0 %v1451_v21, %s4689_s16 }
 0x209   : > { %v5196_v34 = vpop.f32.mrf.mxu0  ;;  %v5198_v35 = vpop.f32.mrf.mxu1 }
 0x20a   : > { %1535 = vrot.lane.b32.xlu2 %v1528_v33, %s4690_s27  ;;  %1531 = vrot.lane.b32.xlu1 %v1488_v31, %s4690_s27 }
 0x20c   : > { %v1565_v28 = vpop.f32.mrf.mxu3  ;;  %v1633_v36 = vpop.f32.mrf.mxu2 }
 0x20d   : > { %1676 = vrot.lane.b32.xlu0 %v1633_v36, %s4692_s17 }
 0x211   : > { %v1673_v37 = vpop.f32.mrf.mxu0  ;;  %v1710_v38 = vpop.f32.mrf.mxu1 }
 0x212   : > { %1533 = vrot.lane.b32.xlu2 %v1508_v32, %s4690_s27 }
 0x214   : > { %v1653_v39 = vpop.f32.mrf.mxu3  ;;  %v1730_v40 = vpop.f32.mrf.mxu2 }
 0x215   : > { %1753 = vrot.lane.b32.xlu0 %v1710_v38, %s4693_s10  ;;  %1678 = vrot.lane.b32.xlu1 %v1653_v39, %s4692_s17 }
 0x219   : > { %v1787_v24 = vpop.f32.mrf.mxu0  ;;  %v1807_v41 = vpop.f32.mrf.mxu1 }
 0x21a   : > { %1830 = vrot.lane.b32.xlu2 %v1787_v24, %s4694_s12 }
 0x21c   : > { %v1750_v42 = vpop.f32.mrf.mxu3  ;;  %v1827_v45 = vpop.f32.mrf.mxu2 }
 0x21d   : > { %1832 = vrot.lane.b32.xlu0 %v1807_v41, %s4694_s12  ;;  %1755 = vrot.lane.b32.xlu1 %v1730_v40, %s4693_s10 }
 0x221   : > { %v1884_v43 = vpop.f32.mrf.mxu0  ;;  %v1904_v47 = vpop.f32.mrf.mxu1 }
 0x224   : > { %v1864_v44 = vpop.f32.mrf.mxu3 }
 0x225   : > { %1909 = vrot.lane.b32.xlu0 %v1884_v43, %s4695_s14  ;;  %1680 = vrot.lane.b32.xlu1 %v1673_v37, %s4692_s17 }
 0x226   : > { %1907 = vrot.lane.b32.xlu2 %v1864_v44, %s4695_s14 }
 0x22d   : > { %1834 = vrot.lane.b32.xlu0 %v1827_v45, %s4694_s12  ;;  %1757 = vrot.lane.b32.xlu1 %v1750_v42, %s4693_s10 }
 0x22e   : > { %1922 = vperm.xlu2 %4497, %v1919_v46  }
 0x235   : > { %1911 = vrot.lane.b32.xlu1 %v1904_v47, %s4695_s14 }
 0x24b   : > { %v1308_v48 = vpop.permute.xlu2 %1307 }
 0x254   : > { %v1455_v49 = vpop.permute.xlu2 %1454 }
 0x25c   : > { %v1457_v52 = vpop.permute.xlu2 %1456 }
 0x25d   : > { %v1461_v24 = vsel %vm736_vm3, %v1455_v49, %v1457_v52 }
 0x264   : > { %v1304_v50 = vpop.permute.xlu1 %1303  ;;  %v1536_v57 = vpop.permute.xlu2 %1535 }
 0x265   : > { %v1378_v51 = vpop.permute.xlu0 %1377  ;;  %v1311_v6 = vsel %vm583_vm2, %v1308_v48, %v1304_v50 }
 0x26c   : > { %v1382_v53 = vpop.permute.xlu1 %1381  ;;  %v1534_v61 = vpop.permute.xlu2 %1533 }
 0x26d   : > { %v1306_v54 = vpop.permute.xlu0 %1305  ;;  %v1385_v5 = vsel %vm658_vm1, %v1382_v53, %v1378_v51  ;;  %v1537_v45 = vsel %vm814_vm4, %v1534_v61, %v1536_v57 }
 0x26e   : > { %v1386_v9 = vadd.f32 %v1385_v5, %v1311_v6  ;;  %v1309_v27 = vsel %vm583_vm2, %v1306_v54, %v1308_v48  ;;  %v1310_v32 = vsel %vm583_vm2, %v1304_v50, %v1306_v54  ;;  %v1952_v6 = vld [vmem:[%s6047_s6] sm:$0xff] }
 0x274   : > { %v1380_v58 = vpop.permute.xlu1 %1379  ;;  %v1831_v8 = vpop.permute.xlu2 %1830 }
 0x275   : > { %v1383_v23 = vsel %vm658_vm1, %v1380_v58, %v1382_v53  ;;  %v1384_v29 = vsel %vm658_vm1, %v1378_v51, %v1380_v58 }
 0x276   : > { %v1388_v30 = vadd.f32 %v1383_v23, %v1309_v27  ;;  %v1387_v21 = vadd.f32 %v1384_v29, %v1310_v32  ;;  %v4321_v32 = vld [vmem:[%s6047_s6 + $0x20] sm:$0xff] }
 0x277   : > { %v1459_v59 = vpop.permute.xlu0 %1458 }
 0x278   : > { %v1462_v7 = vsel %vm736_vm3, %v1459_v59, %v1455_v49  ;;  %v1460_v33 = vsel %vm736_vm3, %v1457_v52, %v1459_v59  ;;  %v1464_v43 = vadd.f32 %v1461_v24, %v1387_v21  ;;  %v4325_v21 = vld [vmem:[%s6047_s6 + $0x28] sm:$0xff] }
 0x279   : > { %v1463_v15 = vadd.f32 %v1462_v7, %v1386_v9  ;;  %v1465_v36 = vadd.f32 %v1460_v33, %v1388_v30  ;;  %v4309_v7 = vld [vmem:[%s6047_s6 + $0x8] sm:$0xff]  ;;  %v4329_v33 = vld [vmem:[%s6047_s6 + $0x30] sm:$0xff] }
 0x27b   : > { %v1542_v46 = vadd.f32 %v1537_v45, %v1465_v36  ;;  %v4337_v36 = vld [vmem:[%s6047_s6 + $0x40] sm:$0xff] }
 0x27c   : > { %v1532_v60 = vpop.permute.xlu1 %1531 }
 0x27d   : > { %v1539_v14 = vsel %vm814_vm4, %v1536_v57, %v1532_v60  ;;  %v1538_v40 = vsel %vm814_vm4, %v1532_v60, %v1534_v61  ;;  %v1610_v53 = vadd.f32 %v5198_v35, %v1542_v46 }
 0x27e   : > { %v1540_v16 = vadd.f32 %v1539_v14, %v1463_v15  ;;  %v1541_v47 = vadd.f32 %v1538_v40, %v1464_v43 }
 0x27f   : > { %v1677_v62 = vpop.permute.xlu0 %1676 }
 0x280   : > { %v5228_v18 = vpop.permute.xlu2 %1907  ;;  %v1608_v19 = vadd.f32 %v1565_v28, %v1540_v16  ;;  %v1609_v52 = vadd.f32 %v5196_v34, %v1541_v47 }
 0x287   : > { %v1754_v11 = vpop.permute.xlu0 %1753  ;;  %v1679_v13 = vpop.permute.xlu1 %1678 }
 0x288   : > { %v1683_v17 = vsel %vm960_vm5, %v1677_v62, %v1679_v13  ;;  %v1923_v42 = vpop.permute.xlu2 %1922 }
 0x289   : > { %v1685_v26 = vadd.f32 %v1683_v17, %v1608_v19 }
 0x28f   : > { %v1833_v20 = vpop.permute.xlu0 %1832  ;;  %v1756_v22 = vpop.permute.xlu1 %1755 }
 0x290   : > { %v1760_v25 = vsel %vm1038_vm6, %v1754_v11, %v1756_v22  ;;  %v1837_v28 = vsel %vm1116_vm8, %v1831_v8, %v1833_v20 }
 0x291   : > { %v1762_v31 = vadd.f32 %v1760_v25, %v1685_v26 }
 0x293   : > { %v1839_v38 = vadd.f32 %v1837_v28, %v1762_v31  ;;  %v5361_v31 = vld [vmem:[%s4867_s21 + $0x10] sm:$0xff]  ;;  %v4333_v28 = vld [vmem:[%s6047_s6 + $0x38] sm:$0xff] }
 0x297   : > { %v1910_v37 = vpop.permute.xlu0 %1909  ;;  %v1681_v39 = vpop.permute.xlu1 %1680 }
 0x298   : > { %v1914_v41 = vsel %vm1194_vm7, %v5228_v18, %v1910_v37  ;;  %v1682_v49 = vsel %vm960_vm5, %v1679_v13, %v1681_v39  ;;  %v1684_v51 = vsel %vm960_vm5, %v1681_v39, %v1677_v62 }
 0x299   : > { %v1916_v44 = vadd.f32 %v1914_v41, %v1839_v38  ;;  %v1686_v60 = vadd.f32 %v1682_v49, %v1609_v52  ;;  %v1687_v61 = vadd.f32 %v1684_v51, %v1610_v53 }
 0x29b   : > { %v1925_v48 = vadd.f32 %v1923_v42, %v1916_v44 }
 0x29d   : > { %vm1928_vm13 = vcmp.ge.f32.partialorder %v1925_v48, 0.0  ;;  %v1931_v50 = vmul.f32 0.2, %v1925_v48 }
 0x29f   : > { %v1934_v54 = vsel %vm1928_vm13, %v1925_v48, %v1931_v50  ;;  %v1758_v58 = vpop.permute.xlu1 %1757  ;;  %v1835_v34 = vpop.permute.xlu0 %1834 }
 0x2a0   : > { %v5260_v59 = vmul.f32 %v1934_v54, %v5064_v55  ;;  %v1759_v57 = vsel %vm1038_vm6, %v1756_v22, %v1758_v58  ;;  %v1761_v5 = vsel %vm1038_vm6, %v1758_v58, %v1754_v11  ;;  %v1836_v9 = vsel %vm1116_vm8, %v1833_v20, %v1835_v34 }
 0x2a1   : > { %v1763_v62 = vadd.f32 %v1759_v57, %v1686_v60  ;;  %v1764_v35 = vadd.f32 %v1761_v5, %v1687_v61  ;;  %v1838_v11 = vsel %vm1116_vm8, %v1835_v34, %v1831_v8 }
 0x2a2   : > { %1970 = vmatpush.msrb.mxu2 %v5260_v59  ;;  %2044 = vmatpush.msra.mxu1 %v5260_v59 }
 0x2a3   : > { %v1840_v13 = vadd.f32 %v1836_v9, %v1763_v62  ;;  %v1841_v14 = vadd.f32 %v1838_v11, %v1764_v35  ;;  %v2633_v35 = vld [vmem:[%s6048_s7] sm:$0xff] }
 0x2a4   : > { %1971 = vmatpush.msrb.mxu2 %v5071_v3  ;;  %2045 = vmatpush.msra.mxu1 %v5071_v3 }
 0x2a6   : > { %1972 = vmatpush.msrb.mxu2 %v4878_v0  ;;  %2046 = vmatpush.msra.mxu1 %v4878_v0 }
 0x2a7   : > { %v1912_v15 = vpop.permute.xlu1 %1911  ;;  %4306 = vmatmul.msk.f32.vlgmr.msrb.gmra.mxu2 %vm1953_vm14, %v1952_v6  ;;  %4310 = vmatmul.msk.f32.vlgmr.msra.gmra.mxu1 %vm1953_vm14, %v4309_v7 }
 0x2a8   : > { %v1913_v16 = vsel %vm1194_vm7, %v1910_v37, %v1912_v15  ;;  %v1915_v17 = vsel %vm1194_vm7, %v1912_v15, %v5228_v18  ;;  %v4313_v18 = vld [vmem:[%s6047_s6 + $0x10] sm:$0xff] }
 0x2a9   : > { %v1917_v19 = vadd.f32 %v1913_v16, %v1840_v13  ;;  %v1918_v8 = vadd.f32 %v1915_v17, %v1841_v14 }
 0x2ab   : > { %v1926_v20 = vadd.f32 %v1923_v42, %v1917_v19  ;;  %v1927_v22 = vadd.f32 %v1923_v42, %v1918_v8 }
 0x2ad   : > { %vm1929_vm15 = vcmp.ge.f32.partialorder %v1926_v20, 0.0  ;;  %vm1930_vm0 = vcmp.ge.f32.partialorder %v1927_v22, 0.0  ;;  %v1932_v23 = vmul.f32 0.2, %v1926_v20  ;;  %v1933_v25 = vmul.f32 0.2, %v1927_v22 }
 0x2af   : > { %v1935_v26 = vsel %vm1929_vm15, %v1926_v20, %v1932_v23  ;;  %v1936_v27 = vsel %vm1930_vm0, %v1927_v22, %v1933_v25  ;;  %vm3390_vm0 = vcmask 326656  }
 0x2b0   : > { %v5290_v29 = vmul.f32 %v1935_v26, %v5066_v63  ;;  %v5293_v30 = vmul.f32 %v1936_v27, %v5068_v2 }
 0x2b2   : > { %1990 = vmatpush.msra.mxu3 %v5290_v29  ;;  %2010 = vmatpush.msrb.mxu0 %v5293_v30 }
 0x2b3   : > { %2064 = vmatpush.msra.mxu2 %v5290_v29  ;;  %2141 = vmatpush.msrb.mxu1 %v5290_v29 }
 0x2b4   : > { %1991 = vmatpush.msra.mxu3 %v5079_v10  ;;  %2011 = vmatpush.msrb.mxu0 %v5085_v12 }
 0x2b5   : > { %2065 = vmatpush.msra.mxu2 %v5079_v10  ;;  %2142 = vmatpush.msrb.mxu1 %v5079_v10 }
 0x2b6   : > { %1992 = vmatpush.msra.mxu3 %v4881_v1  ;;  %2012 = vmatpush.msrb.mxu0 %v4892_v4 }
 0x2b7   : > { %2066 = vmatpush.msra.mxu2 %v4881_v1  ;;  %2143 = vmatpush.msrb.mxu1 %v4881_v1  ;;  %v5342_v1 = vld [vmem:[%s4867_s21] sm:$0xff] }
 0x2b8   : > { %4307 = vmatmul.msk.f32.vlgmr.msra.gmra.mxu3 %vm1953_vm14, %v1952_v6  ;;  %4308 = vmatmul.msk.f32.vlgmr.msrb.gmra.mxu0 %vm1953_vm14, %v1952_v6 }
 0x2b9   : > { %4311 = vmatmul.msk.f32.vlgmr.msra.gmra.mxu2 %vm1953_vm14, %v4309_v7  ;;  %2084 = vmatpush.msrb.mxu3 %v5293_v30 }
 0x2ba   : > { %2121 = vmatpush.msra.mxu0 %v5260_v59  ;;  %4315 = vmatmul.msk.f32.vlgmr.msrb.gmra.mxu1 %vm1953_vm14, %v4313_v18 }
 0x2bb   : > { %2161 = vmatpush.msrb.mxu2 %v5293_v30  ;;  %2238 = vmatpush.msra.mxu1 %v5293_v30 }
 0x2bc   : > { %2085 = vmatpush.msrb.mxu3 %v5085_v12  ;;  %2122 = vmatpush.msra.mxu0 %v5071_v3 }
 0x2bd   : > { %2162 = vmatpush.msrb.mxu2 %v5085_v12  ;;  %2239 = vmatpush.msra.mxu1 %v5085_v12 }
 0x2be   : > { %2086 = vmatpush.msrb.mxu3 %v4892_v4  ;;  %2123 = vmatpush.msra.mxu0 %v4878_v0  ;;  %v4317_v0 = vld [vmem:[%s6047_s6 + $0x18] sm:$0xff] }
 0x2bf   : > { %2163 = vmatpush.msrb.mxu2 %v4892_v4  ;;  %2240 = vmatpush.msra.mxu1 %v4892_v4  ;;  %v5346_v4 = vld [vmem:[%s4867_s21 + $0x8] sm:$0xff] }
 0x2c0   : > { %2198 = vmatpush.msra.mxu3 %v5260_v59  ;;  %2218 = vmatpush.msrb.mxu0 %v5290_v29 }
 0x2c1   : > { %2275 = vmatpush.msra.mxu2 %v5260_v59  ;;  %2343 = vmatpush.msrb.mxu1 %v5260_v59 }
 0x2c2   : > { %2199 = vmatpush.msra.mxu3 %v5071_v3  ;;  %2219 = vmatpush.msrb.mxu0 %v5079_v10 }
 0x2c3   : > { %2276 = vmatpush.msra.mxu2 %v5071_v3  ;;  %2344 = vmatpush.msrb.mxu1 %v5071_v3 }
 0x2c4   : > { %4312 = vmatmul.msk.f32.vlgmr.msrb.gmra.mxu3 %vm1953_vm14, %v4309_v7  ;;  %4314 = vmatmul.msk.f32.vlgmr.msra.gmra.mxu0 %vm1953_vm14, %v4313_v18 }
 0x2c5   : > { %4316 = vmatmul.msk.f32.vlgmr.msrb.gmra.mxu2 %vm1953_vm14, %v4313_v18  ;;  %4320 = vmatmul.msk.f32.vlgmr.msra.gmra.mxu1 %vm1953_vm14, %v4317_v0 }
 0x2c6   : > { %2200 = vmatpush.msra.mxu3 %v5342_v1  ;;  %2220 = vmatpush.msrb.mxu0 %v5346_v4 }
 0x2c7   : > { %2277 = vmatpush.msra.mxu2 %v5342_v1  ;;  %2345 = vmatpush.msrb.mxu1 %v5342_v1 }
 0x2c8   : > { %2295 = vmatpush.msrb.mxu3 %v5290_v29  ;;  %2315 = vmatpush.msra.mxu0 %v5293_v30 }
 0x2c9   : > { %2363 = vmatpush.msrb.mxu2 %v5290_v29  ;;  %2440 = vmatpush.msra.mxu1 %v5290_v29 }
 0x2ca   : > { %2296 = vmatpush.msrb.mxu3 %v5079_v10  ;;  %2316 = vmatpush.msra.mxu0 %v5085_v12 }
 0x2cb   : > { %2364 = vmatpush.msrb.mxu2 %v5079_v10  ;;  %2441 = vmatpush.msra.mxu1 %v5079_v10 }
 0x2cc   : > { %2297 = vmatpush.msrb.mxu3 %v5346_v4  ;;  %2317 = vmatpush.msra.mxu0 %v5361_v31 }
 0x2cd   : > { %2365 = vmatpush.msrb.mxu2 %v5346_v4  ;;  %2442 = vmatpush.msra.mxu1 %v5346_v4 }
 0x2ce   : > { %4318 = vmatmul.msk.f32.vlgmr.msra.gmra.mxu3 %vm1953_vm14, %v4317_v0  ;;  %4319 = vmatmul.msk.f32.vlgmr.msrb.gmra.mxu0 %vm1953_vm14, %v4317_v0 }
 0x2cf   : > { %4322 = vmatmul.msk.f32.vlgmr.msra.gmra.mxu2 %vm1953_vm14, %v4321_v32  ;;  %4326 = vmatmul.msk.f32.vlgmr.msrb.gmra.mxu1 %vm1953_vm14, %v4325_v21 }
 0x2d0   : > { %2383 = vmatpush.msra.mxu3 %v5293_v30  ;;  %2420 = vmatpush.msrb.mxu0 %v5260_v59 }
 0x2d1   : > { %2460 = vmatpush.msra.mxu2 %v5293_v30  ;;  %2537 = vmatpush.msrb.mxu1 %v5293_v30 }
 0x2d2   : > { %2384 = vmatpush.msra.mxu3 %v5085_v12  ;;  %2421 = vmatpush.msrb.mxu0 %v5071_v3 }
 0x2d3   : > { %2461 = vmatpush.msra.mxu2 %v5085_v12  ;;  %2538 = vmatpush.msrb.mxu1 %v5085_v12 }
 0x2d4   : > { %2385 = vmatpush.msra.mxu3 %v5361_v31  ;;  %2422 = vmatpush.msrb.mxu0 %v5342_v1 }
 0x2d5   : > { %2462 = vmatpush.msra.mxu2 %v5361_v31  ;;  %2539 = vmatpush.msrb.mxu1 %v5361_v31 }
 0x2d6   : > { %4323 = vmatmul.msk.f32.vlgmr.msrb.gmra.mxu3 %vm1953_vm14, %v4321_v32  ;;  %4324 = vmatmul.msk.f32.vlgmr.msra.gmra.mxu0 %vm1953_vm14, %v4321_v32 }
 0x2d7   : > { %4327 = vmatmul.msk.f32.vlgmr.msrb.gmra.mxu2 %vm1953_vm14, %v4325_v21  ;;  %2497 = vmatpush.msrb.mxu3 %v5260_v59 }
 0x2d8   : > { %2517 = vmatpush.msra.mxu0 %v5290_v29  ;;  %2574 = vmatpush.msrb.mxu2 %v5260_v59 }
 0x2d9   : > { %2498 = vmatpush.msrb.mxu3 %v5071_v3  ;;  %4331 = vmatmul.msk.f32.vlgmr.msra.gmra.mxu1 %vm1953_vm14, %v4329_v33 }
 0x2da   : > { %2518 = vmatpush.msra.mxu0 %v5079_v10  ;;  %2575 = vmatpush.msrb.mxu2 %v5071_v3 }
 0x2db   : > { %2499 = vmatpush.msrb.mxu3 %v5342_v1 }
 0x2dc   : > { %2519 = vmatpush.msra.mxu0 %v5346_v4  ;;  %2576 = vmatpush.msrb.mxu2 %v5342_v1 }
 0x2de   : > { %4328 = vmatmul.msk.f32.vlgmr.msra.gmra.mxu3 %vm1953_vm14, %v4325_v21  ;;  %4330 = vmatmul.msk.f32.vlgmr.msrb.gmra.mxu0 %vm1953_vm14, %v4329_v33 }
 0x2df   : > { %2594 = vmatpush.msra.mxu3 %v5290_v29  ;;  %2614 = vmatpush.msrb.mxu0 %v5293_v30 }
 0x2e0   : > { %4332 = vmatmul.msk.f32.vlgmr.msra.gmra.mxu2 %vm1953_vm14, %v4329_v33 }
 0x2e1   : > { %2595 = vmatpush.msra.mxu3 %v5079_v10  ;;  %2615 = vmatpush.msrb.mxu0 %v5085_v12 }
 0x2e2   : > { %4336 = vmatmul.msk.f32.vlgmr.msrb.gmra.mxu1 %vm1953_vm14, %v4333_v28 }
 0x2e3   : > { %2616 = vmatpush.msrb.mxu0 %v5361_v31  ;;  %2596 = vmatpush.msra.mxu3 %v5346_v4 }
 0x2e6   : > { %4334 = vmatmul.msk.f32.vlgmr.msrb.gmra.mxu3 %vm1953_vm14, %v4333_v28  ;;  %4335 = vmatmul.msk.f32.vlgmr.msra.gmra.mxu0 %vm1953_vm14, %v4333_v28 }
 0x2e8   : > { %4338 = vmatmul.msk.f32.vlgmr.msrb.gmra.mxu2 %vm1953_vm14, %v4337_v36 }
 0x2ee   : > { %4340 = vmatmul.msk.f32.vlgmr.msrb.gmra.mxu0 %vm1953_vm14, %v4337_v36  ;;  %4339 = vmatmul.msk.f32.vlgmr.msra.gmra.mxu3 %vm1953_vm14, %v4337_v36 }
 0x324   : > { %v2048_v37 = vpop.f32.mrf.mxu1 }
 0x325   : > { %2091 = vrot.lane.b32.xlu2 %v2048_v37, %s4687_s15 }
 0x32a   : > { %v1974_v38 = vpop.f32.mrf.mxu2 }
 0x32b   : > { %2017 = vrot.lane.b32.xlu1 %v1974_v38, %s4688_s18 }
 0x335   : > { %v2014_v39 = vpop.f32.mrf.mxu0 }
 0x336   : > { %2021 = vrot.lane.b32.xlu0 %v2014_v39, %s4688_s18 }
 0x337   : > { %v2145_v24 = vpop.f32.mrf.mxu1 }
 0x33b   : > { %v1994_v40 = vpop.f32.mrf.mxu3 }
 0x33c   : > { %v2068_v41 = vpop.f32.mrf.mxu2  ;;  %2019 = vrot.lane.b32.xlu2 %v1994_v40, %s4688_s18 }
 0x33d   : > { %2093 = vrot.lane.b32.xlu1 %v2068_v41, %s4687_s15 }
 0x33e   : > { %2170 = vrot.lane.b32.xlu0 %v2145_v24, %s4689_s16 }
 0x341   : > { %v2125_v42 = vpop.f32.mrf.mxu0 }
 0x342   : > { %v2242_v43 = vpop.f32.mrf.mxu1 }
 0x346   : > { %2168 = vrot.lane.b32.xlu0 %v2125_v42, %s4689_s16 }
 0x347   : > { %v2088_v44 = vpop.f32.mrf.mxu3 }
 0x348   : > { %v2165_v45 = vpop.f32.mrf.mxu2  ;;  %2095 = vrot.lane.b32.xlu2 %v2088_v44, %s4687_s15 }
 0x349   : > { %2172 = vrot.lane.b32.xlu1 %v2165_v45, %s4689_s16 }
 0x34b   : > { %v2222_v46 = vpop.f32.mrf.mxu0 }
 0x34c   : > { %v2347_v47 = vpop.f32.mrf.mxu1 }
 0x34e   : > { %2249 = vrot.lane.b32.xlu0 %v2242_v43, %s4690_s27 }
 0x350   : > { %2247 = vrot.lane.b32.xlu2 %v2222_v46, %s4690_s27 }
 0x351   : > { %v2202_v48 = vpop.f32.mrf.mxu3  ;;  %2390 = vrot.lane.b32.xlu1 %v2347_v47, %s4692_s17 }
 0x352   : > { %v5437_v50 = vpop.f32.mrf.mxu2 }
 0x353   : > { %v5439_v49 = vpop.f32.mrf.mxu0 }
 0x356   : > { %2245 = vrot.lane.b32.xlu0 %v2202_v48, %s4690_s27  ;;  %v2444_v51 = vpop.f32.mrf.mxu1 }
 0x359   : > { %v5442_v52 = vpop.f32.mrf.mxu3 }
 0x35a   : > { %v2367_v54 = vpop.f32.mrf.mxu2 }
 0x35b   : > { %v2424_v53 = vpop.f32.mrf.mxu0 }
 0x35c   : > { %2467 = vrot.lane.b32.xlu1 %v2424_v53, %s4693_s10 }
 0x35f   : > { %v2541_v57 = vpop.f32.mrf.mxu1 }
 0x361   : > { %v2387_v58 = vpop.f32.mrf.mxu3 }
 0x362   : > { %2394 = vrot.lane.b32.xlu2 %v2387_v58, %s4692_s17 }
 0x363   : > { %v2521_v60 = vpop.f32.mrf.mxu0  ;;  %v2464_v61 = vpop.f32.mrf.mxu2 }
 0x364   : > { %2548 = vrot.lane.b32.xlu1 %v2541_v57, %s4694_s12 }
 0x369   : > { %v2501_v5 = vpop.f32.mrf.mxu3 }
 0x36a   : > { %2544 = vrot.lane.b32.xlu0 %v2501_v5, %s4694_s12  ;;  %2392 = vrot.lane.b32.xlu2 %v2367_v54, %s4692_s17 }
 0x36b   : > { %v2618_v34 = vpop.f32.mrf.mxu0  ;;  %v2578_v62 = vpop.f32.mrf.mxu2 }
 0x36c   : > { %2625 = vrot.lane.b32.xlu1 %v2618_v34, %s4695_s14 }
 0x371   : > { %v2598_v6 = vpop.f32.mrf.mxu3 }
 0x372   : > { %2471 = vrot.lane.b32.xlu2 %v2464_v61, %s4693_s10  ;;  %2621 = vrot.lane.b32.xlu0 %v2578_v62, %s4695_s14 }
 0x374   : > { %2546 = vrot.lane.b32.xlu1 %v2521_v60, %s4694_s12 }
 0x37a   : > { %2469 = vrot.lane.b32.xlu2 %v2444_v51, %s4693_s10  ;;  %2636 = vperm.xlu0 %4498, %v2633_v35  }
 0x37f   : > { %v2092_v7 = vpop.permute.xlu2 %2091 }
 0x382   : > { %2623 = vrot.lane.b32.xlu2 %v2598_v6, %s4695_s14 }
 0x396   : > { %v2020_v9 = vpop.permute.xlu2 %2019 }
 0x39d   : > { %v2018_v11 = vpop.permute.xlu1 %2017 }
 0x39e   : > { %v2024_v33 = vsel %vm583_vm2, %v2018_v11, %v2020_v9 }
 0x3a2   : > { %v2096_v14 = vpop.permute.xlu2 %2095 }
 0x3a3   : > { %v2099_v21 = vsel %vm658_vm1, %v2096_v14, %v2092_v7 }
 0x3a8   : > { %v2022_v13 = vpop.permute.xlu0 %2021 }
 0x3a9   : > { %v2025_v27 = vsel %vm583_vm2, %v2022_v13, %v2018_v11  ;;  %v2023_v42 = vsel %vm583_vm2, %v2020_v9, %v2022_v13 }
 0x3aa   : > { %v2248_v17 = vpop.permute.xlu2 %2247  ;;  %v2100_v37 = vadd.f32 %v2099_v21, %v2025_v27 }
 0x3af   : > { %v2094_v15 = vpop.permute.xlu1 %2093 }
 0x3b0   : > { %v2171_v16 = vpop.permute.xlu0 %2170  ;;  %v2098_v18 = vsel %vm658_vm1, %v2092_v7, %v2094_v15  ;;  %v2097_v38 = vsel %vm658_vm1, %v2094_v15, %v2096_v14 }
 0x3b1   : > { %v2101_v39 = vadd.f32 %v2098_v18, %v2024_v33  ;;  %v2102_v46 = vadd.f32 %v2097_v38, %v2023_v42 }
 0x3b8   : > { %v2169_v20 = vpop.permute.xlu0 %2168 }
 0x3b9   : > { %v2175_v28 = vsel %vm736_vm3, %v2169_v20, %v2171_v16 }
 0x3ba   : > { %v2178_v45 = vadd.f32 %v2175_v28, %v2101_v39 }
 0x3bb   : > { %v2173_v19 = vpop.permute.xlu1 %2172 }
 0x3bc   : > { %v2395_v8 = vpop.permute.xlu2 %2394  ;;  %v2176_v36 = vsel %vm736_vm3, %v2173_v19, %v2169_v20  ;;  %v2174_v43 = vsel %vm736_vm3, %v2171_v16, %v2173_v19 }
 0x3bd   : > { %v2177_v44 = vadd.f32 %v2176_v36, %v2100_v37  ;;  %v2179_v53 = vadd.f32 %v2174_v43, %v2102_v46 }
 0x3c0   : > { %v2250_v25 = vpop.permute.xlu0 %2249 }
 0x3c1   : > { %v2251_v47 = vsel %vm814_vm4, %v2248_v17, %v2250_v25 }
 0x3c2   : > { %v2256_v58 = vadd.f32 %v2251_v47, %v2179_v53  ;;  %v2669_v47 = vld [vmem:[#allocation6] sm:$0xff]  ;;  %v2898_v53 = vld [vmem:[#allocation6 + $0x18] sm:$0xff] }
 0x3c3   : > { %v2391_v22 = vpop.permute.xlu1 %2390 }
 0x3c4   : > { %v2393_v23 = vpop.permute.xlu2 %2392  ;;  %v2324_v35 = vadd.f32 %v5439_v49, %v2256_v58  ;;  %v3043_v58 = vld [vmem:[#allocation6 + $0x28] sm:$0xff] }
 0x3c5   : > { %v2396_v34 = vsel %vm960_vm5, %v2393_v23, %v2395_v8  ;;  %v2397_v62 = vsel %vm960_vm5, %v2391_v22, %v2393_v23 }
 0x3c8   : > { %v2246_v32 = vpop.permute.xlu0 %2245 }
 0x3c9   : > { %v2252_v40 = vsel %vm814_vm4, %v2246_v32, %v2248_v17  ;;  %v2253_v41 = vsel %vm814_vm4, %v2250_v25, %v2246_v32 }
 0x3ca   : > { %v2254_v48 = vadd.f32 %v2253_v41, %v2177_v44  ;;  %v2255_v51 = vadd.f32 %v2252_v40, %v2178_v45 }
 0x3cc   : > { %v2472_v0 = vpop.permute.xlu2 %2471  ;;  %v2322_v57 = vadd.f32 %v5437_v50, %v2254_v48  ;;  %v2323_v60 = vadd.f32 %v5442_v52, %v2255_v51  ;;  %v2398_v52 = vsel %vm960_vm5, %v2395_v8, %v2391_v22  ;;  %v2744_v48 = vld [vmem:[#allocation6 + $0x8] sm:$0xff]  ;;  %v2821_v51 = vld [vmem:[#allocation6 + $0x10] sm:$0xff] }
 0x3cd   : > { %v2401_v14 = vadd.f32 %v2398_v52, %v2324_v35 }
 0x3ce   : > { %v2468_v26 = vpop.permute.xlu1 %2467  ;;  %v2400_v6 = vadd.f32 %v2396_v34, %v2323_v60  ;;  %v2399_v7 = vadd.f32 %v2397_v62, %v2322_v57  ;;  %v3120_v57 = vld [vmem:[#allocation6 + $0x30] sm:$0xff]  ;;  %v3197_v60 = vld [vmem:[#allocation6 + $0x38] sm:$0xff] }
 0x3cf   : > { %v2475_v11 = vsel %vm1038_vm6, %v2472_v0, %v2468_v26 }
 0x3d0   : > { %v2478_v20 = vadd.f32 %v2475_v11, %v2401_v14 }
 0x3d4   : > { %v2470_v61 = vpop.permute.xlu2 %2469 }
 0x3d5   : > { %v2473_v9 = vsel %vm1038_vm6, %v2470_v61, %v2472_v0  ;;  %v2474_v50 = vsel %vm1038_vm6, %v2468_v26, %v2470_v61  ;;  %v3274_v61 = vld [vmem:[#allocation6 + $0x40] sm:$0xff] }
 0x3d6   : > { %v2549_v24 = vpop.permute.xlu1 %2548  ;;  %v2476_v15 = vadd.f32 %v2474_v50, %v2399_v7  ;;  %v2477_v16 = vadd.f32 %v2473_v9, %v2400_v6 }
 0x3dc   : > { %v2545_v54 = vpop.permute.xlu0 %2544  ;;  %v2624_v17 = vpop.permute.xlu2 %2623 }
 0x3dd   : > { %v2552_v49 = vsel %vm1116_vm8, %v2549_v24, %v2545_v54 }
 0x3de   : > { %v2626_v5 = vpop.permute.xlu1 %2625  ;;  %v2555_v27 = vadd.f32 %v2552_v49, %v2478_v20 }
 0x3df   : > { %v2627_v18 = vsel %vm1194_vm7, %v2624_v17, %v2626_v5 }
 0x3e4   : > { %v2622_v13 = vpop.permute.xlu0 %2621 }
 0x3e5   : > { %v2629_v8 = vsel %vm1194_vm7, %v2626_v5, %v2622_v13  ;;  %v2628_v0 = vsel %vm1194_vm7, %v2622_v13, %v2624_v17 }
 0x3e6   : > { %v2547_v19 = vpop.permute.xlu1 %2546  ;;  %v2632_v33 = vadd.f32 %v2629_v8, %v2555_v27 }
 0x3e7   : > { %v2550_v23 = vsel %vm1116_vm8, %v2547_v19, %v2549_v24  ;;  %v2551_v25 = vsel %vm1116_vm8, %v2545_v54, %v2547_v19  ;;  %v2975_v54 = vld [vmem:[#allocation6 + $0x20] sm:$0xff] }
 0x3e8   : > { %v2553_v22 = vadd.f32 %v2551_v25, %v2476_v15  ;;  %v2554_v26 = vadd.f32 %v2550_v23, %v2477_v16 }
 0x3ea   : > { %v2630_v32 = vadd.f32 %v2628_v0, %v2553_v22  ;;  %v2631_v21 = vadd.f32 %v2627_v18, %v2554_v26  ;;  %v3350_v18 = vld [vmem:[%s6050_s9] sm:$0xff] }
 0x3ec   : > { %v2637_v28 = vpop.permute.xlu0 %2636 }
 0x3ed   : > { %v2639_v36 = vadd.f32 %v2637_v28, %v2630_v32  ;;  %v2640_v37 = vadd.f32 %v2637_v28, %v2631_v21  ;;  %v2641_v38 = vadd.f32 %v2637_v28, %v2632_v33 }
 0x3ef   : > { %vm2642_vm9 = vcmp.ge.f32.partialorder %v2639_v36, 0.0  ;;  %vm2643_vm10 = vcmp.ge.f32.partialorder %v2640_v37, 0.0  ;;  %vm2644_vm11 = vcmp.ge.f32.partialorder %v2641_v38, 0.0  ;;  %v2645_v39 = vmul.f32 0.2, %v2639_v36 }
 0x3f0   : > { %v2646_v24 = vmul.f32 0.2, %v2640_v37  ;;  %v2647_v40 = vmul.f32 0.2, %v2641_v38 }
 0x3f1   : > { %v2648_v41 = vsel %vm2642_vm9, %v2639_v36, %v2645_v39 }
 0x3f2   : > { %v2649_v42 = vsel %vm2643_vm10, %v2640_v37, %v2646_v24  ;;  %v2650_v43 = vsel %vm2644_vm11, %v2641_v38, %v2647_v40  ;;  %v5510_v44 = vmul.f32 %v2648_v41, %v5064_v55 }
 0x3f3   : > { %v5513_v45 = vmul.f32 %v2649_v42, %v5066_v63  ;;  %v5516_v46 = vmul.f32 %v2650_v43, %v5068_v2 }
 0x3f4   : > { %2686 = vmatpush.msra.mxu1 %v5510_v44  ;;  %2760 = vmatpush.msra.mxu0 %v5510_v44 }
 0x3f5   : > { %2706 = vmatpush.msra.mxu2 %v5513_v45  ;;  %2726 = vmatpush.msrb.mxu3 %v5516_v46 }
 0x3f6   : > { %2687 = vmatpush.msra.mxu1 %v5260_v59  ;;  %2761 = vmatpush.msra.mxu0 %v5260_v59 }
 0x3f7   : > { %2707 = vmatpush.msra.mxu2 %v5290_v29  ;;  %2727 = vmatpush.msrb.mxu3 %v5293_v30 }
 0x3f8   : > { %2688 = vmatpush.msra.mxu1 %v5071_v3  ;;  %2762 = vmatpush.msra.mxu0 %v5071_v3 }
 0x3f9   : > { %2708 = vmatpush.msra.mxu2 %v5079_v10  ;;  %2728 = vmatpush.msrb.mxu3 %v5085_v12 }
 0x3fa   : > { %2689 = vmatpush.msra.mxu1 %v5342_v1  ;;  %2763 = vmatpush.msra.mxu0 %v5342_v1 }
 0x3fb   : > { %2709 = vmatpush.msra.mxu2 %v5346_v4  ;;  %2729 = vmatpush.msrb.mxu3 %v5361_v31 }
 0x3fc   : > { %4341 = vmatmul.msk.f32.vlgmr.msra.gmra.mxu1 %vm2670_vm12, %v2669_v47  ;;  %4342 = vmatmul.msk.f32.vlgmr.msra.gmra.mxu2 %vm2670_vm12, %v2669_v47 }
 0x3fd   : > { %4343 = vmatmul.msk.f32.vlgmr.msrb.gmra.mxu3 %vm2670_vm12, %v2669_v47  ;;  %4344 = vmatmul.msk.f32.vlgmr.msra.gmra.mxu0 %vm2670_vm12, %v2744_v48 }
 0x3fe   : > { %2780 = vmatpush.msrb.mxu1 %v5513_v45  ;;  %2800 = vmatpush.msrb.mxu2 %v5516_v46 }
 0x3ff   : > { %2837 = vmatpush.msra.mxu3 %v5510_v44  ;;  %2857 = vmatpush.msrb.mxu0 %v5513_v45 }
 0x400   : > { %2781 = vmatpush.msrb.mxu1 %v5290_v29  ;;  %2801 = vmatpush.msrb.mxu2 %v5293_v30 }
 0x401   : > { %2838 = vmatpush.msra.mxu3 %v5260_v59  ;;  %2858 = vmatpush.msrb.mxu0 %v5290_v29 }
 0x402   : > { %2782 = vmatpush.msrb.mxu1 %v5079_v10  ;;  %2802 = vmatpush.msrb.mxu2 %v5085_v12 }
 0x403   : > { %2839 = vmatpush.msra.mxu3 %v5071_v3  ;;  %2859 = vmatpush.msrb.mxu0 %v5079_v10 }
 0x404   : > { %2783 = vmatpush.msrb.mxu1 %v5346_v4  ;;  %2803 = vmatpush.msrb.mxu2 %v5361_v31 }
 0x405   : > { %2840 = vmatpush.msra.mxu3 %v5342_v1  ;;  %2860 = vmatpush.msrb.mxu0 %v5346_v4 }
 0x406   : > { %2877 = vmatpush.msra.mxu1 %v5516_v46  ;;  %2914 = vmatpush.msra.mxu2 %v5510_v44 }
 0x407   : > { %2934 = vmatpush.msrb.mxu3 %v5513_v45  ;;  %2954 = vmatpush.msra.mxu0 %v5516_v46 }
 0x408   : > { %4345 = vmatmul.msk.f32.vlgmr.msrb.gmra.mxu1 %vm2670_vm12, %v2744_v48  ;;  %4346 = vmatmul.msk.f32.vlgmr.msrb.gmra.mxu2 %vm2670_vm12, %v2744_v48 }
 0x409   : > { %4347 = vmatmul.msk.f32.vlgmr.msra.gmra.mxu3 %vm2670_vm12, %v2821_v51  ;;  %2878 = vmatpush.msra.mxu1 %v5293_v30 }
 0x40a   : > { %2915 = vmatpush.msra.mxu2 %v5260_v59  ;;  %2935 = vmatpush.msrb.mxu3 %v5290_v29 }
 0x40b   : > { %2955 = vmatpush.msra.mxu0 %v5293_v30  ;;  %2879 = vmatpush.msra.mxu1 %v5085_v12 }
 0x40c   : > { %2916 = vmatpush.msra.mxu2 %v5071_v3  ;;  %2936 = vmatpush.msrb.mxu3 %v5079_v10 }
 0x40d   : > { %2956 = vmatpush.msra.mxu0 %v5085_v12  ;;  %2880 = vmatpush.msra.mxu1 %v5361_v31 }
 0x40e   : > { %4348 = vmatmul.msk.f32.vlgmr.msrb.gmra.mxu0 %vm2670_vm12, %v2821_v51  ;;  %2917 = vmatpush.msra.mxu2 %v5342_v1 }
 0x40f   : > { %2937 = vmatpush.msrb.mxu3 %v5346_v4  ;;  %2957 = vmatpush.msra.mxu0 %v5361_v31 }
 0x410   : > { %2991 = vmatpush.msrb.mxu1 %v5510_v44  ;;  %3011 = vmatpush.msrb.mxu2 %v5513_v45 }
 0x411   : > { %3031 = vmatpush.msra.mxu3 %v5516_v46  ;;  %3059 = vmatpush.msrb.mxu0 %v5510_v44 }
 0x412   : > { %4349 = vmatmul.msk.f32.vlgmr.msra.gmra.mxu1 %vm2670_vm12, %v2821_v51  ;;  %4350 = vmatmul.msk.f32.vlgmr.msra.gmra.mxu2 %vm2670_vm12, %v2898_v53 }
 0x413   : > { %4351 = vmatmul.msk.f32.vlgmr.msrb.gmra.mxu3 %vm2670_vm12, %v2898_v53  ;;  %2992 = vmatpush.msrb.mxu1 %v5260_v59 }
 0x414   : > { %3012 = vmatpush.msrb.mxu2 %v5290_v29  ;;  %3032 = vmatpush.msra.mxu3 %v5293_v30 }
 0x415   : > { %3060 = vmatpush.msrb.mxu0 %v5260_v59  ;;  %2993 = vmatpush.msrb.mxu1 %v5071_v3 }
 0x416   : > { %3013 = vmatpush.msrb.mxu2 %v5079_v10  ;;  %3033 = vmatpush.msra.mxu3 %v5085_v12 }
 0x417   : > { %3061 = vmatpush.msrb.mxu0 %v5071_v3  ;;  %2994 = vmatpush.msrb.mxu1 %v5342_v1 }
 0x418   : > { %4352 = vmatmul.msk.f32.vlgmr.msra.gmra.mxu0 %vm2670_vm12, %v2898_v53  ;;  %3014 = vmatpush.msrb.mxu2 %v5346_v4 }
 0x419   : > { %3034 = vmatpush.msra.mxu3 %v5361_v31  ;;  %3062 = vmatpush.msrb.mxu0 %v5342_v1 }
 0x41a   : > { %3079 = vmatpush.msra.mxu1 %v5513_v45  ;;  %3099 = vmatpush.msra.mxu2 %v5516_v46 }
 0x41b   : > { %3136 = vmatpush.msrb.mxu3 %v5510_v44  ;;  %3156 = vmatpush.msra.mxu0 %v5513_v45 }
 0x41c   : > { %3080 = vmatpush.msra.mxu1 %v5290_v29  ;;  %3100 = vmatpush.msra.mxu2 %v5293_v30 }
 0x41d   : > { %3137 = vmatpush.msrb.mxu3 %v5260_v59  ;;  %3157 = vmatpush.msra.mxu0 %v5290_v29 }
 0x41e   : > { %4353 = vmatmul.msk.f32.vlgmr.msrb.gmra.mxu1 %vm2670_vm12, %v2975_v54  ;;  %4354 = vmatmul.msk.f32.vlgmr.msrb.gmra.mxu2 %vm2670_vm12, %v2975_v54 }
 0x41f   : > { %4355 = vmatmul.msk.f32.vlgmr.msra.gmra.mxu3 %vm2670_vm12, %v2975_v54  ;;  %3081 = vmatpush.msra.mxu1 %v5079_v10 }
 0x420   : > { %3101 = vmatpush.msra.mxu2 %v5085_v12  ;;  %3138 = vmatpush.msrb.mxu3 %v5071_v3 }
 0x421   : > { %3158 = vmatpush.msra.mxu0 %v5079_v10  ;;  %3082 = vmatpush.msra.mxu1 %v5346_v4 }
 0x422   : > { %3102 = vmatpush.msra.mxu2 %v5361_v31  ;;  %3139 = vmatpush.msrb.mxu3 %v5342_v1 }
 0x423   : > { %3159 = vmatpush.msra.mxu0 %v5346_v4  ;;  %3176 = vmatpush.msrb.mxu1 %v5516_v46 }
 0x424   : > { %4356 = vmatmul.msk.f32.vlgmr.msrb.gmra.mxu0 %vm2670_vm12, %v3043_v58  ;;  %3213 = vmatpush.msrb.mxu2 %v5510_v44 }
 0x425   : > { %3233 = vmatpush.msra.mxu3 %v5513_v45  ;;  %3253 = vmatpush.msrb.mxu0 %v5516_v46 }
 0x426   : > { %3177 = vmatpush.msrb.mxu1 %v5293_v30  ;;  %3214 = vmatpush.msrb.mxu2 %v5260_v59 }
 0x427   : > { %3234 = vmatpush.msra.mxu3 %v5290_v29  ;;  %3254 = vmatpush.msrb.mxu0 %v5293_v30 }
 0x428   : > { %4357 = vmatmul.msk.f32.vlgmr.msra.gmra.mxu1 %vm2670_vm12, %v3043_v58  ;;  %4358 = vmatmul.msk.f32.vlgmr.msra.gmra.mxu2 %vm2670_vm12, %v3043_v58 }
 0x429   : > { %4359 = vmatmul.msk.f32.vlgmr.msrb.gmra.mxu3 %vm2670_vm12, %v3120_v57  ;;  %3178 = vmatpush.msrb.mxu1 %v5085_v12 }
 0x42a   : > { %3215 = vmatpush.msrb.mxu2 %v5071_v3  ;;  %3235 = vmatpush.msra.mxu3 %v5079_v10 }
 0x42b   : > { %3255 = vmatpush.msrb.mxu0 %v5085_v12  ;;  %3179 = vmatpush.msrb.mxu1 %v5361_v31 }
 0x42c   : > { %3216 = vmatpush.msrb.mxu2 %v5342_v1  ;;  %3236 = vmatpush.msra.mxu3 %v5346_v4 }
 0x42d   : > { %3290 = vmatpush.msra.mxu1 %v5510_v44  ;;  %4360 = vmatmul.msk.f32.vlgmr.msra.gmra.mxu0 %vm2670_vm12, %v3120_v57 }
 0x42e   : > { %3310 = vmatpush.msra.mxu2 %v5513_v45  ;;  %3330 = vmatpush.msrb.mxu3 %v5516_v46 }
 0x42f   : > { %3291 = vmatpush.msra.mxu1 %v5260_v59  ;;  %3256 = vmatpush.msrb.mxu0 %v5361_v31 }
 0x430   : > { %3311 = vmatpush.msra.mxu2 %v5290_v29  ;;  %3331 = vmatpush.msrb.mxu3 %v5293_v30 }
 0x431   : > { %4362 = vmatmul.msk.f32.vlgmr.msrb.gmra.mxu2 %vm2670_vm12, %v3197_v60  ;;  %3292 = vmatpush.msra.mxu1 %v5071_v3 }
 0x432   : > { %3312 = vmatpush.msra.mxu2 %v5079_v10  ;;  %3332 = vmatpush.msrb.mxu3 %v5085_v12 }
 0x433   : > { %4363 = vmatmul.msk.f32.vlgmr.msra.gmra.mxu3 %vm2670_vm12, %v3197_v60  ;;  %4361 = vmatmul.msk.f32.vlgmr.msrb.gmra.mxu1 %vm2670_vm12, %v3120_v57 }
 0x434   : > { %3333 = vmatpush.msrb.mxu3 %v5361_v31  ;;  %3293 = vmatpush.msra.mxu1 %v5342_v1 }
 0x435   : > { %3313 = vmatpush.msra.mxu2 %v5346_v4  ;;  %4364 = vmatmul.msk.f32.vlgmr.msrb.gmra.mxu0 %vm2670_vm12, %v3197_v60 }
 0x439   : > { %4366 = vmatmul.msk.f32.vlgmr.msra.gmra.mxu2 %vm2670_vm12, %v3274_v61 }
 0x43b   : > { %4367 = vmatmul.msk.f32.vlgmr.msrb.gmra.mxu3 %vm2670_vm12, %v3274_v61  ;;  %4365 = vmatmul.msk.f32.vlgmr.msra.gmra.mxu1 %vm2670_vm12, %v3274_v61 }
 0x479   : > { %v2691_v5 = vpop.f32.mrf.mxu1 }
 0x47a   : > { %v2765_v34 = vpop.f32.mrf.mxu0  ;;  %2734 = vrot.lane.b32.xlu0 %v2691_v5, %s4688_s18 }
 0x47b   : > { %2808 = vrot.lane.b32.xlu1 %v2765_v34, %s4687_s15 }
 0x47f   : > { %v2711_v35 = vpop.f32.mrf.mxu2 }
 0x480   : > { %v2731_v62 = vpop.f32.mrf.mxu3 }
 0x481   : > { %2738 = vrot.lane.b32.xlu2 %v2731_v62, %s4688_s18 }
 0x483   : > { %2736 = vrot.lane.b32.xlu1 %v2711_v35, %s4688_s18 }
 0x485   : > { %v2785_v1 = vpop.f32.mrf.mxu1 }
 0x486   : > { %2810 = vrot.lane.b32.xlu0 %v2785_v1, %s4687_s15 }
 0x48b   : > { %v2805_v4 = vpop.f32.mrf.mxu2  ;;  %v2862_v6 = vpop.f32.mrf.mxu0 }
 0x48c   : > { %v2842_v7 = vpop.f32.mrf.mxu3  ;;  %2887 = vrot.lane.b32.xlu2 %v2862_v6, %s4689_s16  ;;  %2812 = vrot.lane.b32.xlu1 %v2805_v4, %s4687_s15 }
 0x48f   : > { %v2882_v9 = vpop.f32.mrf.mxu1 }
 0x490   : > { %2889 = vrot.lane.b32.xlu0 %v2882_v9, %s4689_s16 }
 0x494   : > { %2885 = vrot.lane.b32.xlu2 %v2842_v7, %s4689_s16 }
 0x495   : > { %v2919_v52 = vpop.f32.mrf.mxu2  ;;  %v2959_v11 = vpop.f32.mrf.mxu0 }
 0x496   : > { %v2939_v50 = vpop.f32.mrf.mxu3 }
 0x497   : > { %2964 = vrot.lane.b32.xlu1 %v2939_v50, %s4690_s27 }
 0x49b   : > { %v5663_v13 = vpop.f32.mrf.mxu1 }
 0x49c   : > { %2966 = vrot.lane.b32.xlu2 %v2959_v11, %s4690_s27 }
 0x4a1   : > { %v5666_v14 = vpop.f32.mrf.mxu2  ;;  %v3064_v15 = vpop.f32.mrf.mxu0 }
 0x4a2   : > { %v3036_v16 = vpop.f32.mrf.mxu3  ;;  %3107 = vrot.lane.b32.xlu0 %v3064_v15, %s4692_s17 }
 0x4a4   : > { %2962 = vrot.lane.b32.xlu2 %v2919_v52, %s4690_s27 }
 0x4a5   : > { %v3084_v49 = vpop.f32.mrf.mxu1 }
 0x4a6   : > { %3109 = vrot.lane.b32.xlu1 %v3084_v49, %s4692_s17 }
 0x4aa   : > { %v3161_v19 = vpop.f32.mrf.mxu0 }
 0x4ab   : > { %v3104_v17 = vpop.f32.mrf.mxu2 }
 0x4ac   : > { %v3141_v20 = vpop.f32.mrf.mxu3 }
 0x4ad   : > { %3184 = vrot.lane.b32.xlu0 %v3141_v20, %s4693_s10 }
 0x4ae   : > { %3111 = vrot.lane.b32.xlu1 %v3104_v17, %s4692_s17 }
 0x4b0   : > { %v3181_v23 = vpop.f32.mrf.mxu1 }
 0x4b2   : > { %v3258_v8 = vpop.f32.mrf.mxu0 }
 0x4b4   : > { %v3218_v25 = vpop.f32.mrf.mxu2 }
 0x4b5   : > { %3261 = vrot.lane.b32.xlu2 %v3218_v25, %s4694_s12  ;;  %3265 = vrot.lane.b32.xlu0 %v3258_v8, %s4694_s12 }
 0x4b6   : > { %v3238_v22 = vpop.f32.mrf.mxu3  ;;  %3188 = vrot.lane.b32.xlu1 %v3181_v23, %s4693_s10 }
 0x4b8   : > { %v3295_v26 = vpop.f32.mrf.mxu1 }
 0x4bc   : > { %v3315_v0 = vpop.f32.mrf.mxu2 }
 0x4bd   : > { %3338 = vrot.lane.b32.xlu2 %v3295_v26, %s4695_s14 }
 0x4be   : > { %v3335_v27 = vpop.f32.mrf.mxu3  ;;  %3186 = vrot.lane.b32.xlu1 %v3161_v19, %s4693_s10 }
 0x4bf   : > { %3342 = vrot.lane.b32.xlu0 %v3335_v27, %s4695_s14 }
 0x4c5   : > { %3353 = vperm.xlu2 %4497, %v3350_v18  }
 0x4c6   : > { %3340 = vrot.lane.b32.xlu1 %v3315_v0, %s4695_s14 }
 0x4c7   : > { %3263 = vrot.lane.b32.xlu0 %v3238_v22, %s4694_s12 }
 0x4db   : > { %v2739_v32 = vpop.permute.xlu2 %2738 }
 0x4e6   : > { %v2888_v33 = vpop.permute.xlu2 %2887 }
 0x4ec   : > { %v2735_v28 = vpop.permute.xlu0 %2734 }
 0x4ed   : > { %v2809_v21 = vpop.permute.xlu1 %2808  ;;  %v2742_v1 = vsel %vm583_vm2, %v2739_v32, %v2735_v28 }
 0x4ee   : > { %v2886_v37 = vpop.permute.xlu2 %2885 }
 0x4ef   : > { %v2892_v25 = vsel %vm736_vm3, %v2886_v37, %v2888_v33 }
 0x4f5   : > { %v2737_v36 = vpop.permute.xlu1 %2736 }
 0x4f6   : > { %v2967_v24 = vpop.permute.xlu2 %2966  ;;  %v2740_v51 = vsel %vm583_vm2, %v2737_v36, %v2739_v32  ;;  %v2741_v4 = vsel %vm583_vm2, %v2735_v28, %v2737_v36 }
 0x4f8   : > { %v2811_v38 = vpop.permute.xlu0 %2810 }
 0x4f9   : > { %v2815_v6 = vsel %vm658_vm1, %v2809_v21, %v2811_v38 }
 0x4fa   : > { %v2818_v49 = vadd.f32 %v2815_v6, %v2741_v4 }
 0x4fc   : > { %v2895_v22 = vadd.f32 %v2892_v25, %v2818_v49  ;;  %v3541_v49 = vld [vmem:[#allocation8 + $0x10] sm:$0xff] }
 0x4fd   : > { %v3840_v25 = vld [vmem:[#allocation8 + $0x30] sm:$0xff] }
 0x4fe   : > { %v2813_v39 = vpop.permute.xlu1 %2812  ;;  %v2963_v43 = vpop.permute.xlu2 %2962 }
 0x4ff   : > { %v2814_v48 = vsel %vm658_vm1, %v2811_v38, %v2813_v39  ;;  %v2816_v62 = vsel %vm658_vm1, %v2813_v39, %v2809_v21 }
 0x500   : > { %v2819_v53 = vadd.f32 %v2814_v48, %v2740_v51  ;;  %v2817_v50 = vadd.f32 %v2816_v62, %v2742_v1 }
 0x502   : > { %v2890_v40 = vpop.permute.xlu0 %2889 }
 0x503   : > { %v2891_v60 = vsel %vm736_vm3, %v2888_v33, %v2890_v40  ;;  %v2893_v19 = vsel %vm736_vm3, %v2890_v40, %v2886_v37 }
 0x504   : > { %v2896_v5 = vadd.f32 %v2891_v60, %v2819_v53  ;;  %v2894_v20 = vadd.f32 %v2893_v19, %v2817_v50  ;;  %v3618_v19 = vld [vmem:[#allocation8 + $0x18] sm:$0xff] }
 0x509   : > { %v2965_v41 = vpop.permute.xlu1 %2964 }
 0x50a   : > { %v2968_v61 = vsel %vm814_vm4, %v2965_v41, %v2967_v24  ;;  %v2969_v8 = vsel %vm814_vm4, %v2963_v43, %v2965_v41 }
 0x50b   : > { %v2973_v34 = vadd.f32 %v2968_v61, %v2896_v5  ;;  %v2972_v0 = vadd.f32 %v2969_v8, %v2895_v22  ;;  %v3917_v8 = vld [vmem:[#allocation8 + $0x38] sm:$0xff] }
 0x50d   : > { %v3041_v52 = vadd.f32 %v3036_v16, %v2973_v34  ;;  %v2970_v16 = vsel %vm814_vm4, %v2967_v24, %v2963_v43  ;;  %v3040_v24 = vadd.f32 %v5666_v14, %v2972_v0 }
 0x50e   : > { %v2971_v18 = vadd.f32 %v2970_v16, %v2894_v20  ;;  %v3763_v20 = vld [vmem:[#allocation8 + $0x28] sm:$0xff] }
 0x50f   : > { %v3262_v58 = vpop.permute.xlu2 %3261 }
 0x510   : > { %v3039_v39 = vadd.f32 %v5663_v13, %v2971_v18 }
 0x514   : > { %v3108_v42 = vpop.permute.xlu0 %3107 }
 0x517   : > { %v3339_v11 = vpop.permute.xlu2 %3338 }
 0x518   : > { %v3110_v47 = vpop.permute.xlu1 %3109 }
 0x519   : > { %v3114_v33 = vsel %vm960_vm5, %v3108_v42, %v3110_v47 }
 0x51a   : > { %v3116_v48 = vadd.f32 %v3114_v33, %v3039_v39 }
 0x51f   : > { %v3185_v54 = vpop.permute.xlu0 %3184  ;;  %v3354_v37 = vpop.permute.xlu2 %3353 }
 0x520   : > { %v3112_v57 = vpop.permute.xlu1 %3111 }
 0x521   : > { %v3115_v7 = vsel %vm960_vm5, %v3112_v57, %v3108_v42  ;;  %v3113_v38 = vsel %vm960_vm5, %v3110_v47, %v3112_v57 }
 0x522   : > { %v3118_v17 = vadd.f32 %v3115_v7, %v3041_v52  ;;  %v3117_v51 = vadd.f32 %v3113_v38, %v3040_v24 }
 0x527   : > { %v3266_v35 = vpop.permute.xlu0 %3265 }
 0x528   : > { %v3189_v9 = vpop.permute.xlu1 %3188  ;;  %v3269_v26 = vsel %vm1116_vm8, %v3266_v35, %v3262_v58 }
 0x529   : > { %v3192_v15 = vsel %vm1038_vm6, %v3189_v9, %v3185_v54 }
 0x52a   : > { %v3195_v23 = vadd.f32 %v3192_v15, %v3118_v17  ;;  %v5796_v17 = vld [vmem:[%s4867_s21 + $0x10] sm:$0xff] }
 0x52c   : > { %v3272_v21 = vadd.f32 %v3269_v26, %v3195_v23  ;;  %v3695_v23 = vld [vmem:[#allocation8 + $0x20] sm:$0xff] }
 0x530   : > { %v3187_v27 = vpop.permute.xlu1 %3186 }
 0x531   : > { %v3343_v32 = vpop.permute.xlu0 %3342  ;;  %v3190_v41 = vsel %vm1038_vm6, %v3187_v27, %v3189_v9  ;;  %v3191_v43 = vsel %vm1038_vm6, %v3185_v54, %v3187_v27 }
 0x532   : > { %v3346_v28 = vsel %vm1194_vm7, %v3343_v32, %v3339_v11  ;;  %v3193_v61 = vadd.f32 %v3191_v43, %v3116_v48  ;;  %v3194_v5 = vadd.f32 %v3190_v41, %v3117_v51  ;;  %v4070_v51 = vld [vmem:[%s6052_s11] sm:$0xff] }
 0x533   : > { %v3349_v36 = vadd.f32 %v3346_v28, %v3272_v21 }
 0x535   : > { %v3358_v40 = vadd.f32 %v3354_v37, %v3349_v36 }
 0x537   : > { %vm3361_vm13 = vcmp.ge.f32.partialorder %v3358_v40, 0.0  ;;  %v3364_v53 = vmul.f32 0.2, %v3358_v40 }
 0x538   : > { %v3341_v42 = vpop.permute.xlu1 %3340 }
 0x539   : > { %v3367_v60 = vsel %vm3361_vm13, %v3358_v40, %v3364_v53  ;;  %v3264_v47 = vpop.permute.xlu0 %3263  ;;  %v3344_v13 = vsel %vm1194_vm7, %v3341_v42, %v3343_v32  ;;  %v3345_v34 = vsel %vm1194_vm7, %v3339_v11, %v3341_v42 }
 0x53a   : > { %v5729_v14 = vmul.f32 %v3367_v60, %v5068_v2  ;;  %v3267_v57 = vsel %vm1116_vm8, %v3264_v47, %v3266_v35  ;;  %v3268_v54 = vsel %vm1116_vm8, %v3262_v58, %v3264_v47  ;;  %v3389_v58 = vld [vmem:[#allocation8] sm:$0xff] }
 0x53b   : > { %v3270_v62 = vadd.f32 %v3268_v54, %v3193_v61  ;;  %v3271_v1 = vadd.f32 %v3267_v57, %v3194_v5 }
 0x53c   : > { %3445 = vmatpush.msrb.mxu2 %v5729_v14 }
 0x53d   : > { %v3347_v4 = vadd.f32 %v3345_v34, %v3270_v62  ;;  %v3348_v6 = vadd.f32 %v3344_v13, %v3271_v1 }
 0x53e   : > { %3446 = vmatpush.msrb.mxu2 %v5516_v46 }
 0x53f   : > { %v3356_v7 = vadd.f32 %v3354_v37, %v3347_v4  ;;  %v3357_v2 = vadd.f32 %v3354_v37, %v3348_v6 }
 0x540   : > { %3447 = vmatpush.msrb.mxu2 %v5293_v30 }
 0x541   : > { %vm3359_vm14 = vcmp.ge.f32.partialorder %v3356_v7, 0.0  ;;  %vm3360_vm15 = vcmp.ge.f32.partialorder %v3357_v2, 0.0  ;;  %v3362_v35 = vmul.f32 0.2, %v3356_v7  ;;  %v3363_v9 = vmul.f32 0.2, %v3357_v2 }
 0x542   : > { %3448 = vmatpush.msrb.mxu2 %v5085_v12 }
 0x543   : > { %v3365_v50 = vsel %vm3359_vm14, %v3356_v7, %v3362_v35  ;;  %v3366_v52 = vsel %vm3360_vm15, %v3357_v2, %v3363_v9 }
 0x544   : > { %v5742_v11 = vmul.f32 %v3365_v50, %v5064_v55  ;;  %v5745_v15 = vmul.f32 %v3366_v52, %v5066_v63  ;;  %3449 = vmatpush.msrb.mxu2 %v5361_v31  ;;  %v5766_v55 = vld [vmem:[%s4867_s21] sm:$0xff]  ;;  %v5770_v63 = vld [vmem:[%s4867_s21 + $0x8] sm:$0xff] }
 0x545   : > { %4370 = vmatmul.msk.f32.vlgmr.msrb.gmra.mxu2 %vm3390_vm0, %v3389_v58  ;;  %v3464_v31 = vld [vmem:[#allocation8 + $0x8] sm:$0xff] }
 0x546   : > { %3405 = vmatpush.msra.mxu0 %v5742_v11  ;;  %3425 = vmatpush.msrb.mxu1 %v5745_v15 }
 0x547   : > { %3479 = vmatpush.msra.mxu3 %v5742_v11  ;;  %3556 = vmatpush.msra.mxu2 %v5742_v11 }
 0x548   : > { %3406 = vmatpush.msra.mxu0 %v5510_v44  ;;  %3426 = vmatpush.msrb.mxu1 %v5513_v45 }
 0x549   : > { %3480 = vmatpush.msra.mxu3 %v5510_v44  ;;  %3557 = vmatpush.msra.mxu2 %v5510_v44 }
 0x54a   : > { %3407 = vmatpush.msra.mxu0 %v5260_v59  ;;  %3427 = vmatpush.msrb.mxu1 %v5290_v29 }
 0x54b   : > { %3481 = vmatpush.msra.mxu3 %v5260_v59  ;;  %3558 = vmatpush.msra.mxu2 %v5260_v59 }
 0x54c   : > { %3408 = vmatpush.msra.mxu0 %v5071_v3  ;;  %3428 = vmatpush.msrb.mxu1 %v5079_v10 }
 0x54d   : > { %3482 = vmatpush.msra.mxu3 %v5071_v3  ;;  %3559 = vmatpush.msra.mxu2 %v5071_v3 }
 0x54e   : > { %3409 = vmatpush.msra.mxu0 %v5766_v55  ;;  %3429 = vmatpush.msrb.mxu1 %v5770_v63 }
 0x54f   : > { %3483 = vmatpush.msra.mxu3 %v5766_v55  ;;  %3560 = vmatpush.msra.mxu2 %v5766_v55 }
 0x550   : > { %4368 = vmatmul.msk.f32.vlgmr.msra.gmra.mxu0 %vm3390_vm0, %v3389_v58  ;;  %4369 = vmatmul.msk.f32.vlgmr.msrb.gmra.mxu1 %vm3390_vm0, %v3389_v58 }
 0x551   : > { %3499 = vmatpush.msrb.mxu0 %v5745_v15  ;;  %3519 = vmatpush.msra.mxu1 %v5729_v14 }
 0x552   : > { %3576 = vmatpush.msrb.mxu3 %v5745_v15  ;;  %3653 = vmatpush.msrb.mxu2 %v5745_v15 }
 0x553   : > { %4371 = vmatmul.msk.f32.vlgmr.msra.gmra.mxu3 %vm3390_vm0, %v3464_v31  ;;  %3500 = vmatpush.msrb.mxu0 %v5513_v45 }
 0x554   : > { %3520 = vmatpush.msra.mxu1 %v5516_v46  ;;  %3577 = vmatpush.msrb.mxu3 %v5513_v45 }
 0x555   : > { %3654 = vmatpush.msrb.mxu2 %v5513_v45  ;;  %3501 = vmatpush.msrb.mxu0 %v5290_v29 }
 0x556   : > { %3521 = vmatpush.msra.mxu1 %v5293_v30  ;;  %3578 = vmatpush.msrb.mxu3 %v5290_v29 }
 0x557   : > { %3655 = vmatpush.msrb.mxu2 %v5290_v29  ;;  %3502 = vmatpush.msrb.mxu0 %v5079_v10 }
 0x558   : > { %3522 = vmatpush.msra.mxu1 %v5085_v12  ;;  %3579 = vmatpush.msrb.mxu3 %v5079_v10 }
 0x559   : > { %3656 = vmatpush.msrb.mxu2 %v5079_v10  ;;  %3503 = vmatpush.msrb.mxu0 %v5770_v63 }
 0x55a   : > { %3523 = vmatpush.msra.mxu1 %v5796_v17  ;;  %3580 = vmatpush.msrb.mxu3 %v5770_v63 }
 0x55b   : > { %3657 = vmatpush.msrb.mxu2 %v5770_v63  ;;  %4372 = vmatmul.msk.f32.vlgmr.msrb.gmra.mxu0 %vm3390_vm0, %v3464_v31 }
 0x55c   : > { %4373 = vmatmul.msk.f32.vlgmr.msra.gmra.mxu1 %vm3390_vm0, %v3464_v31  ;;  %4374 = vmatmul.msk.f32.vlgmr.msra.gmra.mxu2 %vm3390_vm0, %v3541_v49 }
 0x55d   : > { %3596 = vmatpush.msra.mxu0 %v5729_v14  ;;  %3633 = vmatpush.msrb.mxu1 %v5742_v11 }
 0x55e   : > { %3673 = vmatpush.msra.mxu3 %v5729_v14  ;;  %3750 = vmatpush.msra.mxu2 %v5729_v14 }
 0x55f   : > { %4375 = vmatmul.msk.f32.vlgmr.msrb.gmra.mxu3 %vm3390_vm0, %v3541_v49  ;;  %3597 = vmatpush.msra.mxu0 %v5516_v46 }
 0x560   : > { %3634 = vmatpush.msrb.mxu1 %v5510_v44  ;;  %3674 = vmatpush.msra.mxu3 %v5516_v46 }
 0x561   : > { %3751 = vmatpush.msra.mxu2 %v5516_v46  ;;  %3598 = vmatpush.msra.mxu0 %v5293_v30 }
 0x562   : > { %3635 = vmatpush.msrb.mxu1 %v5260_v59  ;;  %3675 = vmatpush.msra.mxu3 %v5293_v30 }
 0x563   : > { %3752 = vmatpush.msra.mxu2 %v5293_v30  ;;  %3599 = vmatpush.msra.mxu0 %v5085_v12 }
 0x564   : > { %3636 = vmatpush.msrb.mxu1 %v5071_v3  ;;  %3676 = vmatpush.msra.mxu3 %v5085_v12 }
 0x565   : > { %3753 = vmatpush.msra.mxu2 %v5085_v12  ;;  %3600 = vmatpush.msra.mxu0 %v5796_v17 }
 0x566   : > { %3637 = vmatpush.msrb.mxu1 %v5766_v55  ;;  %3677 = vmatpush.msra.mxu3 %v5796_v17 }
 0x567   : > { %3754 = vmatpush.msra.mxu2 %v5796_v17  ;;  %4376 = vmatmul.msk.f32.vlgmr.msra.gmra.mxu0 %vm3390_vm0, %v3541_v49 }
 0x568   : > { %4378 = vmatmul.msk.f32.vlgmr.msrb.gmra.mxu2 %vm3390_vm0, %v3618_v19  ;;  %3710 = vmatpush.msrb.mxu0 %v5742_v11 }
 0x569   : > { %3730 = vmatpush.msra.mxu1 %v5745_v15  ;;  %3778 = vmatpush.msrb.mxu3 %v5742_v11 }
 0x56a   : > { %3855 = vmatpush.msrb.mxu2 %v5742_v11  ;;  %4379 = vmatmul.msk.f32.vlgmr.msra.gmra.mxu3 %vm3390_vm0, %v3618_v19 }
 0x56b   : > { %4377 = vmatmul.msk.f32.vlgmr.msrb.gmra.mxu1 %vm3390_vm0, %v3618_v19  ;;  %3711 = vmatpush.msrb.mxu0 %v5510_v44 }
 0x56c   : > { %3731 = vmatpush.msra.mxu1 %v5513_v45  ;;  %3779 = vmatpush.msrb.mxu3 %v5510_v44 }
 0x56d   : > { %3856 = vmatpush.msrb.mxu2 %v5510_v44  ;;  %3712 = vmatpush.msrb.mxu0 %v5260_v59 }
 0x56e   : > { %3732 = vmatpush.msra.mxu1 %v5290_v29  ;;  %3780 = vmatpush.msrb.mxu3 %v5260_v59 }
 0x56f   : > { %3857 = vmatpush.msrb.mxu2 %v5260_v59  ;;  %3713 = vmatpush.msrb.mxu0 %v5071_v3 }
 0x570   : > { %3733 = vmatpush.msra.mxu1 %v5079_v10  ;;  %3781 = vmatpush.msrb.mxu3 %v5071_v3 }
 0x571   : > { %3858 = vmatpush.msrb.mxu2 %v5071_v3  ;;  %3714 = vmatpush.msrb.mxu0 %v5766_v55 }
 0x572   : > { %3734 = vmatpush.msra.mxu1 %v5770_v63  ;;  %3782 = vmatpush.msrb.mxu3 %v5766_v55 }
 0x573   : > { %3859 = vmatpush.msrb.mxu2 %v5766_v55  ;;  %4383 = vmatmul.msk.f32.vlgmr.msrb.gmra.mxu3 %vm3390_vm0, %v3763_v20 }
 0x574   : > { %4382 = vmatmul.msk.f32.vlgmr.msra.gmra.mxu2 %vm3390_vm0, %v3695_v23  ;;  %3798 = vmatpush.msra.mxu0 %v5745_v15 }
 0x575   : > { %3818 = vmatpush.msrb.mxu1 %v5729_v14  ;;  %3875 = vmatpush.msra.mxu3 %v5745_v15 }
 0x576   : > { %3952 = vmatpush.msra.mxu2 %v5745_v15  ;;  %4380 = vmatmul.msk.f32.vlgmr.msrb.gmra.mxu0 %vm3390_vm0, %v3695_v23 }
 0x577   : > { %4381 = vmatmul.msk.f32.vlgmr.msra.gmra.mxu1 %vm3390_vm0, %v3695_v23  ;;  %3799 = vmatpush.msra.mxu0 %v5513_v45 }
 0x578   : > { %3819 = vmatpush.msrb.mxu1 %v5516_v46  ;;  %3876 = vmatpush.msra.mxu3 %v5513_v45 }
 0x579   : > { %3953 = vmatpush.msra.mxu2 %v5513_v45  ;;  %3800 = vmatpush.msra.mxu0 %v5290_v29 }
 0x57a   : > { %3820 = vmatpush.msrb.mxu1 %v5293_v30  ;;  %3877 = vmatpush.msra.mxu3 %v5290_v29 }
 0x57b   : > { %3954 = vmatpush.msra.mxu2 %v5290_v29  ;;  %3801 = vmatpush.msra.mxu0 %v5079_v10 }
 0x57c   : > { %3821 = vmatpush.msrb.mxu1 %v5085_v12  ;;  %3878 = vmatpush.msra.mxu3 %v5079_v10 }
 0x57d   : > { %3955 = vmatpush.msra.mxu2 %v5079_v10  ;;  %3802 = vmatpush.msra.mxu0 %v5770_v63 }
 0x57e   : > { %3822 = vmatpush.msrb.mxu1 %v5796_v17  ;;  %4386 = vmatmul.msk.f32.vlgmr.msrb.gmra.mxu2 %vm3390_vm0, %v3840_v25 }
 0x57f   : > { %3879 = vmatpush.msra.mxu3 %v5770_v63  ;;  %3956 = vmatpush.msra.mxu2 %v5770_v63 }
 0x580   : > { %4384 = vmatmul.msk.f32.vlgmr.msra.gmra.mxu0 %vm3390_vm0, %v3763_v20  ;;  %4385 = vmatmul.msk.f32.vlgmr.msrb.gmra.mxu1 %vm3390_vm0, %v3763_v20 }
 0x581   : > { %3895 = vmatpush.msrb.mxu0 %v5729_v14  ;;  %3932 = vmatpush.msra.mxu1 %v5742_v11 }
 0x582   : > { %3972 = vmatpush.msrb.mxu3 %v5729_v14  ;;  %4049 = vmatpush.msrb.mxu2 %v5729_v14 }
 0x583   : > { %4387 = vmatmul.msk.f32.vlgmr.msra.gmra.mxu3 %vm3390_vm0, %v3840_v25  ;;  %3896 = vmatpush.msrb.mxu0 %v5516_v46 }
 0x584   : > { %3933 = vmatpush.msra.mxu1 %v5510_v44  ;;  %3973 = vmatpush.msrb.mxu3 %v5516_v46 }
 0x585   : > { %4050 = vmatpush.msrb.mxu2 %v5516_v46  ;;  %3897 = vmatpush.msrb.mxu0 %v5293_v30 }
 0x586   : > { %3934 = vmatpush.msra.mxu1 %v5260_v59  ;;  %3974 = vmatpush.msrb.mxu3 %v5293_v30 }
 0x587   : > { %4051 = vmatpush.msrb.mxu2 %v5293_v30  ;;  %3898 = vmatpush.msrb.mxu0 %v5085_v12 }
 0x588   : > { %3935 = vmatpush.msra.mxu1 %v5071_v3  ;;  %3975 = vmatpush.msrb.mxu3 %v5085_v12 }
 0x589   : > { %4052 = vmatpush.msrb.mxu2 %v5085_v12  ;;  %3899 = vmatpush.msrb.mxu0 %v5796_v17  ;;  %v3994_v12 = vld [vmem:[#allocation8 + $0x40] sm:$0xff] }
 0x58a   : > { %3936 = vmatpush.msra.mxu1 %v5766_v55  ;;  %4388 = vmatmul.msk.f32.vlgmr.msrb.gmra.mxu0 %vm3390_vm0, %v3840_v25 }
 0x58b   : > { %4009 = vmatpush.msra.mxu0 %v5742_v11  ;;  %4390 = vmatmul.msk.f32.vlgmr.msra.gmra.mxu2 %vm3390_vm0, %v3917_v8 }
 0x58c   : > { %4029 = vmatpush.msrb.mxu1 %v5745_v15  ;;  %3976 = vmatpush.msrb.mxu3 %v5796_v17 }
 0x58d   : > { %4391 = vmatmul.msk.f32.vlgmr.msrb.gmra.mxu3 %vm3390_vm0, %v3917_v8  ;;  %4010 = vmatpush.msra.mxu0 %v5510_v44 }
 0x58e   : > { %4030 = vmatpush.msrb.mxu1 %v5513_v45  ;;  %4053 = vmatpush.msrb.mxu2 %v5796_v17 }
 0x58f   : > { %4389 = vmatmul.msk.f32.vlgmr.msra.gmra.mxu1 %vm3390_vm0, %v3917_v8  ;;  %4011 = vmatpush.msra.mxu0 %v5260_v59 }
 0x590   : > { %4031 = vmatpush.msrb.mxu1 %v5290_v29 }
 0x591   : > { %4012 = vmatpush.msra.mxu0 %v5071_v3 }
 0x592   : > { %4032 = vmatpush.msrb.mxu1 %v5079_v10 }
 0x593   : > { %4013 = vmatpush.msra.mxu0 %v5766_v55  ;;  %4394 = vmatmul.msk.f32.vlgmr.msrb.gmra.mxu2 %vm3390_vm0, %v3994_v12 }
 0x594   : > { %4392 = vmatmul.msk.f32.vlgmr.msra.gmra.mxu0 %vm3390_vm0, %v3994_v12  ;;  %4033 = vmatpush.msrb.mxu1 %v5770_v63 }
 0x597   : > { %4393 = vmatmul.msk.f32.vlgmr.msrb.gmra.mxu1 %vm3390_vm0, %v3994_v12 }
 0x5c8   : > { %v3451_v30 = vpop.f32.mrf.mxu2 }
 0x5c9   : > { %3458 = vrot.lane.b32.xlu1 %v3451_v30, %s4688_s18 }
 0x5cd   : > { %v3411_v59 = vpop.f32.mrf.mxu0  ;;  %v3431_v29 = vpop.f32.mrf.mxu1 }
 0x5ce   : > { %3456 = vrot.lane.b32.xlu0 %v3431_v29, %s4688_s18  ;;  %3454 = vrot.lane.b32.xlu2 %v3411_v59, %s4688_s18  ;;  %s4401_s18 = smul.u32 24, %s4673_s24 }
 0x5d6   : > { %v3485_v3 = vpop.f32.mrf.mxu3 }
 0x5d7   : > { %3528 = vrot.lane.b32.xlu2 %v3485_v3, %s4687_s15 }
 0x5d8   : > { %v3505_v10 = vpop.f32.mrf.mxu0 }
 0x5d9   : > { %v3525_v44 = vpop.f32.mrf.mxu1  ;;  %3530 = vrot.lane.b32.xlu0 %v3505_v10, %s4687_s15 }
 0x5da   : > { %3532 = vrot.lane.b32.xlu1 %v3525_v44, %s4687_s15 }
 0x5df   : > { %v3562_v45 = vpop.f32.mrf.mxu2 }
 0x5e0   : > { %3605 = vrot.lane.b32.xlu2 %v3562_v45, %s4689_s16 }
 0x5e2   : > { %v3582_v46 = vpop.f32.mrf.mxu3 }
 0x5e3   : > { %3607 = vrot.lane.b32.xlu0 %v3582_v46, %s4689_s16 }
 0x5e4   : > { %v3602_v22 = vpop.f32.mrf.mxu0 }
 0x5e5   : > { %3609 = vrot.lane.b32.xlu1 %v3602_v22, %s4689_s16 }
 0x5e8   : > { %v3639_v16 = vpop.f32.mrf.mxu1 }
 0x5e9   : > { %3682 = vrot.lane.b32.xlu2 %v3639_v16, %s4690_s27 }
 0x5eb   : > { %v3659_v26 = vpop.f32.mrf.mxu2 }
 0x5ec   : > { %3684 = vrot.lane.b32.xlu0 %v3659_v26, %s4690_s27 }
 0x5ed   : > { %v3679_v27 = vpop.f32.mrf.mxu3 }
 0x5ee   : > { %3686 = vrot.lane.b32.xlu1 %v3679_v27, %s4690_s27  ;;  %s6077_s27 = sld [smem:[#allocation19_spill]] }
 0x5f3   : > { %v5926_v18 = vpop.f32.mrf.mxu0 }
 0x5f4   : > { %v5928_v0 = vpop.f32.mrf.mxu1  ;;  %s4615_s15 = scalar_lea.hbm %s6077_s27, 48 }
 0x5f6   : > { %v3784_v32 = vpop.f32.mrf.mxu3 }
 0x5f7   : > { %v5930_v21 = vpop.f32.mrf.mxu2  ;;  %3827 = vrot.lane.b32.xlu2 %v3784_v32, %s4692_s17 }
 0x5fd   : > { %v3804_v28 = vpop.f32.mrf.mxu0  ;;  %v3824_v36 = vpop.f32.mrf.mxu1 }
 0x5fe   : > { %3831 = vrot.lane.b32.xlu1 %v3824_v36, %s4692_s17  ;;  %3829 = vrot.lane.b32.xlu0 %v3804_v28, %s4692_s17  ;;  %s4102_s17 = scalar_lea.hbm %s6077_s27, %s4401_s18 }
 0x5ff   : > { %s4106_s28 = sshll.u32 %s4102_s17, 4  ;;  %s4107_s28 = int_to_ptr.hbm [resolvable:$true] %s4106_s28 }
 0x600   : > { %s4609_s13 = sshra.s32 %s4107_s28, 4  ;;  %s4610_s13 = int_to_ptr.hbm [resolvable:$true] %s4609_s13 }
 0x601   : > { %v3861_v33 = vpop.f32.mrf.mxu2  ;;  %s4611_s19 = scalar_lea.hbm %s4610_s13, 24  ;;  %p4616_p10 = scmp.lt.s32.totalorder %s4610_s13, %s6077_s27 }
 0x602   : > { %3904 = vrot.lane.b32.xlu2 %v3861_v33, %s4693_s10  ;;  %p4612_p1 = scmp.ne.s32.totalorder %s4610_s13, %s4611_s19  ;;  %p4617_p11 = scmp.lt.s32.totalorder %s4615_s15, %s4611_s19 }
 0x604   : > { %p4613_p3 = pnand %p4612_p1, %p4839_p2  ;;  %p4618_p12 = por %p4617_p11, %p4616_p10 }
 0x606   : > { %v3881_v37 = vpop.f32.mrf.mxu3  ;;  %p4614_p9 = pneg %p4613_p3 }
 0x607   : > { %3906 = vrot.lane.b32.xlu0 %v3881_v37, %s4693_s10  ;;  %v3901_v38 = vpop.f32.mrf.mxu0 }
 0x608   : > { %3908 = vrot.lane.b32.xlu1 %v3901_v38, %s4693_s10  ;;  %s495_s10 = scalar_lea.vmem [#allocation9], %s4400_s8  ;;  %p4619_p13 = pnand %p4618_p12, %p4614_p9 }
 0x60c   : > { %v3938_v39 = vpop.f32.mrf.mxu1 }
 0x60d   : > { %3981 = vrot.lane.b32.xlu2 %v3938_v39, %s4694_s12 }
 0x60e   : > { %v3958_v24 = vpop.f32.mrf.mxu2 }
 0x60f   : > { %3983 = vrot.lane.b32.xlu0 %v3958_v24, %s4694_s12 }
 0x610   : > { %v3978_v40 = vpop.f32.mrf.mxu3 }
 0x611   : > { %3985 = vrot.lane.b32.xlu1 %v3978_v40, %s4694_s12  ;;  %v4015_v41 = vpop.f32.mrf.mxu0 }
 0x614   : > { %v4035_v43 = vpop.f32.mrf.mxu1 }
 0x615   : > { %4058 = vrot.lane.b32.xlu2 %v4015_v41, %s4695_s14 }
 0x616   : > { %v4055_v48 = vpop.f32.mrf.mxu2 }
 0x617   : > { %4060 = vrot.lane.b32.xlu0 %v4035_v43, %s4695_s14 }
 0x619   : > { %4062 = vrot.lane.b32.xlu1 %v4055_v48, %s4695_s14  ;;  %s4104_s14 = sshll.u32 %s495_s10, 4  ;;  %s4105_s14 = int_to_ptr.vmem [resolvable:$true] %s4104_s14 }
 0x61d   : > { %4073 = vperm.xlu2 %4497, %v4070_v51  }
 0x628   : > { %v3455_v53 = vpop.permute.xlu2 %3454 }
 0x631   : > { %v3529_v42 = vpop.permute.xlu2 %3528 }
 0x63a   : > { %v3606_v5 = vpop.permute.xlu2 %3605 }
 0x63b   : > { %v3459_v61 = vpop.permute.xlu1 %3458 }
 0x63c   : > { %v3462_v11 = vsel %vm583_vm2, %v3459_v61, %v3455_v53 }
 0x640   : > { %v3457_v60 = vpop.permute.xlu0 %3456 }
 0x641   : > { %v3460_v15 = vsel %vm583_vm2, %v3457_v60, %v3459_v61  ;;  %v3461_v49 = vsel %vm583_vm2, %v3455_v53, %v3457_v60 }
 0x643   : > { %v3683_v14 = vpop.permute.xlu2 %3682 }
 0x64b   : > { %v3531_v13 = vpop.permute.xlu0 %3530 }
 0x64c   : > { %v3533_v47 = vpop.permute.xlu1 %3532  ;;  %v3535_v50 = vsel %vm658_vm1, %v3529_v42, %v3531_v13 }
 0x64d   : > { %v3536_v2 = vsel %vm658_vm1, %v3533_v47, %v3529_v42  ;;  %v3534_v58 = vsel %vm658_vm1, %v3531_v13, %v3533_v47  ;;  %v3538_v25 = vadd.f32 %v3535_v50, %v3461_v49 }
 0x64e   : > { %v3537_v19 = vadd.f32 %v3536_v2, %v3462_v11  ;;  %v3539_v8 = vadd.f32 %v3534_v58, %v3460_v15 }
 0x651   : > { %v3828_v34 = vpop.permute.xlu2 %3827 }
 0x655   : > { %v3608_v57 = vpop.permute.xlu0 %3607 }
 0x656   : > { %v3612_v20 = vsel %vm736_vm3, %v3606_v5, %v3608_v57 }
 0x657   : > { %v3610_v54 = vpop.permute.xlu1 %3609  ;;  %v3615_v3 = vadd.f32 %v3612_v20, %v3538_v25 }
 0x658   : > { %v3613_v31 = vsel %vm736_vm3, %v3610_v54, %v3606_v5  ;;  %v3611_v23 = vsel %vm736_vm3, %v3608_v57, %v3610_v54 }
 0x659   : > { %v3614_v30 = vadd.f32 %v3613_v31, %v3537_v19  ;;  %v3616_v10 = vadd.f32 %v3611_v23, %v3539_v8 }
 0x65c   : > { %v3905_v4 = vpop.permute.xlu2 %3904 }
 0x65e   : > { %v3685_v62 = vpop.permute.xlu0 %3684 }
 0x65f   : > { %v3689_v59 = vsel %vm814_vm4, %v3683_v14, %v3685_v62 }
 0x660   : > { %v3687_v1 = vpop.permute.xlu1 %3686  ;;  %v3692_v45 = vadd.f32 %v3689_v59, %v3615_v3 }
 0x661   : > { %v3690_v12 = vsel %vm814_vm4, %v3687_v1, %v3683_v14  ;;  %v3688_v29 = vsel %vm814_vm4, %v3685_v62, %v3687_v1 }
 0x662   : > { %v3691_v44 = vadd.f32 %v3690_v12, %v3614_v30  ;;  %v3693_v46 = vadd.f32 %v3688_v29, %v3616_v10  ;;  %v3760_v37 = vadd.f32 %v5928_v0, %v3692_v45 }
 0x664   : > { %v3759_v28 = vadd.f32 %v5926_v18, %v3691_v44  ;;  %v3761_v33 = vadd.f32 %v5930_v21, %v3693_v46 }
 0x667   : > { %v3982_v35 = vpop.permute.xlu2 %3981 }
 0x66f   : > { %v4059_v16 = vpop.permute.xlu2 %4058 }
 0x670   : > { %v3832_v6 = vpop.permute.xlu1 %3831  ;;  %v3830_v7 = vpop.permute.xlu0 %3829 }
 0x671   : > { %v3834_v26 = vsel %vm960_vm5, %v3828_v34, %v3830_v7  ;;  %v3835_v32 = vsel %vm960_vm5, %v3832_v6, %v3828_v34  ;;  %v3833_v36 = vsel %vm960_vm5, %v3830_v7, %v3832_v6 }
 0x672   : > { %v3836_v39 = vadd.f32 %v3834_v26, %v3759_v28  ;;  %v3838_v41 = vadd.f32 %v3835_v32, %v3761_v33  ;;  %v3837_v18 = vadd.f32 %v3833_v36, %v3760_v37 }
 0x677   : > { %v4074_v34 = vpop.permute.xlu2 %4073 }
 0x679   : > { %v3907_v9 = vpop.permute.xlu0 %3906 }
 0x67a   : > { %v3909_v52 = vpop.permute.xlu1 %3908  ;;  %v3911_v38 = vsel %vm1038_vm6, %v3905_v4, %v3907_v9 }
 0x67b   : > { %v3910_v24 = vsel %vm1038_vm6, %v3907_v9, %v3909_v52  ;;  %v3912_v40 = vsel %vm1038_vm6, %v3909_v52, %v3905_v4  ;;  %v3913_v48 = vadd.f32 %v3911_v38, %v3836_v39 }
 0x67c   : > { %v3914_v51 = vadd.f32 %v3910_v24, %v3837_v18  ;;  %v3915_v53 = vadd.f32 %v3912_v40, %v3838_v41 }
 0x681   : > { %v3984_v22 = vpop.permute.xlu0 %3983 }
 0x682   : > { %v3988_v43 = vsel %vm1116_vm8, %v3982_v35, %v3984_v22 }
 0x683   : > { %v3986_v27 = vpop.permute.xlu1 %3985  ;;  %v3990_v42 = vadd.f32 %v3988_v43, %v3913_v48 }
 0x684   : > { %v3987_v21 = vsel %vm1116_vm8, %v3984_v22, %v3986_v27  ;;  %v3989_v0 = vsel %vm1116_vm8, %v3986_v27, %v3982_v35 }
 0x685   : > { %v3991_v61 = vadd.f32 %v3987_v21, %v3914_v51  ;;  %v3992_v5 = vadd.f32 %v3989_v0, %v3915_v53 }
 0x689   : > { %v4061_v60 = vpop.permute.xlu0 %4060 }
 0x68a   : > { %v4065_v47 = vsel %vm1194_vm7, %v4059_v16, %v4061_v60 }
 0x68b   : > { %v4063_v13 = vpop.permute.xlu1 %4062  ;;  %v4067_v14 = vadd.f32 %v4065_v47, %v3990_v42 }
 0x68c   : > { %v4064_v57 = vsel %vm1194_vm7, %v4061_v60, %v4063_v13  ;;  %v4066_v54 = vsel %vm1194_vm7, %v4063_v13, %v4059_v16 }
 0x68d   : > { %v4068_v62 = vadd.f32 %v4064_v57, %v3991_v61  ;;  %v4069_v1 = vadd.f32 %v4066_v54, %v3992_v5  ;;  %v4076_v4 = vadd.f32 %v4074_v34, %v4067_v14 }
 0x68f   : > { %v4077_v6 = vadd.f32 %v4074_v34, %v4068_v62  ;;  %v4078_v7 = vadd.f32 %v4074_v34, %v4069_v1  ;;  %v4079_v2 = vmul.f32 0.2, %v4076_v4 }
 0x691   : > { %v4080_v35 = vmul.f32 0.2, %v4077_v6  ;;  %v4081_v9 = vmul.f32 0.2, %v4078_v7  ;;  %v4082_v56 = vadd.f32 %v5766_v55, %v4079_v2 }
 0x693   : > { %v4083_v58 = vadd.f32 %v5770_v63, %v4080_v35  ;;  %v4084_v50 = vadd.f32 %v5796_v17, %v4081_v9  ;;  %4085 = vst [vmem:[%s495_s10] sm:$0xff] %v4082_v56 }
 0x695   : > { %4086 = vst [vmem:[%s495_s10 + $0x8] sm:$0xff] %v4083_v58 }
 0x696   : > { %4087 = vst [vmem:[%s495_s10 + $0x10] sm:$0xff] %v4084_v50 }
 0x697   : > { %4622 = shalt.err (!%p4619_p13)
}
 0x698   : > { %4412 = dma.vmem_to_hbm [thread:$0]  (%p4839_p2), %s4105_s14, 384, %s4107_s28, %s4089_s20  }
 0x699 PF: > { %s6079_s25 = sld [smem:[#allocation13_spill]]  ;;  %p4426_p0 = pnand %p4231_p6, %p4846_p5 }
 0x69b   : > { %p4427_p4 = pneg %p4426_p0 }
 0x69f   : > { %s4118_s24 = sand.u32 1, %s6079_s25  }
 0x6a0   : > { %s4119_s17 = scalar_lea.sflag [#allocation5], %s4118_s24 }
 0x6a1   : > { %4656 = dma.done.wait (%p4427_p4), %s4119_s17, 384  }
 0x6a2   : > { %4658 = vsyncadd (%p4427_p4), %s4119_s17, 4294966912  ;;  %s29_s26 = sadd.s32 1, %s4681_s26   ;;  %s6080_s24 = sld [smem:[#allocation14_spill]] }
 0x6a3   : > { %p26_p7 = scmp.ge.s32.totalorder %s29_s26, 4   ;;  %s6081_s25 = sld [smem:[#allocation15_spill]] }
 0x6a4   : > { %s6082_s21 = smov %s4665_s22  ;;  %s6083_s22 = smov %s4669_s23 }
 0x6a5   : > { %s6084_s23 = smov %s4844_s29  ;;  %28 = sbr.rel (!%p26_p7) target bundleno = 11 (0xb), region = 164 }
 0x6aa   :  { %4125 = vsyncpa [#allocation4], 1 }
 0x6ab   :  { %4127 = vsyncpa [#allocation4 + $0x1], 1 }
 0x6ac   :  { %4128 = vsyncpa [#allocation7], 1 }
 0x6ad   :  { %4129 = vsyncpa [#allocation5], 1 }
 0x6ae   :  { %4131 = vsyncpa [#allocation5 + $0x1], 1 }

</bundles_post_ra>
